<compile_context>
chip_gen: v5e
topology: v5e:2x2
jax: 0.10.0
libtpu: 0.0.40
codegen_flags: <defaults>
</compile_context>

<pallas_src>
import functools

import jax
import jax.numpy as jnp
from jax.experimental import pallas as pl
from jax.experimental.pallas import tpu as pltpu


# ----------------------------------------------------------------------------
# Helpers
# ----------------------------------------------------------------------------
def _round_up(x, m):
    return (x + m - 1) // m * m


def _pick_tile(n, candidates=(512, 256, 128)):
    """Return (tile, padded_n) with tile a lane-dense divisor of padded_n."""
    nr = _round_up(n, 128)
    for c in candidates:
        if nr % c == 0:
            return c, nr
    return 128, nr  # unreachable (128 always divides nr)


_VMEM_LIMIT = 32 * 1024 * 1024  # safe on v5e/v6e (128 MiB) and v7x (64 MiB)


def _apply_act(y, act):
    if act == "relu":
        y = jnp.maximum(y, 0.0)
    elif act == "gelu":
        # TODO(synk): tanh-approx GELU; x_transformers' default nn.GELU is exact erf.
        y = 0.5 * y * (1.0 + jnp.tanh(0.7978845608028654 *
                                      (y + 0.044715 * y * y * y)))
    return y


# ----------------------------------------------------------------------------
# Fused matmul kernel(s): [LayerNorm] -> A@B + bias [+residual] [+act/sigmoid]
# ----------------------------------------------------------------------------
def _mm_single_kernel(*refs, act, has_ln, has_res, has_mask):
    # Single K-tile: no accumulator scratch; prologue + dot + epilogue fused.
    idx = 3
    a_ref, b_ref, bias_ref = refs[0], refs[1], refs[2]
    g_ref = be_ref = res_ref = mask_ref = None
    if has_ln:
        g_ref, be_ref = refs[idx], refs[idx + 1]
        idx += 2
    if has_res:
        res_ref = refs[idx]
        idx += 1
    if has_mask:
        mask_ref = refs[idx]
        idx += 1
    o_ref = refs[idx]

    a = a_ref[...]
    if has_ln:
        a = a.astype(jnp.float32)
        mu = jnp.mean(a, axis=-1, keepdims=True)
        xc = a - mu
        var = jnp.mean(xc * xc, axis=-1, keepdims=True)
        a = xc * jax.lax.rsqrt(var + 1e-5) * g_ref[...] + be_ref[...]
    y = jnp.dot(a.astype(jnp.bfloat16), b_ref[...],
                preferred_element_type=jnp.float32)
    y = y + bias_ref[...]
    if has_res:
        y = y + res_ref[...].astype(jnp.float32)
    y = _apply_act(y, act)
    if has_mask:
        s = 1.0 / (1.0 + jnp.exp(-y))
        y = jnp.where(jnp.broadcast_to(mask_ref[...] > 0.5, y.shape), s, y)
    o_ref[...] = y.astype(o_ref.dtype)


def _mm_multi_kernel(*refs, act, has_res, has_mask):
    # Multi K-tile: f32 VMEM accumulator, epilogue at last K step.
    idx = 3
    a_ref, b_ref, bias_ref = refs[0], refs[1], refs[2]
    res_ref = mask_ref = None
    if has_res:
        res_ref = refs[idx]
        idx += 1
    if has_mask:
        mask_ref = refs[idx]
        idx += 1
    o_ref, acc_ref = refs[idx], refs[idx + 1]

    @pl.when(pl.program_id(2) == 0)
    def _():
        acc_ref[...] = jnp.zeros_like(acc_ref)

    acc_ref[...] += jnp.dot(a_ref[...].astype(jnp.bfloat16), b_ref[...],
                            preferred_element_type=jnp.float32)

    @pl.when(pl.program_id(2) == pl.num_programs(2) - 1)
    def _():
        y = acc_ref[...] + bias_ref[...]
        if has_res:
            y = y + res_ref[...].astype(jnp.float32)
        y = _apply_act(y, act)
        if has_mask:
            s = 1.0 / (1.0 + jnp.exp(-y))
            y = jnp.where(jnp.broadcast_to(mask_ref[...] > 0.5, y.shape), s, y)
        o_ref[...] = y.astype(o_ref.dtype)


def matmul_fused(a, b, bias, *, act="none", residual=None, ln=None,
                 sigmoid_mask=None, out_dtype=jnp.float32):
    """out = act(LN?(a) @ b + bias [+ residual]) with optional masked sigmoid.

    b is expected bf16 (weights pre-cast once in params); a may be f32
    (residual stream) or bf16 (activation edge) -- it is cast in VMEM.
    """
    M, K = a.shape
    Kb, N = b.shape
    assert K == Kb
    if b.dtype != jnp.bfloat16:
        b = b.astype(jnp.bfloat16)

    tn, Np = _pick_tile(N)
    Mr = _round_up(M, 8)
    # TODO(synk): raise tm to 512 for large M on v5e/v6e (128 MiB VMEM); 256 on v7x.
    tm = min(256, Mr)
    Mp = _round_up(Mr, tm)
    Kp = _round_up(K, 128)
    single_k = Kp <= 512

    use_fused_ln = (ln is not None) and single_k and (Kp == K)
    if (ln is not None) and not use_fused_ln:
        a = layernorm(a, ln[0], ln[1])     # fallback standalone LN

    a_p = a if (Mp == M and Kp == K) else jnp.pad(a, ((0, Mp - M), (0, Kp - K)))
    b_p = b if (Kp == K and Np == N) else jnp.pad(b, ((0, Kp - K), (0, Np - N)))
    bias_p = bias.astype(jnp.float32).reshape(1, N)
    if Np != N:
        bias_p = jnp.pad(bias_p, ((0, 0), (0, Np - N)))

    has_res = residual is not None
    has_mask = sigmoid_mask is not None

    if has_res:
        res_p = residual
        if Mp != M or Np != N:
            res_p = jnp.pad(res_p, ((0, Mp - M), (0, Np - N)))
    if has_mask:
        mask_p = sigmoid_mask.astype(jnp.float32).reshape(1, N)
        if Np != N:
            mask_p = jnp.pad(mask_p, ((0, 0), (0, Np - N)))

    if single_k:
        grid = (Mp // tm, Np // tn)
        in_specs = [pl.BlockSpec((tm, Kp), lambda i, j: (i, 0)),
                    pl.BlockSpec((Kp, tn), lambda i, j: (0, j)),
                    pl.BlockSpec((1, tn), lambda i, j: (0, j))]
        inputs = [a_p, b_p, bias_p]
        if use_fused_ln:
            g_p = ln[0].astype(jnp.float32).reshape(1, K)
            be_p = ln[1].astype(jnp.float32).reshape(1, K)
            in_specs += [pl.BlockSpec((1, Kp), lambda i, j: (0, 0)),
                         pl.BlockSpec((1, Kp), lambda i, j: (0, 0))]
            inputs += [g_p, be_p]
        if has_res:
            in_specs.append(pl.BlockSpec((tm, tn), lambda i, j: (i, j)))
            inputs.append(res_p)
        if has_mask:
            in_specs.append(pl.BlockSpec((1, tn), lambda i, j: (0, j)))
            inputs.append(mask_p)
        out = pl.pallas_call(
            functools.partial(_mm_single_kernel, act=act, has_ln=use_fused_ln,
                              has_res=has_res, has_mask=has_mask),
            out_shape=jax.ShapeDtypeStruct((Mp, Np), out_dtype),
            grid=grid,
            in_specs=in_specs,
            out_specs=pl.BlockSpec((tm, tn), lambda i, j: (i, j)),
            compiler_params=pltpu.CompilerParams(
                dimension_semantics=("parallel", "parallel"),
                vmem_limit_bytes=_VMEM_LIMIT),
        )(*inputs)
    else:
        tk, _ = _pick_tile(K)
        grid = (Mp // tm, Np // tn, Kp // tk)
        in_specs = [pl.BlockSpec((tm, tk), lambda i, j, k: (i, k)),
                    pl.BlockSpec((tk, tn), lambda i, j, k: (k, j)),
                    pl.BlockSpec((1, tn), lambda i, j, k: (0, j))]
        inputs = [a_p, b_p, bias_p]
        if has_res:
            in_specs.append(pl.BlockSpec((tm, tn), lambda i, j, k: (i, j)))
            inputs.append(res_p)
        if has_mask:
            in_specs.append(pl.BlockSpec((1, tn), lambda i, j, k: (0, j)))
            inputs.append(mask_p)
        out = pl.pallas_call(
            functools.partial(_mm_multi_kernel, act=act,
                              has_res=has_res, has_mask=has_mask),
            out_shape=jax.ShapeDtypeStruct((Mp, Np), out_dtype),
            grid=grid,
            in_specs=in_specs,
            out_specs=pl.BlockSpec((tm, tn), lambda i, j, k: (i, j)),
            scratch_shapes=[pltpu.VMEM((tm, tn), jnp.float32)],
            compiler_params=pltpu.CompilerParams(
                dimension_semantics=("parallel", "parallel", "arbitrary"),
                vmem_limit_bytes=_VMEM_LIMIT),
        )(*inputs)

    if Mp != M or Np != N:
        out = out[:M, :N]
    return out


# ----------------------------------------------------------------------------
# Standalone LayerNorm (fallback only; demo path fuses LN into matmul prologue)
# ----------------------------------------------------------------------------
def _ln_kernel(x_ref, g_ref, b_ref, o_ref):
    x = x_ref[...].astype(jnp.float32)
    mu = jnp.mean(x, axis=-1, keepdims=True)
    xc = x - mu
    var = jnp.mean(xc * xc, axis=-1, keepdims=True)
    o_ref[...] = (xc * jax.lax.rsqrt(var + 1e-5) * g_ref[...]
                  + b_ref[...]).astype(o_ref.dtype)


def layernorm(x, gamma, beta, out_dtype=jnp.float32):
    M, D = x.shape
    Mr = _round_up(M, 8)
    tm = min(512, Mr)
    Mp = _round_up(Mr, tm)
    xp = x if Mp == M else jnp.pad(x, ((0, Mp - M), (0, 0)))
    out = pl.pallas_call(
        _ln_kernel,
        out_shape=jax.ShapeDtypeStruct((Mp, D), out_dtype),
        grid=(Mp // tm,),
        in_specs=[pl.BlockSpec((tm, D), lambda i: (i, 0)),
                  pl.BlockSpec((1, D), lambda i: (0, 0)),
                  pl.BlockSpec((1, D), lambda i: (0, 0))],
        out_specs=pl.BlockSpec((tm, D), lambda i: (i, 0)),
        compiler_params=pltpu.CompilerParams(
            dimension_semantics=("parallel",), vmem_limit_bytes=_VMEM_LIMIT),
    )(xp, gamma.astype(jnp.float32).reshape(1, D),
      beta.astype(jnp.float32).reshape(1, D))
    return out if Mp == M else out[:M]


# ----------------------------------------------------------------------------
# Flash attention over the packed QKV output (no head-split transposes)
# ----------------------------------------------------------------------------
def _flash_attn_kernel(qkv_q_ref, qkv_kv_ref, o_ref, m_ref, l_ref, acc_ref,
                       *, heads, scale, seq_len, t_tile, mask_kv):
    ki = pl.program_id(2)

    @pl.when(ki == 0)
    def _():
        m_ref[...] = jnp.full_like(m_ref, -jnp.inf)
        l_ref[...] = jnp.zeros_like(l_ref)
        acc_ref[...] = jnp.zeros_like(acc_ref)

    D = o_ref.shape[-1]
    dh = D // heads
    qkv_q = qkv_q_ref[0]                 # (tq, 3D) bf16
    qkv_kv = qkv_kv_ref[0]               # (tk, 3D) bf16
    q_all = qkv_q[:, :D]
    k_all = qkv_kv[:, D:2 * D]
    v_all = qkv_kv[:, 2 * D:3 * D]

    if mask_kv:
        col = ki * t_tile + jax.lax.broadcasted_iota(jnp.int32, (1, t_tile), 1)
        kv_valid = col < seq_len         # (1, tk)

    for h in range(heads):
        sl = slice(h * dh, (h + 1) * dh)
        q_h = q_all[:, sl]
        k_h = k_all[:, sl]
        v_h = v_all[:, sl]
        s = jax.lax.dot_general(q_h, k_h, (((1,), (1,)), ((), ())),
                                preferred_element_type=jnp.float32) * scale
        if mask_kv:
            s = jnp.where(kv_valid, s, -jnp.inf)
        m_prev = m_ref[h]                                   # (tq, 1)
        m_new = jnp.maximum(m_prev, jnp.max(s, axis=-1, keepdims=True))
        alpha = jnp.exp(m_prev - m_new)
        p = jnp.exp(s - m_new)
        l_ref[h] = alpha * l_ref[h] + jnp.sum(p, axis=-1, keepdims=True)
        acc_ref[h] = alpha * acc_ref[h] + jnp.dot(
            p.astype(v_h.dtype), v_h, preferred_element_type=jnp.float32)
        m_ref[h] = m_new

    @pl.when(ki == pl.num_programs(2) - 1)
    def _():
        pieces = []
        for h in range(heads):
            inv_l = pl.reciprocal(l_ref[h], approx=True)    # EUP slot
            pieces.append(acc_ref[h] * inv_l)
        o_ref[0] = jnp.concatenate(pieces, axis=-1).astype(o_ref.dtype)


def attention_fused(qkv, heads, scale):
    """qkv: (B, T, 3D) bf16 (packed [q|k|v]) -> (B, T, D) bf16."""
    B, T, D3 = qkv.shape
    D = D3 // 3
    t_tile = min(128, _round_up(T, 8))
    Tp = _round_up(T, t_tile)
    qkv_p = qkv if Tp == T else jnp.pad(qkv, ((0, 0), (0, Tp - T), (0, 0)))
    grid = (B, Tp // t_tile, Tp // t_tile)
    out = pl.pallas_call(
        functools.partial(_flash_attn_kernel, heads=heads, scale=scale,
                          seq_len=T, t_tile=t_tile, mask_kv=(Tp != T)),
        out_shape=jax.ShapeDtypeStruct((B, Tp, D), jnp.bfloat16),
        grid=grid,
        in_specs=[pl.BlockSpec((1, t_tile, D3), lambda b, qi, ki: (b, qi, 0)),
                  pl.BlockSpec((1, t_tile, D3), lambda b, qi, ki: (b, ki, 0))],
        out_specs=pl.BlockSpec((1, t_tile, D), lambda b, qi, ki: (b, qi, 0)),
        scratch_shapes=[pltpu.VMEM((heads, t_tile, 1), jnp.float32),
                        pltpu.VMEM((heads, t_tile, 1), jnp.float32),
                        pltpu.VMEM((heads, t_tile, D // heads), jnp.float32)],
        compiler_params=pltpu.CompilerParams(
            dimension_semantics=("parallel", "parallel", "arbitrary"),
            vmem_limit_bytes=_VMEM_LIMIT),
    )(qkv_p, qkv_p)
    return out if Tp == T else out[:, :T, :]


# ----------------------------------------------------------------------------
# Conv stack (XLA conv + folded BN, per perf review) and glue
# ----------------------------------------------------------------------------
def conv_bn_relu(x, w, b, bn):
    # TODO(synk): tiny-channel 3x3 convs (Cout=8/16) stay on XLA conv — a Pallas
    # im2col matmul here is lane-sparse and HBM-inflating.
    gamma, beta, mean, var = bn
    s = gamma / jnp.sqrt(var + 1e-5)          # fold BN scale into the weights
    w_f = w * s[None, None, None, :]
    bias = beta + (b - mean) * s
    y = jax.lax.conv_general_dilated(
        x, w_f, window_strides=(1, 1), padding="SAME",
        dimension_numbers=("NHWC", "HWIO", "NHWC"))
    return jnp.maximum(y + bias[None, None, None, :], 0.0)


def maxpool_freq(x):
    """MaxPool2d((1, 2)) on NHWC layout (pool along the frequency axis)."""
    B, H, W, C = x.shape
    return x.reshape(B, H, W // 2, 2, C).max(axis=3)


def conv_stack(mel, p, pe_bt):
    B, T, F = mel.shape
    x = mel[..., None]                                   # (B, T, F, 1)
    x = conv_bn_relu(x, p["w1"], p["b1"], p["bn1"])
    x = conv_bn_relu(x, p["w2"], p["b2"], p["bn2"])
    x = maxpool_freq(x)                                  # Dropout(0.25) = identity
    x = conv_bn_relu(x, p["w3"], p["b3"], p["bn3"])
    x = maxpool_freq(x)                                  # Dropout(0.25) = identity
    Bq, Tq, Fq, C2 = x.shape
    # torch: x.transpose(1, 2).flatten(-2)  (channel-major then frequency)
    x = jnp.transpose(x, (0, 1, 3, 2)).reshape(Bq * Tq, C2 * Fq)
    # FC (Dropout(0.5) = identity) with the positional encoding fused in as a
    # residual so the PE add never makes a separate HBM pass.
    x = matmul_fused(x, p["fc_w"], p["fc_b"], residual=pe_bt,
                     out_dtype=jnp.float32)
    return x                                             # (B*T, D) f32


def sinus_pos_encoding(T, D):
    half = D // 2
    dim_axis = 10000.0 ** (jnp.arange(half, dtype=jnp.float32) * 2.0 / D)
    t = jnp.arange(T, dtype=jnp.float32)
    pe_in = t[:, None] / dim_axis[None, :]
    pe = jnp.stack([jnp.sin(pe_in), jnp.cos(pe_in)], axis=-1).reshape(T, D)
    return pe


def transformer_encoder(x, B, T, layers, heads):
    # TODO(synk): x_transformers.Encoder internals approximated as a standard
    # pre-LN transformer (bias-less fused QKV/out projections, GELU FF, final
    # LayerNorm); attn_flash and dropouts have no effect on eval-mode math.
    D = x.shape[-1]
    dh = D // heads
    scale = dh ** -0.5
    for layer in layers:
        # --- self attention: LN1 fused into the QKV projection ---
        qkv = matmul_fused(x, layer["w_qkv"], layer["b_qkv"],
                           ln=(layer["ln1_g"], layer["ln1_b"]),
                           out_dtype=jnp.bfloat16)       # (B*T, 3D) bf16
        attn = attention_fused(qkv.reshape(B, T, 3 * D), heads, scale)
        x = matmul_fused(attn.reshape(B * T, D), layer["wo"], layer["b_o"],
                         residual=x, out_dtype=jnp.float32)
        # --- feed forward: LN2 fused into FF1, residual fused into FF2 ---
        h1 = matmul_fused(x, layer["w_ff1"], layer["b_ff1"],
                          ln=(layer["ln2_g"], layer["ln2_b"]),
                          act="gelu", out_dtype=jnp.bfloat16)
        x = matmul_fused(h1, layer["w_ff2"], layer["b_ff2"],
                         residual=x, out_dtype=jnp.float32)
    return x   # final LayerNorm is fused into the final FC prologue


def onsets_and_frames_tf_forward(mel, params, heads):
    B, T, F = mel.shape
    D = params["conv"]["fc_w"].shape[1]
    pe = sinus_pos_encoding(T, D)
    pe_bt = jnp.tile(pe, (B, 1))                         # (B*T, D)
    x = conv_stack(mel, params["conv"], pe_bt)           # (B*T, D) f32
    x = transformer_encoder(x, B, T, params["layers"], heads)

    # Final FC with the encoder's final LayerNorm fused as prologue and the
    # sigmoid fused as a per-column-masked epilogue.  Columns are interleaved
    # (feature, type) with type in {onset, offset, frame, velocity}: sigmoid
    # applies to types 0..2, identity to velocity (type 3), matching
    # x.reshape(-1, out*4 // 4, 4).split(1, -1) in the PyTorch reference.
    out_feats = params["fc_w"].shape[1] // 4
    sig_mask = jnp.tile(jnp.array([1.0, 1.0, 1.0, 0.0], jnp.float32), out_feats)
    out4 = matmul_fused(x, params["fc_w"], params["fc_b"],
                        ln=(params["lnf_g"], params["lnf_b"]),
                        sigmoid_mask=sig_mask)           # (B*T, 4*out) f32
    y = out4.reshape(B * T, out_feats, 4)
    onset = y[..., 0]
    offset = y[..., 1]
    frame = y[..., 2]
    velocity = y[..., 3]
    return onset, offset, frame, frame, velocity


# ----------------------------------------------------------------------------
# Deterministic parameter initialization (synthetic weights)
# ----------------------------------------------------------------------------
def init_params(key, input_features, output_features, model_size, depth, heads):
    del heads  # kept out of the (traced) params pytree; passed statically
    C1, C2 = model_size // 16, model_size // 8
    D = model_size
    keys = iter(jax.random.split(key, 128))

    def nrm(shape, s=0.05, dtype=jnp.float32):
        return (jax.random.normal(next(keys), shape, jnp.float32) * s).astype(dtype)

    def bn(c):
        gamma = 1.0 + 0.1 * jax.random.normal(next(keys), (c,), jnp.float32)
        beta = 0.1 * jax.random.normal(next(keys), (c,), jnp.float32)
        mean = 0.1 * jax.random.normal(next(keys), (c,), jnp.float32)
        var = 0.5 + jax.random.uniform(next(keys), (c,), jnp.float32)
        return (gamma, beta, mean, var)

    conv = dict(
        w1=nrm((3, 3, 1, C1)), b1=nrm((C1,)), bn1=bn(C1),
        w2=nrm((3, 3, C1, C1)), b2=nrm((C1,)), bn2=bn(C1),
        w3=nrm((3, 3, C1, C2)), b3=nrm((C2,)), bn3=bn(C2),
        # weights feeding MXU matmuls stored bf16 once (no per-call casts)
        fc_w=nrm((C2 * (input_features // 4), D), dtype=jnp.bfloat16),
        fc_b=nrm((D,)),
    )
    layers = []
    ff = 4 * D
    for _ in range(depth):
        wq, wk, wv = nrm((D, D)), nrm((D, D)), nrm((D, D))
        layers.append(dict(
            ln1_g=jnp.ones((D,), jnp.float32), ln1_b=jnp.zeros((D,), jnp.float32),
            w_qkv=jnp.concatenate([wq, wk, wv], axis=1).astype(jnp.bfloat16),
            b_qkv=jnp.zeros((3 * D,), jnp.float32),
            wo=nrm((D, D), dtype=jnp.bfloat16),
            b_o=jnp.zeros((D,), jnp.float32),
            ln2_g=jnp.ones((D,), jnp.float32), ln2_b=jnp.zeros((D,), jnp.float32),
            w_ff1=nrm((D, ff), dtype=jnp.bfloat16), b_ff1=nrm((ff,)),
            w_ff2=nrm((ff, D), dtype=jnp.bfloat16), b_ff2=nrm((D,)),
        ))
    return dict(
        conv=conv,
        layers=layers,
        lnf_g=jnp.ones((D,), jnp.float32),
        lnf_b=jnp.zeros((D,), jnp.float32),
        fc_w=nrm((D, output_features * 4), dtype=jnp.bfloat16),
        fc_b=nrm((output_features * 4,)),
    )


# ----------------------------------------------------------------------------
# Main
# ----------------------------------------------------------------------------
if __name__ == "__main__":
    # Small shapes consistent with the module:
    #   mel: (batch, time, mel_bins) ;  model_complexity=8 -> model_size=128
    B, T, IN_FEATS = 2, 8, 16
    OUT_FEATS = 8
    MODEL_SIZE = 128          # model_complexity(=8) * 16
    DEPTH, HEADS = 2, 4

    key = jax.random.PRNGKey(0)
    k_param, k_mel = jax.random.split(key)
    params = init_params(k_param, IN_FEATS, OUT_FEATS, MODEL_SIZE, DEPTH, HEADS)
    mel = jax.random.normal(k_mel, (B, T, IN_FEATS), jnp.float32)

    fwd = jax.jit(onsets_and_frames_tf_forward, static_argnames=("heads",))
    outs = fwd(mel, params, heads=HEADS)
    outs = jax.block_until_ready(outs)

    onset_pred, offset_pred, frame_pred, frame_pred2, velocity_pred = outs
    assert onset_pred.shape == (B * T, OUT_FEATS)
    assert offset_pred.shape == (B * T, OUT_FEATS)
    assert frame_pred.shape == (B * T, OUT_FEATS)
    assert velocity_pred.shape == (B * T, OUT_FEATS)
    assert bool(jnp.all(jnp.isfinite(jnp.stack(outs))))
    print("KERNEL_OK")
</pallas_src>

<mosaic_0001>
module attributes {stable_mosaic.version = 11 : i64} {
  func.func @_mm_single_kernel(%arg0: i32, %arg1: i32, %arg2: memref<16x128xbf16, #tpu.memory_space<vmem>>, %arg3: memref<128x128xbf16, #tpu.memory_space<vmem>>, %arg4: memref<1x128xf32, #tpu.memory_space<vmem>>, %arg5: memref<16x128xf32, #tpu.memory_space<vmem>>, %arg6: memref<16x128xf32, #tpu.memory_space<vmem>>) attributes {dimension_semantics = [#tpu.dimension_semantics<parallel>, #tpu.dimension_semantics<parallel>], iteration_bounds = array<i64: 1, 1>, scalar_prefetch = 0 : i64, scratch_operands = 0 : i64, tpu.core_type = #tpu.core_type<tc>, window_params = [{transform_indices = @transform_0, window_bounds = array<i64: 16, 128>}, {transform_indices = @transform_1, window_bounds = array<i64: 128, 128>}, {transform_indices = @transform_2, window_bounds = array<i64: 1, 128>}, {transform_indices = @transform_3, window_bounds = array<i64: 16, 128>}, {transform_indices = @transform_4, window_bounds = array<i64: 16, 128>}]} {
    %c0 = arith.constant 0 : index
    %c0_0 = arith.constant 0 : index
    %0 = vector.load %arg2[%c0, %c0_0] : memref<16x128xbf16, #tpu.memory_space<vmem>>, vector<16x128xbf16>
    %c0_1 = arith.constant 0 : index
    %c0_2 = arith.constant 0 : index
    %1 = vector.load %arg3[%c0_1, %c0_2] : memref<128x128xbf16, #tpu.memory_space<vmem>>, vector<128x128xbf16>
    %cst = arith.constant dense<0.000000e+00> : vector<16x128xf32>
    %2 = tpu.matmul %0, %1, %cst {dimension_numbers = #tpu.dot_dimension_numbers<[1], [0], [0], [1], [0, 0, 1, 1], [], []>} : vector<16x128xbf16>, vector<128x128xbf16>, vector<16x128xf32> -> vector<16x128xf32>
    %c0_3 = arith.constant 0 : index
    %c0_4 = arith.constant 0 : index
    %3 = vector.load %arg4[%c0_3, %c0_4] : memref<1x128xf32, #tpu.memory_space<vmem>>, vector<1x128xf32>
    %4 = vector.broadcast %3 : vector<1x128xf32> to vector<16x128xf32>
    %5 = arith.addf %2, %4 : vector<16x128xf32>
    %c0_5 = arith.constant 0 : index
    %c0_6 = arith.constant 0 : index
    %6 = vector.load %arg5[%c0_5, %c0_6] : memref<16x128xf32, #tpu.memory_space<vmem>>, vector<16x128xf32>
    %7 = arith.addf %5, %6 : vector<16x128xf32>
    %c0_7 = arith.constant 0 : index
    %c0_8 = arith.constant 0 : index
    %8 = vector.load %arg6[%c0_7, %c0_8] : memref<16x128xf32, #tpu.memory_space<vmem>>, vector<16x128xf32>
    tpu.vector_store %arg6[%c0_7, %c0_8], %7 {strides = array<i32>} : memref<16x128xf32, #tpu.memory_space<vmem>>, vector<16x128xf32>,
    return
  }
  func.func @transform_0(%arg0: i32, %arg1: i32) -> (i32, i32) {
    %c0_i32 = arith.constant 0 : i32
    %c0_i32_0 = arith.constant 0 : i32
    return %arg0, %c0_i32 : i32, i32
  }
  func.func @transform_1(%arg0: i32, %arg1: i32) -> (i32, i32) {
    %c0_i32 = arith.constant 0 : i32
    %c0_i32_0 = arith.constant 0 : i32
    return %c0_i32, %arg1 : i32, i32
  }
  func.func @transform_2(%arg0: i32, %arg1: i32) -> (i32, i32) {
    %c0_i32 = arith.constant 0 : i32
    %c0_i32_0 = arith.constant 0 : i32
    return %c0_i32, %arg1 : i32, i32
  }
  func.func @transform_3(%arg0: i32, %arg1: i32) -> (i32, i32) {
    %c0_i32 = arith.constant 0 : i32
    return %arg0, %arg1 : i32, i32
  }
  func.func @transform_4(%arg0: i32, %arg1: i32) -> (i32, i32) {
    %c0_i32 = arith.constant 0 : i32
    return %arg0, %arg1 : i32, i32
  }
}

module attributes {stable_mosaic.version = 11 : i64} {
  func.func @_mm_single_kernel(%arg0: i32, %arg1: i32, %arg2: memref<16x128xf32, #tpu.memory_space<vmem>>, %arg3: memref<128x128xbf16, #tpu.memory_space<vmem>>, %arg4: memref<1x128xf32, #tpu.memory_space<vmem>>, %arg5: memref<1x128xf32, #tpu.memory_space<vmem>>, %arg6: memref<1x128xf32, #tpu.memory_space<vmem>>, %arg7: memref<16x128xbf16, #tpu.memory_space<vmem>>) attributes {dimension_semantics = [#tpu.dimension_semantics<parallel>, #tpu.dimension_semantics<parallel>], iteration_bounds = array<i64: 1, 3>, scalar_prefetch = 0 : i64, scratch_operands = 0 : i64, tpu.core_type = #tpu.core_type<tc>, window_params = [{transform_indices = @transform_0, window_bounds = array<i64: 16, 128>}, {transform_indices = @transform_1, window_bounds = array<i64: 128, 128>}, {transform_indices = @transform_2, window_bounds = array<i64: 1, 128>}, {pipeline_mode = #tpu.pipeline_mode<synchronous>, transform_indices = @transform_3, window_bounds = array<i64: 1, 128>}, {pipeline_mode = #tpu.pipeline_mode<synchronous>, transform_indices = @transform_4, window_bounds = array<i64: 1, 128>}, {transform_indices = @transform_5, window_bounds = array<i64: 16, 128>}]} {
    %c0 = arith.constant 0 : index
    %c0_0 = arith.constant 0 : index
    %0 = vector.load %arg2[%c0, %c0_0] : memref<16x128xf32, #tpu.memory_space<vmem>>, vector<16x128xf32>
    %cst = arith.constant dense<0.000000e+00> : vector<16xf32>
    %1 = vector.multi_reduction <add>, %0, %cst [1] : vector<16x128xf32> to vector<16xf32>
    %2 = vector.shape_cast %1 : vector<16xf32> to vector<16x1xf32>
    %cst_1 = arith.constant 1.280000e+02 : f32
    %3 = vector.broadcast %cst_1 : f32 to vector<16x1xf32>
    %4 = arith.divf %2, %3 : vector<16x1xf32>
    %5 = vector.broadcast %4 : vector<16x1xf32> to vector<16x128xf32>
    %6 = arith.subf %0, %5 : vector<16x128xf32>
    %7 = arith.mulf %6, %6 : vector<16x128xf32>
    %cst_2 = arith.constant dense<0.000000e+00> : vector<16xf32>
    %8 = vector.multi_reduction <add>, %7, %cst_2 [1] : vector<16x128xf32> to vector<16xf32>
    %9 = vector.shape_cast %8 : vector<16xf32> to vector<16x1xf32>
    %cst_3 = arith.constant 1.280000e+02 : f32
    %10 = vector.broadcast %cst_3 : f32 to vector<16x1xf32>
    %11 = arith.divf %9, %10 : vector<16x1xf32>
    %cst_4 = arith.constant 9.99999974E-6 : f32
    %12 = vector.broadcast %cst_4 : f32 to vector<16x1xf32>
    %13 = arith.addf %11, %12 : vector<16x1xf32>
    %14 = math.rsqrt %13 : vector<16x1xf32>
    %15 = vector.broadcast %14 : vector<16x1xf32> to vector<16x128xf32>
    %16 = arith.mulf %6, %15 : vector<16x128xf32>
    %c0_5 = arith.constant 0 : index
    %c0_6 = arith.constant 0 : index
    %17 = vector.load %arg5[%c0_5, %c0_6] : memref<1x128xf32, #tpu.memory_space<vmem>>, vector<1x128xf32>
    %18 = vector.broadcast %17 : vector<1x128xf32> to vector<16x128xf32>
    %19 = arith.mulf %16, %18 : vector<16x128xf32>
    %c0_7 = arith.constant 0 : index
    %c0_8 = arith.constant 0 : index
    %20 = vector.load %arg6[%c0_7, %c0_8] : memref<1x128xf32, #tpu.memory_space<vmem>>, vector<1x128xf32>
    %21 = vector.broadcast %20 : vector<1x128xf32> to vector<16x128xf32>
    %22 = arith.addf %19, %21 : vector<16x128xf32>
    %23 = arith.truncf %22 : vector<16x128xf32> to vector<16x128xbf16>
    %c0_9 = arith.constant 0 : index
    %c0_10 = arith.constant 0 : index
    %24 = vector.load %arg3[%c0_9, %c0_10] : memref<128x128xbf16, #tpu.memory_space<vmem>>, vector<128x128xbf16>
    %cst_11 = arith.constant dense<0.000000e+00> : vector<16x128xf32>
    %25 = tpu.matmul %23, %24, %cst_11 {dimension_numbers = #tpu.dot_dimension_numbers<[1], [0], [0], [1], [0, 0, 1, 1], [], []>} : vector<16x128xbf16>, vector<128x128xbf16>, vector<16x128xf32> -> vector<16x128xf32>
    %c0_12 = arith.constant 0 : index
    %c0_13 = arith.constant 0 : index
    %26 = vector.load %arg4[%c0_12, %c0_13] : memref<1x128xf32, #tpu.memory_space<vmem>>, vector<1x128xf32>
    %27 = vector.broadcast %26 : vector<1x128xf32> to vector<16x128xf32>
    %28 = arith.addf %25, %27 : vector<16x128xf32>
    %29 = arith.truncf %28 : vector<16x128xf32> to vector<16x128xbf16>
    %c0_14 = arith.constant 0 : index
    %c0_15 = arith.constant 0 : index
    %30 = vector.load %arg7[%c0_14, %c0_15] : memref<16x128xbf16, #tpu.memory_space<vmem>>, vector<16x128xbf16>
    tpu.vector_store %arg7[%c0_14, %c0_15], %29 {strides = array<i32>} : memref<16x128xbf16, #tpu.memory_space<vmem>>, vector<16x128xbf16>,
    return
  }
  func.func @transform_0(%arg0: i32, %arg1: i32) -> (i32, i32) {
    %c0_i32 = arith.constant 0 : i32
    %c0_i32_0 = arith.constant 0 : i32
    return %arg0, %c0_i32 : i32, i32
  }
  func.func @transform_1(%arg0: i32, %arg1: i32) -> (i32, i32) {
    %c0_i32 = arith.constant 0 : i32
    %c0_i32_0 = arith.constant 0 : i32
    return %c0_i32, %arg1 : i32, i32
  }
  func.func @transform_2(%arg0: i32, %arg1: i32) -> (i32, i32) {
    %c0_i32 = arith.constant 0 : i32
    %c0_i32_0 = arith.constant 0 : i32
    return %c0_i32, %arg1 : i32, i32
  }
  func.func @transform_3(%arg0: i32, %arg1: i32) -> (i32, i32) {
    %c0_i32 = arith.constant 0 : i32
    %c0_i32_0 = arith.constant 0 : i32
    %c0_i32_1 = arith.constant 0 : i32
    return %c0_i32, %c0_i32_0 : i32, i32
  }
  func.func @transform_4(%arg0: i32, %arg1: i32) -> (i32, i32) {
    %c0_i32 = arith.constant 0 : i32
    %c0_i32_0 = arith.constant 0 : i32
    %c0_i32_1 = arith.constant 0 : i32
    return %c0_i32, %c0_i32_0 : i32, i32
  }
  func.func @transform_5(%arg0: i32, %arg1: i32) -> (i32, i32) {
    %c0_i32 = arith.constant 0 : i32
    return %arg0, %arg1 : i32, i32
  }
}

module attributes {stable_mosaic.version = 11 : i64} {
  func.func @_mm_single_kernel(%arg0: i32, %arg1: i32, %arg2: memref<16x128xf32, #tpu.memory_space<vmem>>, %arg3: memref<128x128xbf16, #tpu.memory_space<vmem>>, %arg4: memref<1x128xf32, #tpu.memory_space<vmem>>, %arg5: memref<16x128xf32, #tpu.memory_space<vmem>>, %arg6: memref<16x128xf32, #tpu.memory_space<vmem>>) attributes {dimension_semantics = [#tpu.dimension_semantics<parallel>, #tpu.dimension_semantics<parallel>], iteration_bounds = array<i64: 1, 1>, scalar_prefetch = 0 : i64, scratch_operands = 0 : i64, tpu.core_type = #tpu.core_type<tc>, window_params = [{transform_indices = @transform_0, window_bounds = array<i64: 16, 128>}, {transform_indices = @transform_1, window_bounds = array<i64: 128, 128>}, {transform_indices = @transform_2, window_bounds = array<i64: 1, 128>}, {transform_indices = @transform_3, window_bounds = array<i64: 16, 128>}, {transform_indices = @transform_4, window_bounds = array<i64: 16, 128>}]} {
    %c0 = arith.constant 0 : index
    %c0_0 = arith.constant 0 : index
    %0 = vector.load %arg2[%c0, %c0_0] : memref<16x128xf32, #tpu.memory_space<vmem>>, vector<16x128xf32>
    %1 = arith.truncf %0 : vector<16x128xf32> to vector<16x128xbf16>
    %c0_1 = arith.constant 0 : index
    %c0_2 = arith.constant 0 : index
    %2 = vector.load %arg3[%c0_1, %c0_2] : memref<128x128xbf16, #tpu.memory_space<vmem>>, vector<128x128xbf16>
    %cst = arith.constant dense<0.000000e+00> : vector<16x128xf32>
    %3 = tpu.matmul %1, %2, %cst {dimension_numbers = #tpu.dot_dimension_numbers<[1], [0], [0], [1], [0, 0, 1, 1], [], []>} : vector<16x128xbf16>, vector<128x128xbf16>, vector<16x128xf32> -> vector<16x128xf32>
    %c0_3 = arith.constant 0 : index
    %c0_4 = arith.constant 0 : index
    %4 = vector.load %arg4[%c0_3, %c0_4] : memref<1x128xf32, #tpu.memory_space<vmem>>, vector<1x128xf32>
    %5 = vector.broadcast %4 : vector<1x128xf32> to vector<16x128xf32>
    %6 = arith.addf %3, %5 : vector<16x128xf32>
    %c0_5 = arith.constant 0 : index
    %c0_6 = arith.constant 0 : index
    %7 = vector.load %arg5[%c0_5, %c0_6] : memref<16x128xf32, #tpu.memory_space<vmem>>, vector<16x128xf32>
    %8 = arith.addf %6, %7 : vector<16x128xf32>
    %c0_7 = arith.constant 0 : index
    %c0_8 = arith.constant 0 : index
    %9 = vector.load %arg6[%c0_7, %c0_8] : memref<16x128xf32, #tpu.memory_space<vmem>>, vector<16x128xf32>
    tpu.vector_store %arg6[%c0_7, %c0_8], %8 {strides = array<i32>} : memref<16x128xf32, #tpu.memory_space<vmem>>, vector<16x128xf32>,
    return
  }
  func.func @transform_0(%arg0: i32, %arg1: i32) -> (i32, i32) {
    %c0_i32 = arith.constant 0 : i32
    %c0_i32_0 = arith.constant 0 : i32
    return %arg0, %c0_i32 : i32, i32
  }
  func.func @transform_1(%arg0: i32, %arg1: i32) -> (i32, i32) {
    %c0_i32 = arith.constant 0 : i32
    %c0_i32_0 = arith.constant 0 : i32
    return %c0_i32, %arg1 : i32, i32
  }
  func.func @transform_2(%arg0: i32, %arg1: i32) -> (i32, i32) {
    %c0_i32 = arith.constant 0 : i32
    %c0_i32_0 = arith.constant 0 : i32
    return %c0_i32, %arg1 : i32, i32
  }
  func.func @transform_3(%arg0: i32, %arg1: i32) -> (i32, i32) {
    %c0_i32 = arith.constant 0 : i32
    return %arg0, %arg1 : i32, i32
  }
  func.func @transform_4(%arg0: i32, %arg1: i32) -> (i32, i32) {
    %c0_i32 = arith.constant 0 : i32
    return %arg0, %arg1 : i32, i32
  }
}

module attributes {stable_mosaic.version = 11 : i64} {
  func.func @_flash_attn_kernel(%arg0: i32, %arg1: i32, %arg2: i32, %arg3: memref<1x8x384xbf16, #tpu.memory_space<vmem>>, %arg4: memref<1x8x384xbf16, #tpu.memory_space<vmem>>, %arg5: memref<1x8x128xbf16, #tpu.memory_space<vmem>>, %arg6: memref<4x8x1xf32, #tpu.memory_space<vmem>>, %arg7: memref<4x8x1xf32, #tpu.memory_space<vmem>>, %arg8: memref<4x8x32xf32, #tpu.memory_space<vmem>>) attributes {dimension_semantics = [#tpu.dimension_semantics<parallel>, #tpu.dimension_semantics<parallel>, #tpu.dimension_semantics<arbitrary>], iteration_bounds = array<i64: 2, 1, 1>, scalar_prefetch = 0 : i64, scratch_operands = 3 : i64, tpu.core_type = #tpu.core_type<tc>, window_params = [{transform_indices = @transform_0, window_bounds = array<i64: 1, 8, 384>}, {transform_indices = @transform_1, window_bounds = array<i64: 1, 8, 384>}, {transform_indices = @transform_2, window_bounds = array<i64: 1, 8, 128>}]} {
    %c0_i32 = arith.constant 0 : i32
    %0 = arith.cmpi eq, %arg2, %c0_i32 : i32
    %1 = arith.extui %0 : i1 to i32
    %c0_i32_0 = arith.constant 0 : i32
    %2 = arith.cmpi ne, %1, %c0_i32_0 : i32
    scf.if %2 {
      %cst_96 = arith.constant 0xFF800000 : f32
      %165 = vector.broadcast %cst_96 : f32 to vector<4x8x1xf32>
      %c0_97 = arith.constant 0 : index
      %c0_98 = arith.constant 0 : index
      %c0_99 = arith.constant 0 : index
      %166 = vector.load %arg6[%c0_97, %c0_98, %c0_99] : memref<4x8x1xf32, #tpu.memory_space<vmem>>, vector<4x8x1xf32>
      tpu.vector_store %arg6[%c0_97, %c0_98, %c0_99], %165 {strides = array<i32>} : memref<4x8x1xf32, #tpu.memory_space<vmem>>, vector<4x8x1xf32>,
      %cst_100 = arith.constant 0.000000e+00 : f32
      %167 = vector.broadcast %cst_100 : f32 to vector<4x8x1xf32>
      %c0_101 = arith.constant 0 : index
      %c0_102 = arith.constant 0 : index
      %c0_103 = arith.constant 0 : index
      %168 = vector.load %arg7[%c0_101, %c0_102, %c0_103] : memref<4x8x1xf32, #tpu.memory_space<vmem>>, vector<4x8x1xf32>
      tpu.vector_store %arg7[%c0_101, %c0_102, %c0_103], %167 {strides = array<i32>} : memref<4x8x1xf32, #tpu.memory_space<vmem>>, vector<4x8x1xf32>,
      %cst_104 = arith.constant 0.000000e+00 : f32
      %169 = vector.broadcast %cst_104 : f32 to vector<4x8x32xf32>
      %c0_105 = arith.constant 0 : index
      %c0_106 = arith.constant 0 : index
      %c0_107 = arith.constant 0 : index
      %170 = vector.load %arg8[%c0_105, %c0_106, %c0_107] : memref<4x8x32xf32, #tpu.memory_space<vmem>>, vector<4x8x32xf32>
      tpu.vector_store %arg8[%c0_105, %c0_106, %c0_107], %169 {strides = array<i32>} : memref<4x8x32xf32, #tpu.memory_space<vmem>>, vector<4x8x32xf32>,
    } else {
    }
    %c0 = arith.constant 0 : index
    %c0_1 = arith.constant 0 : index
    %c0_2 = arith.constant 0 : index
    %3 = vector.load %arg3[%c0, %c0_1, %c0_2] : memref<1x8x384xbf16, #tpu.memory_space<vmem>>, vector<1x8x384xbf16>
    %4 = vector.shape_cast %3 : vector<1x8x384xbf16> to vector<8x384xbf16>
    %c0_3 = arith.constant 0 : index
    %c0_4 = arith.constant 0 : index
    %c0_5 = arith.constant 0 : index
    %5 = vector.load %arg4[%c0_3, %c0_4, %c0_5] : memref<1x8x384xbf16, #tpu.memory_space<vmem>>, vector<1x8x384xbf16>
    %6 = vector.shape_cast %5 : vector<1x8x384xbf16> to vector<8x384xbf16>
    %7 = vector.extract_strided_slice %4 {offsets = [0, 0], sizes = [8, 128], strides = [1, 1]} : vector<8x384xbf16> to vector<8x128xbf16>
    %8 = vector.extract_strided_slice %6 {offsets = [0, 128], sizes = [8, 128], strides = [1, 1]} : vector<8x384xbf16> to vector<8x128xbf16>
    %9 = vector.extract_strided_slice %6 {offsets = [0, 256], sizes = [8, 128], strides = [1, 1]} : vector<8x384xbf16> to vector<8x128xbf16>
    %10 = vector.extract_strided_slice %7 {offsets = [0, 0], sizes = [8, 32], strides = [1, 1]} : vector<8x128xbf16> to vector<8x32xbf16>
    %11 = vector.extract_strided_slice %8 {offsets = [0, 0], sizes = [8, 32], strides = [1, 1]} : vector<8x128xbf16> to vector<8x32xbf16>
    %12 = vector.extract_strided_slice %9 {offsets = [0, 0], sizes = [8, 32], strides = [1, 1]} : vector<8x128xbf16> to vector<8x32xbf16>
    %cst = arith.constant dense<0.000000e+00> : vector<8x8xf32>
    %13 = tpu.matmul %10, %11, %cst {dimension_numbers = #tpu.dot_dimension_numbers<[1], [1], [0], [0], [0, 0, 1, 0], [], []>} : vector<8x32xbf16>, vector<8x32xbf16>, vector<8x8xf32> -> vector<8x8xf32>
    %cst_6 = arith.constant 0.176776692 : f32
    %14 = vector.broadcast %cst_6 : f32 to vector<8x8xf32>
    %15 = arith.mulf %13, %14 : vector<8x8xf32>
    %c0_7 = arith.constant 0 : index
    %c0_8 = arith.constant 0 : index
    %c0_9 = arith.constant 0 : index
    %16 = vector.load %arg6[%c0_7, %c0_8, %c0_9] : memref<4x8x1xf32, #tpu.memory_space<vmem>>, vector<1x8x1xf32>
    %17 = vector.shape_cast %16 : vector<1x8x1xf32> to vector<8x1xf32>
    %cst_10 = arith.constant dense<0xFF800000> : vector<8xf32>
    %18 = vector.multi_reduction <maximumf>, %15, %cst_10 [1] : vector<8x8xf32> to vector<8xf32>
    %19 = vector.shape_cast %18 : vector<8xf32> to vector<8x1xf32>
    %20 = arith.maximumf %17, %19 : vector<8x1xf32>
    %21 = arith.subf %17, %20 : vector<8x1xf32>
    %22 = math.exp %21 : vector<8x1xf32>
    %23 = vector.broadcast %20 : vector<8x1xf32> to vector<8x8xf32>
    %24 = arith.subf %15, %23 : vector<8x8xf32>
    %25 = math.exp %24 : vector<8x8xf32>
    %c0_11 = arith.constant 0 : index
    %c0_12 = arith.constant 0 : index
    %c0_13 = arith.constant 0 : index
    %26 = vector.load %arg7[%c0_11, %c0_12, %c0_13] : memref<4x8x1xf32, #tpu.memory_space<vmem>>, vector<1x8x1xf32>
    %27 = vector.shape_cast %26 : vector<1x8x1xf32> to vector<8x1xf32>
    %28 = arith.mulf %22, %27 : vector<8x1xf32>
    %cst_14 = arith.constant dense<0.000000e+00> : vector<8xf32>
    %29 = vector.multi_reduction <add>, %25, %cst_14 [1] : vector<8x8xf32> to vector<8xf32>
    %30 = vector.shape_cast %29 : vector<8xf32> to vector<8x1xf32>
    %31 = arith.addf %28, %30 : vector<8x1xf32>
    %c0_15 = arith.constant 0 : index
    %c0_16 = arith.constant 0 : index
    %c0_17 = arith.constant 0 : index
    %32 = vector.load %arg7[%c0_15, %c0_16, %c0_17] : memref<4x8x1xf32, #tpu.memory_space<vmem>>, vector<1x8x1xf32>
    %33 = vector.shape_cast %32 : vector<1x8x1xf32> to vector<8x1xf32>
    %34 = vector.shape_cast %31 : vector<8x1xf32> to vector<1x8x1xf32>
    tpu.vector_store %arg7[%c0_15, %c0_16, %c0_17], %34 {strides = array<i32>} : memref<4x8x1xf32, #tpu.memory_space<vmem>>, vector<1x8x1xf32>,
    %c0_18 = arith.constant 0 : index
    %c0_19 = arith.constant 0 : index
    %c0_20 = arith.constant 0 : index
    %35 = vector.load %arg8[%c0_18, %c0_19, %c0_20] : memref<4x8x32xf32, #tpu.memory_space<vmem>>, vector<1x8x32xf32>
    %36 = vector.shape_cast %35 : vector<1x8x32xf32> to vector<8x32xf32>
    %37 = vector.broadcast %22 : vector<8x1xf32> to vector<8x32xf32>
    %38 = arith.mulf %37, %36 : vector<8x32xf32>
    %39 = arith.truncf %25 : vector<8x8xf32> to vector<8x8xbf16>
    %cst_21 = arith.constant dense<0.000000e+00> : vector<8x32xf32>
    %40 = tpu.matmul %39, %12, %cst_21 {dimension_numbers = #tpu.dot_dimension_numbers<[1], [0], [0], [1], [0, 0, 1, 1], [], []>} : vector<8x8xbf16>, vector<8x32xbf16>, vector<8x32xf32> -> vector<8x32xf32>
    %41 = arith.addf %38, %40 : vector<8x32xf32>
    %c0_22 = arith.constant 0 : index
    %c0_23 = arith.constant 0 : index
    %c0_24 = arith.constant 0 : index
    %42 = vector.load %arg8[%c0_22, %c0_23, %c0_24] : memref<4x8x32xf32, #tpu.memory_space<vmem>>, vector<1x8x32xf32>
    %43 = vector.shape_cast %42 : vector<1x8x32xf32> to vector<8x32xf32>
    %44 = vector.shape_cast %41 : vector<8x32xf32> to vector<1x8x32xf32>
    tpu.vector_store %arg8[%c0_22, %c0_23, %c0_24], %44 {strides = array<i32>} : memref<4x8x32xf32, #tpu.memory_space<vmem>>, vector<1x8x32xf32>,
    %c0_25 = arith.constant 0 : index
    %c0_26 = arith.constant 0 : index
    %c0_27 = arith.constant 0 : index
    %45 = vector.load %arg6[%c0_25, %c0_26, %c0_27] : memref<4x8x1xf32, #tpu.memory_space<vmem>>, vector<1x8x1xf32>
    %46 = vector.shape_cast %45 : vector<1x8x1xf32> to vector<8x1xf32>
    %47 = vector.shape_cast %20 : vector<8x1xf32> to vector<1x8x1xf32>
    tpu.vector_store %arg6[%c0_25, %c0_26, %c0_27], %47 {strides = array<i32>} : memref<4x8x1xf32, #tpu.memory_space<vmem>>, vector<1x8x1xf32>,
    %48 = vector.extract_strided_slice %7 {offsets = [0, 32], sizes = [8, 32], strides = [1, 1]} : vector<8x128xbf16> to vector<8x32xbf16>
    %49 = vector.extract_strided_slice %8 {offsets = [0, 32], sizes = [8, 32], strides = [1, 1]} : vector<8x128xbf16> to vector<8x32xbf16>
    %50 = vector.extract_strided_slice %9 {offsets = [0, 32], sizes = [8, 32], strides = [1, 1]} : vector<8x128xbf16> to vector<8x32xbf16>
    %cst_28 = arith.constant dense<0.000000e+00> : vector<8x8xf32>
    %51 = tpu.matmul %48, %49, %cst_28 {dimension_numbers = #tpu.dot_dimension_numbers<[1], [1], [0], [0], [0, 0, 1, 0], [], []>} : vector<8x32xbf16>, vector<8x32xbf16>, vector<8x8xf32> -> vector<8x8xf32>
    %cst_29 = arith.constant 0.176776692 : f32
    %52 = vector.broadcast %cst_29 : f32 to vector<8x8xf32>
    %53 = arith.mulf %51, %52 : vector<8x8xf32>
    %c1 = arith.constant 1 : index
    %c0_30 = arith.constant 0 : index
    %c0_31 = arith.constant 0 : index
    %54 = vector.load %arg6[%c1, %c0_30, %c0_31] : memref<4x8x1xf32, #tpu.memory_space<vmem>>, vector<1x8x1xf32>
    %55 = vector.shape_cast %54 : vector<1x8x1xf32> to vector<8x1xf32>
    %cst_32 = arith.constant dense<0xFF800000> : vector<8xf32>
    %56 = vector.multi_reduction <maximumf>, %53, %cst_32 [1] : vector<8x8xf32> to vector<8xf32>
    %57 = vector.shape_cast %56 : vector<8xf32> to vector<8x1xf32>
    %58 = arith.maximumf %55, %57 : vector<8x1xf32>
    %59 = arith.subf %55, %58 : vector<8x1xf32>
    %60 = math.exp %59 : vector<8x1xf32>
    %61 = vector.broadcast %58 : vector<8x1xf32> to vector<8x8xf32>
    %62 = arith.subf %53, %61 : vector<8x8xf32>
    %63 = math.exp %62 : vector<8x8xf32>
    %c1_33 = arith.constant 1 : index
    %c0_34 = arith.constant 0 : index
    %c0_35 = arith.constant 0 : index
    %64 = vector.load %arg7[%c1_33, %c0_34, %c0_35] : memref<4x8x1xf32, #tpu.memory_space<vmem>>, vector<1x8x1xf32>
    %65 = vector.shape_cast %64 : vector<1x8x1xf32> to vector<8x1xf32>
    %66 = arith.mulf %60, %65 : vector<8x1xf32>
    %cst_36 = arith.constant dense<0.000000e+00> : vector<8xf32>
    %67 = vector.multi_reduction <add>, %63, %cst_36 [1] : vector<8x8xf32> to vector<8xf32>
    %68 = vector.shape_cast %67 : vector<8xf32> to vector<8x1xf32>
    %69 = arith.addf %66, %68 : vector<8x1xf32>
    %c1_37 = arith.constant 1 : index
    %c0_38 = arith.constant 0 : index
    %c0_39 = arith.constant 0 : index
    %70 = vector.load %arg7[%c1_37, %c0_38, %c0_39] : memref<4x8x1xf32, #tpu.memory_space<vmem>>, vector<1x8x1xf32>
    %71 = vector.shape_cast %70 : vector<1x8x1xf32> to vector<8x1xf32>
    %72 = vector.shape_cast %69 : vector<8x1xf32> to vector<1x8x1xf32>
    tpu.vector_store %arg7[%c1_37, %c0_38, %c0_39], %72 {strides = array<i32>} : memref<4x8x1xf32, #tpu.memory_space<vmem>>, vector<1x8x1xf32>,
    %c1_40 = arith.constant 1 : index
    %c0_41 = arith.constant 0 : index
    %c0_42 = arith.constant 0 : index
    %73 = vector.load %arg8[%c1_40, %c0_41, %c0_42] : memref<4x8x32xf32, #tpu.memory_space<vmem>>, vector<1x8x32xf32>
    %74 = vector.shape_cast %73 : vector<1x8x32xf32> to vector<8x32xf32>
    %75 = vector.broadcast %60 : vector<8x1xf32> to vector<8x32xf32>
    %76 = arith.mulf %75, %74 : vector<8x32xf32>
    %77 = arith.truncf %63 : vector<8x8xf32> to vector<8x8xbf16>
    %cst_43 = arith.constant dense<0.000000e+00> : vector<8x32xf32>
    %78 = tpu.matmul %77, %50, %cst_43 {dimension_numbers = #tpu.dot_dimension_numbers<[1], [0], [0], [1], [0, 0, 1, 1], [], []>} : vector<8x8xbf16>, vector<8x32xbf16>, vector<8x32xf32> -> vector<8x32xf32>
    %79 = arith.addf %76, %78 : vector<8x32xf32>
    %c1_44 = arith.constant 1 : index
    %c0_45 = arith.constant 0 : index
    %c0_46 = arith.constant 0 : index
    %80 = vector.load %arg8[%c1_44, %c0_45, %c0_46] : memref<4x8x32xf32, #tpu.memory_space<vmem>>, vector<1x8x32xf32>
    %81 = vector.shape_cast %80 : vector<1x8x32xf32> to vector<8x32xf32>
    %82 = vector.shape_cast %79 : vector<8x32xf32> to vector<1x8x32xf32>
    tpu.vector_store %arg8[%c1_44, %c0_45, %c0_46], %82 {strides = array<i32>} : memref<4x8x32xf32, #tpu.memory_space<vmem>>, vector<1x8x32xf32>,
    %c1_47 = arith.constant 1 : index
    %c0_48 = arith.constant 0 : index
    %c0_49 = arith.constant 0 : index
    %83 = vector.load %arg6[%c1_47, %c0_48, %c0_49] : memref<4x8x1xf32, #tpu.memory_space<vmem>>, vector<1x8x1xf32>
    %84 = vector.shape_cast %83 : vector<1x8x1xf32> to vector<8x1xf32>
    %85 = vector.shape_cast %58 : vector<8x1xf32> to vector<1x8x1xf32>
    tpu.vector_store %arg6[%c1_47, %c0_48, %c0_49], %85 {strides = array<i32>} : memref<4x8x1xf32, #tpu.memory_space<vmem>>, vector<1x8x1xf32>,
    %86 = vector.extract_strided_slice %7 {offsets = [0, 64], sizes = [8, 32], strides = [1, 1]} : vector<8x128xbf16> to vector<8x32xbf16>
    %87 = vector.extract_strided_slice %8 {offsets = [0, 64], sizes = [8, 32], strides = [1, 1]} : vector<8x128xbf16> to vector<8x32xbf16>
    %88 = vector.extract_strided_slice %9 {offsets = [0, 64], sizes = [8, 32], strides = [1, 1]} : vector<8x128xbf16> to vector<8x32xbf16>
    %cst_50 = arith.constant dense<0.000000e+00> : vector<8x8xf32>
    %89 = tpu.matmul %86, %87, %cst_50 {dimension_numbers = #tpu.dot_dimension_numbers<[1], [1], [0], [0], [0, 0, 1, 0], [], []>} : vector<8x32xbf16>, vector<8x32xbf16>, vector<8x8xf32> -> vector<8x8xf32>
    %cst_51 = arith.constant 0.176776692 : f32
    %90 = vector.broadcast %cst_51 : f32 to vector<8x8xf32>
    %91 = arith.mulf %89, %90 : vector<8x8xf32>
    %c2 = arith.constant 2 : index
    %c0_52 = arith.constant 0 : index
    %c0_53 = arith.constant 0 : index
    %92 = vector.load %arg6[%c2, %c0_52, %c0_53] : memref<4x8x1xf32, #tpu.memory_space<vmem>>, vector<1x8x1xf32>
    %93 = vector.shape_cast %92 : vector<1x8x1xf32> to vector<8x1xf32>
    %cst_54 = arith.constant dense<0xFF800000> : vector<8xf32>
    %94 = vector.multi_reduction <maximumf>, %91, %cst_54 [1] : vector<8x8xf32> to vector<8xf32>
    %95 = vector.shape_cast %94 : vector<8xf32> to vector<8x1xf32>
    %96 = arith.maximumf %93, %95 : vector<8x1xf32>
    %97 = arith.subf %93, %96 : vector<8x1xf32>
    %98 = math.exp %97 : vector<8x1xf32>
    %99 = vector.broadcast %96 : vector<8x1xf32> to vector<8x8xf32>
    %100 = arith.subf %91, %99 : vector<8x8xf32>
    %101 = math.exp %100 : vector<8x8xf32>
    %c2_55 = arith.constant 2 : index
    %c0_56 = arith.constant 0 : index
    %c0_57 = arith.constant 0 : index
    %102 = vector.load %arg7[%c2_55, %c0_56, %c0_57] : memref<4x8x1xf32, #tpu.memory_space<vmem>>, vector<1x8x1xf32>
    %103 = vector.shape_cast %102 : vector<1x8x1xf32> to vector<8x1xf32>
    %104 = arith.mulf %98, %103 : vector<8x1xf32>
    %cst_58 = arith.constant dense<0.000000e+00> : vector<8xf32>
    %105 = vector.multi_reduction <add>, %101, %cst_58 [1] : vector<8x8xf32> to vector<8xf32>
    %106 = vector.shape_cast %105 : vector<8xf32> to vector<8x1xf32>
    %107 = arith.addf %104, %106 : vector<8x1xf32>
    %c2_59 = arith.constant 2 : index
    %c0_60 = arith.constant 0 : index
    %c0_61 = arith.constant 0 : index
    %108 = vector.load %arg7[%c2_59, %c0_60, %c0_61] : memref<4x8x1xf32, #tpu.memory_space<vmem>>, vector<1x8x1xf32>
    %109 = vector.shape_cast %108 : vector<1x8x1xf32> to vector<8x1xf32>
    %110 = vector.shape_cast %107 : vector<8x1xf32> to vector<1x8x1xf32>
    tpu.vector_store %arg7[%c2_59, %c0_60, %c0_61], %110 {strides = array<i32>} : memref<4x8x1xf32, #tpu.memory_space<vmem>>, vector<1x8x1xf32>,
    %c2_62 = arith.constant 2 : index
    %c0_63 = arith.constant 0 : index
    %c0_64 = arith.constant 0 : index
    %111 = vector.load %arg8[%c2_62, %c0_63, %c0_64] : memref<4x8x32xf32, #tpu.memory_space<vmem>>, vector<1x8x32xf32>
    %112 = vector.shape_cast %111 : vector<1x8x32xf32> to vector<8x32xf32>
    %113 = vector.broadcast %98 : vector<8x1xf32> to vector<8x32xf32>
    %114 = arith.mulf %113, %112 : vector<8x32xf32>
    %115 = arith.truncf %101 : vector<8x8xf32> to vector<8x8xbf16>
    %cst_65 = arith.constant dense<0.000000e+00> : vector<8x32xf32>
    %116 = tpu.matmul %115, %88, %cst_65 {dimension_numbers = #tpu.dot_dimension_numbers<[1], [0], [0], [1], [0, 0, 1, 1], [], []>} : vector<8x8xbf16>, vector<8x32xbf16>, vector<8x32xf32> -> vector<8x32xf32>
    %117 = arith.addf %114, %116 : vector<8x32xf32>
    %c2_66 = arith.constant 2 : index
    %c0_67 = arith.constant 0 : index
    %c0_68 = arith.constant 0 : index
    %118 = vector.load %arg8[%c2_66, %c0_67, %c0_68] : memref<4x8x32xf32, #tpu.memory_space<vmem>>, vector<1x8x32xf32>
    %119 = vector.shape_cast %118 : vector<1x8x32xf32> to vector<8x32xf32>
    %120 = vector.shape_cast %117 : vector<8x32xf32> to vector<1x8x32xf32>
    tpu.vector_store %arg8[%c2_66, %c0_67, %c0_68], %120 {strides = array<i32>} : memref<4x8x32xf32, #tpu.memory_space<vmem>>, vector<1x8x32xf32>,
    %c2_69 = arith.constant 2 : index
    %c0_70 = arith.constant 0 : index
    %c0_71 = arith.constant 0 : index
    %121 = vector.load %arg6[%c2_69, %c0_70, %c0_71] : memref<4x8x1xf32, #tpu.memory_space<vmem>>, vector<1x8x1xf32>
    %122 = vector.shape_cast %121 : vector<1x8x1xf32> to vector<8x1xf32>
    %123 = vector.shape_cast %96 : vector<8x1xf32> to vector<1x8x1xf32>
    tpu.vector_store %arg6[%c2_69, %c0_70, %c0_71], %123 {strides = array<i32>} : memref<4x8x1xf32, #tpu.memory_space<vmem>>, vector<1x8x1xf32>,
    %124 = vector.extract_strided_slice %7 {offsets = [0, 96], sizes = [8, 32], strides = [1, 1]} : vector<8x128xbf16> to vector<8x32xbf16>
    %125 = vector.extract_strided_slice %8 {offsets = [0, 96], sizes = [8, 32], strides = [1, 1]} : vector<8x128xbf16> to vector<8x32xbf16>
    %126 = vector.extract_strided_slice %9 {offsets = [0, 96], sizes = [8, 32], strides = [1, 1]} : vector<8x128xbf16> to vector<8x32xbf16>
    %cst_72 = arith.constant dense<0.000000e+00> : vector<8x8xf32>
    %127 = tpu.matmul %124, %125, %cst_72 {dimension_numbers = #tpu.dot_dimension_numbers<[1], [1], [0], [0], [0, 0, 1, 0], [], []>} : vector<8x32xbf16>, vector<8x32xbf16>, vector<8x8xf32> -> vector<8x8xf32>
    %cst_73 = arith.constant 0.176776692 : f32
    %128 = vector.broadcast %cst_73 : f32 to vector<8x8xf32>
    %129 = arith.mulf %127, %128 : vector<8x8xf32>
    %c3 = arith.constant 3 : index
    %c0_74 = arith.constant 0 : index
    %c0_75 = arith.constant 0 : index
    %130 = vector.load %arg6[%c3, %c0_74, %c0_75] : memref<4x8x1xf32, #tpu.memory_space<vmem>>, vector<1x8x1xf32>
    %131 = vector.shape_cast %130 : vector<1x8x1xf32> to vector<8x1xf32>
    %cst_76 = arith.constant dense<0xFF800000> : vector<8xf32>
    %132 = vector.multi_reduction <maximumf>, %129, %cst_76 [1] : vector<8x8xf32> to vector<8xf32>
    %133 = vector.shape_cast %132 : vector<8xf32> to vector<8x1xf32>
    %134 = arith.maximumf %131, %133 : vector<8x1xf32>
    %135 = arith.subf %131, %134 : vector<8x1xf32>
    %136 = math.exp %135 : vector<8x1xf32>
    %137 = vector.broadcast %134 : vector<8x1xf32> to vector<8x8xf32>
    %138 = arith.subf %129, %137 : vector<8x8xf32>
    %139 = math.exp %138 : vector<8x8xf32>
    %c3_77 = arith.constant 3 : index
    %c0_78 = arith.constant 0 : index
    %c0_79 = arith.constant 0 : index
    %140 = vector.load %arg7[%c3_77, %c0_78, %c0_79] : memref<4x8x1xf32, #tpu.memory_space<vmem>>, vector<1x8x1xf32>
    %141 = vector.shape_cast %140 : vector<1x8x1xf32> to vector<8x1xf32>
    %142 = arith.mulf %136, %141 : vector<8x1xf32>
    %cst_80 = arith.constant dense<0.000000e+00> : vector<8xf32>
    %143 = vector.multi_reduction <add>, %139, %cst_80 [1] : vector<8x8xf32> to vector<8xf32>
    %144 = vector.shape_cast %143 : vector<8xf32> to vector<8x1xf32>
    %145 = arith.addf %142, %144 : vector<8x1xf32>
    %c3_81 = arith.constant 3 : index
    %c0_82 = arith.constant 0 : index
    %c0_83 = arith.constant 0 : index
    %146 = vector.load %arg7[%c3_81, %c0_82, %c0_83] : memref<4x8x1xf32, #tpu.memory_space<vmem>>, vector<1x8x1xf32>
    %147 = vector.shape_cast %146 : vector<1x8x1xf32> to vector<8x1xf32>
    %148 = vector.shape_cast %145 : vector<8x1xf32> to vector<1x8x1xf32>
    tpu.vector_store %arg7[%c3_81, %c0_82, %c0_83], %148 {strides = array<i32>} : memref<4x8x1xf32, #tpu.memory_space<vmem>>, vector<1x8x1xf32>,
    %c3_84 = arith.constant 3 : index
    %c0_85 = arith.constant 0 : index
    %c0_86 = arith.constant 0 : index
    %149 = vector.load %arg8[%c3_84, %c0_85, %c0_86] : memref<4x8x32xf32, #tpu.memory_space<vmem>>, vector<1x8x32xf32>
    %150 = vector.shape_cast %149 : vector<1x8x32xf32> to vector<8x32xf32>
    %151 = vector.broadcast %136 : vector<8x1xf32> to vector<8x32xf32>
    %152 = arith.mulf %151, %150 : vector<8x32xf32>
    %153 = arith.truncf %139 : vector<8x8xf32> to vector<8x8xbf16>
    %cst_87 = arith.constant dense<0.000000e+00> : vector<8x32xf32>
    %154 = tpu.matmul %153, %126, %cst_87 {dimension_numbers = #tpu.dot_dimension_numbers<[1], [0], [0], [1], [0, 0, 1, 1], [], []>} : vector<8x8xbf16>, vector<8x32xbf16>, vector<8x32xf32> -> vector<8x32xf32>
    %155 = arith.addf %152, %154 : vector<8x32xf32>
    %c3_88 = arith.constant 3 : index
    %c0_89 = arith.constant 0 : index
    %c0_90 = arith.constant 0 : index
    %156 = vector.load %arg8[%c3_88, %c0_89, %c0_90] : memref<4x8x32xf32, #tpu.memory_space<vmem>>, vector<1x8x32xf32>
    %157 = vector.shape_cast %156 : vector<1x8x32xf32> to vector<8x32xf32>
    %158 = vector.shape_cast %155 : vector<8x32xf32> to vector<1x8x32xf32>
    tpu.vector_store %arg8[%c3_88, %c0_89, %c0_90], %158 {strides = array<i32>} : memref<4x8x32xf32, #tpu.memory_space<vmem>>, vector<1x8x32xf32>,
    %c3_91 = arith.constant 3 : index
    %c0_92 = arith.constant 0 : index
    %c0_93 = arith.constant 0 : index
    %159 = vector.load %arg6[%c3_91, %c0_92, %c0_93] : memref<4x8x1xf32, #tpu.memory_space<vmem>>, vector<1x8x1xf32>
    %160 = vector.shape_cast %159 : vector<1x8x1xf32> to vector<8x1xf32>
    %161 = vector.shape_cast %134 : vector<8x1xf32> to vector<1x8x1xf32>
    tpu.vector_store %arg6[%c3_91, %c0_92, %c0_93], %161 {strides = array<i32>} : memref<4x8x1xf32, #tpu.memory_space<vmem>>, vector<1x8x1xf32>,
    %c0_i32_94 = arith.constant 0 : i32
    %162 = arith.cmpi eq, %arg2, %c0_i32_94 : i32
    %163 = arith.extui %162 : i1 to i32
    %c0_i32_95 = arith.constant 0 : i32
    %164 = arith.cmpi ne, %163, %c0_i32_95 : i32
    scf.if %164 {
      %c0_96 = arith.constant 0 : index
      %c0_97 = arith.constant 0 : index
      %c0_98 = arith.constant 0 : index
      %165 = vector.load %arg7[%c0_96, %c0_97, %c0_98] : memref<4x8x1xf32, #tpu.memory_space<vmem>>, vector<1x8x1xf32>
      %166 = vector.shape_cast %165 : vector<1x8x1xf32> to vector<8x1xf32>
      %167 = tpu.reciprocal %166 {approx = true} : vector<8x1xf32> -> vector<8x1xf32>
      %c0_99 = arith.constant 0 : index
      %c0_100 = arith.constant 0 : index
      %c0_101 = arith.constant 0 : index
      %168 = vector.load %arg8[%c0_99, %c0_100, %c0_101] : memref<4x8x32xf32, #tpu.memory_space<vmem>>, vector<1x8x32xf32>
      %169 = vector.shape_cast %168 : vector<1x8x32xf32> to vector<8x32xf32>
      %170 = vector.broadcast %167 : vector<8x1xf32> to vector<8x32xf32>
      %171 = arith.mulf %169, %170 : vector<8x32xf32>
      %c1_102 = arith.constant 1 : index
      %c0_103 = arith.constant 0 : index
      %c0_104 = arith.constant 0 : index
      %172 = vector.load %arg7[%c1_102, %c0_103, %c0_104] : memref<4x8x1xf32, #tpu.memory_space<vmem>>, vector<1x8x1xf32>
      %173 = vector.shape_cast %172 : vector<1x8x1xf32> to vector<8x1xf32>
      %174 = tpu.reciprocal %173 {approx = true} : vector<8x1xf32> -> vector<8x1xf32>
      %c1_105 = arith.constant 1 : index
      %c0_106 = arith.constant 0 : index
      %c0_107 = arith.constant 0 : index
      %175 = vector.load %arg8[%c1_105, %c0_106, %c0_107] : memref<4x8x32xf32, #tpu.memory_space<vmem>>, vector<1x8x32xf32>
      %176 = vector.shape_cast %175 : vector<1x8x32xf32> to vector<8x32xf32>
      %177 = vector.broadcast %174 : vector<8x1xf32> to vector<8x32xf32>
      %178 = arith.mulf %176, %177 : vector<8x32xf32>
      %c2_108 = arith.constant 2 : index
      %c0_109 = arith.constant 0 : index
      %c0_110 = arith.constant 0 : index
      %179 = vector.load %arg7[%c2_108, %c0_109, %c0_110] : memref<4x8x1xf32, #tpu.memory_space<vmem>>, vector<1x8x1xf32>
      %180 = vector.shape_cast %179 : vector<1x8x1xf32> to vector<8x1xf32>
      %181 = tpu.reciprocal %180 {approx = true} : vector<8x1xf32> -> vector<8x1xf32>
      %c2_111 = arith.constant 2 : index
      %c0_112 = arith.constant 0 : index
      %c0_113 = arith.constant 0 : index
      %182 = vector.load %arg8[%c2_111, %c0_112, %c0_113] : memref<4x8x32xf32, #tpu.memory_space<vmem>>, vector<1x8x32xf32>
      %183 = vector.shape_cast %182 : vector<1x8x32xf32> to vector<8x32xf32>
      %184 = vector.broadcast %181 : vector<8x1xf32> to vector<8x32xf32>
      %185 = arith.mulf %183, %184 : vector<8x32xf32>
      %c3_114 = arith.constant 3 : index
      %c0_115 = arith.constant 0 : index
      %c0_116 = arith.constant 0 : index
      %186 = vector.load %arg7[%c3_114, %c0_115, %c0_116] : memref<4x8x1xf32, #tpu.memory_space<vmem>>, vector<1x8x1xf32>
      %187 = vector.shape_cast %186 : vector<1x8x1xf32> to vector<8x1xf32>
      %188 = tpu.reciprocal %187 {approx = true} : vector<8x1xf32> -> vector<8x1xf32>
      %c3_117 = arith.constant 3 : index
      %c0_118 = arith.constant 0 : index
      %c0_119 = arith.constant 0 : index
      %189 = vector.load %arg8[%c3_117, %c0_118, %c0_119] : memref<4x8x32xf32, #tpu.memory_space<vmem>>, vector<1x8x32xf32>
      %190 = vector.shape_cast %189 : vector<1x8x32xf32> to vector<8x32xf32>
      %191 = vector.broadcast %188 : vector<8x1xf32> to vector<8x32xf32>
      %192 = arith.mulf %190, %191 : vector<8x32xf32>
      %193 = tpu.concatenate %171, %178, %185, %192 in 1 : vector<8x32xf32>, vector<8x32xf32>, vector<8x32xf32>, vector<8x32xf32> -> vector<8x128xf32>
      %194 = arith.truncf %193 : vector<8x128xf32> to vector<8x128xbf16>
      %c0_120 = arith.constant 0 : index
      %c0_121 = arith.constant 0 : index
      %c0_122 = arith.constant 0 : index
      %195 = vector.load %arg5[%c0_120, %c0_121, %c0_122] : memref<1x8x128xbf16, #tpu.memory_space<vmem>>, vector<1x8x128xbf16>
      %196 = vector.shape_cast %195 : vector<1x8x128xbf16> to vector<8x128xbf16>
      %197 = vector.shape_cast %194 : vector<8x128xbf16> to vector<1x8x128xbf16>
      tpu.vector_store %arg5[%c0_120, %c0_121, %c0_122], %197 {strides = array<i32>} : memref<1x8x128xbf16, #tpu.memory_space<vmem>>, vector<1x8x128xbf16>,
    } else {
    }
    return
  }
  func.func @transform_0(%arg0: i32, %arg1: i32, %arg2: i32) -> (i32, i32, i32) {
    %c0_i32 = arith.constant 0 : i32
    %c0_i32_0 = arith.constant 0 : i32
    return %arg0, %arg1, %c0_i32 : i32, i32, i32
  }
  func.func @transform_1(%arg0: i32, %arg1: i32, %arg2: i32) -> (i32, i32, i32) {
    %c0_i32 = arith.constant 0 : i32
    %c0_i32_0 = arith.constant 0 : i32
    return %arg0, %arg2, %c0_i32 : i32, i32, i32
  }
  func.func @transform_2(%arg0: i32, %arg1: i32, %arg2: i32) -> (i32, i32, i32) {
    %c0_i32 = arith.constant 0 : i32
    %c0_i32_0 = arith.constant 0 : i32
    return %arg0, %arg1, %c0_i32 : i32, i32, i32
  }
}

module attributes {stable_mosaic.version = 11 : i64} {
  func.func @_mm_single_kernel(%arg0: i32, %arg1: i32, %arg2: memref<16x512xbf16, #tpu.memory_space<vmem>>, %arg3: memref<512x128xbf16, #tpu.memory_space<vmem>>, %arg4: memref<1x128xf32, #tpu.memory_space<vmem>>, %arg5: memref<16x128xf32, #tpu.memory_space<vmem>>, %arg6: memref<16x128xf32, #tpu.memory_space<vmem>>) attributes {dimension_semantics = [#tpu.dimension_semantics<parallel>, #tpu.dimension_semantics<parallel>], iteration_bounds = array<i64: 1, 1>, scalar_prefetch = 0 : i64, scratch_operands = 0 : i64, tpu.core_type = #tpu.core_type<tc>, window_params = [{transform_indices = @transform_0, window_bounds = array<i64: 16, 512>}, {transform_indices = @transform_1, window_bounds = array<i64: 512, 128>}, {transform_indices = @transform_2, window_bounds = array<i64: 1, 128>}, {transform_indices = @transform_3, window_bounds = array<i64: 16, 128>}, {transform_indices = @transform_4, window_bounds = array<i64: 16, 128>}]} {
    %c0 = arith.constant 0 : index
    %c0_0 = arith.constant 0 : index
    %0 = vector.load %arg2[%c0, %c0_0] : memref<16x512xbf16, #tpu.memory_space<vmem>>, vector<16x512xbf16>
    %c0_1 = arith.constant 0 : index
    %c0_2 = arith.constant 0 : index
    %1 = vector.load %arg3[%c0_1, %c0_2] : memref<512x128xbf16, #tpu.memory_space<vmem>>, vector<512x128xbf16>
    %cst = arith.constant dense<0.000000e+00> : vector<16x128xf32>
    %2 = tpu.matmul %0, %1, %cst {dimension_numbers = #tpu.dot_dimension_numbers<[1], [0], [0], [1], [0, 0, 1, 1], [], []>} : vector<16x512xbf16>, vector<512x128xbf16>, vector<16x128xf32> -> vector<16x128xf32>
    %c0_3 = arith.constant 0 : index
    %c0_4 = arith.constant 0 : index
    %3 = vector.load %arg4[%c0_3, %c0_4] : memref<1x128xf32, #tpu.memory_space<vmem>>, vector<1x128xf32>
    %4 = vector.broadcast %3 : vector<1x128xf32> to vector<16x128xf32>
    %5 = arith.addf %2, %4 : vector<16x128xf32>
    %c0_5 = arith.constant 0 : index
    %c0_6 = arith.constant 0 : index
    %6 = vector.load %arg5[%c0_5, %c0_6] : memref<16x128xf32, #tpu.memory_space<vmem>>, vector<16x128xf32>
    %7 = arith.addf %5, %6 : vector<16x128xf32>
    %c0_7 = arith.constant 0 : index
    %c0_8 = arith.constant 0 : index
    %8 = vector.load %arg6[%c0_7, %c0_8] : memref<16x128xf32, #tpu.memory_space<vmem>>, vector<16x128xf32>
    tpu.vector_store %arg6[%c0_7, %c0_8], %7 {strides = array<i32>} : memref<16x128xf32, #tpu.memory_space<vmem>>, vector<16x128xf32>,
    return
  }
  func.func @transform_0(%arg0: i32, %arg1: i32) -> (i32, i32) {
    %c0_i32 = arith.constant 0 : i32
    %c0_i32_0 = arith.constant 0 : i32
    return %arg0, %c0_i32 : i32, i32
  }
  func.func @transform_1(%arg0: i32, %arg1: i32) -> (i32, i32) {
    %c0_i32 = arith.constant 0 : i32
    %c0_i32_0 = arith.constant 0 : i32
    return %c0_i32, %arg1 : i32, i32
  }
  func.func @transform_2(%arg0: i32, %arg1: i32) -> (i32, i32) {
    %c0_i32 = arith.constant 0 : i32
    %c0_i32_0 = arith.constant 0 : i32
    return %c0_i32, %arg1 : i32, i32
  }
  func.func @transform_3(%arg0: i32, %arg1: i32) -> (i32, i32) {
    %c0_i32 = arith.constant 0 : i32
    return %arg0, %arg1 : i32, i32
  }
  func.func @transform_4(%arg0: i32, %arg1: i32) -> (i32, i32) {
    %c0_i32 = arith.constant 0 : i32
    return %arg0, %arg1 : i32, i32
  }
}

module attributes {stable_mosaic.version = 11 : i64} {
  func.func @_mm_single_kernel(%arg0: i32, %arg1: i32, %arg2: memref<16x128xf32, #tpu.memory_space<vmem>>, %arg3: memref<128x512xbf16, #tpu.memory_space<vmem>>, %arg4: memref<1x512xf32, #tpu.memory_space<vmem>>, %arg5: memref<1x128xf32, #tpu.memory_space<vmem>>, %arg6: memref<1x128xf32, #tpu.memory_space<vmem>>, %arg7: memref<16x512xbf16, #tpu.memory_space<vmem>>) attributes {dimension_semantics = [#tpu.dimension_semantics<parallel>, #tpu.dimension_semantics<parallel>], iteration_bounds = array<i64: 1, 1>, scalar_prefetch = 0 : i64, scratch_operands = 0 : i64, tpu.core_type = #tpu.core_type<tc>, window_params = [{transform_indices = @transform_0, window_bounds = array<i64: 16, 128>}, {transform_indices = @transform_1, window_bounds = array<i64: 128, 512>}, {transform_indices = @transform_2, window_bounds = array<i64: 1, 512>}, {pipeline_mode = #tpu.pipeline_mode<synchronous>, transform_indices = @transform_3, window_bounds = array<i64: 1, 128>}, {pipeline_mode = #tpu.pipeline_mode<synchronous>, transform_indices = @transform_4, window_bounds = array<i64: 1, 128>}, {transform_indices = @transform_5, window_bounds = array<i64: 16, 512>}]} {
    %c0 = arith.constant 0 : index
    %c0_0 = arith.constant 0 : index
    %0 = vector.load %arg2[%c0, %c0_0] : memref<16x128xf32, #tpu.memory_space<vmem>>, vector<16x128xf32>
    %cst = arith.constant dense<0.000000e+00> : vector<16xf32>
    %1 = vector.multi_reduction <add>, %0, %cst [1] : vector<16x128xf32> to vector<16xf32>
    %2 = vector.shape_cast %1 : vector<16xf32> to vector<16x1xf32>
    %cst_1 = arith.constant 1.280000e+02 : f32
    %3 = vector.broadcast %cst_1 : f32 to vector<16x1xf32>
    %4 = arith.divf %2, %3 : vector<16x1xf32>
    %5 = vector.broadcast %4 : vector<16x1xf32> to vector<16x128xf32>
    %6 = arith.subf %0, %5 : vector<16x128xf32>
    %7 = arith.mulf %6, %6 : vector<16x128xf32>
    %cst_2 = arith.constant dense<0.000000e+00> : vector<16xf32>
    %8 = vector.multi_reduction <add>, %7, %cst_2 [1] : vector<16x128xf32> to vector<16xf32>
    %9 = vector.shape_cast %8 : vector<16xf32> to vector<16x1xf32>
    %cst_3 = arith.constant 1.280000e+02 : f32
    %10 = vector.broadcast %cst_3 : f32 to vector<16x1xf32>
    %11 = arith.divf %9, %10 : vector<16x1xf32>
    %cst_4 = arith.constant 9.99999974E-6 : f32
    %12 = vector.broadcast %cst_4 : f32 to vector<16x1xf32>
    %13 = arith.addf %11, %12 : vector<16x1xf32>
    %14 = math.rsqrt %13 : vector<16x1xf32>
    %15 = vector.broadcast %14 : vector<16x1xf32> to vector<16x128xf32>
    %16 = arith.mulf %6, %15 : vector<16x128xf32>
    %c0_5 = arith.constant 0 : index
    %c0_6 = arith.constant 0 : index
    %17 = vector.load %arg5[%c0_5, %c0_6] : memref<1x128xf32, #tpu.memory_space<vmem>>, vector<1x128xf32>
    %18 = vector.broadcast %17 : vector<1x128xf32> to vector<16x128xf32>
    %19 = arith.mulf %16, %18 : vector<16x128xf32>
    %c0_7 = arith.constant 0 : index
    %c0_8 = arith.constant 0 : index
    %20 = vector.load %arg6[%c0_7, %c0_8] : memref<1x128xf32, #tpu.memory_space<vmem>>, vector<1x128xf32>
    %21 = vector.broadcast %20 : vector<1x128xf32> to vector<16x128xf32>
    %22 = arith.addf %19, %21 : vector<16x128xf32>
    %23 = arith.truncf %22 : vector<16x128xf32> to vector<16x128xbf16>
    %c0_9 = arith.constant 0 : index
    %c0_10 = arith.constant 0 : index
    %24 = vector.load %arg3[%c0_9, %c0_10] : memref<128x512xbf16, #tpu.memory_space<vmem>>, vector<128x512xbf16>
    %cst_11 = arith.constant dense<0.000000e+00> : vector<16x512xf32>
    %25 = tpu.matmul %23, %24, %cst_11 {dimension_numbers = #tpu.dot_dimension_numbers<[1], [0], [0], [1], [0, 0, 1, 1], [], []>} : vector<16x128xbf16>, vector<128x512xbf16>, vector<16x512xf32> -> vector<16x512xf32>
    %c0_12 = arith.constant 0 : index
    %c0_13 = arith.constant 0 : index
    %26 = vector.load %arg4[%c0_12, %c0_13] : memref<1x512xf32, #tpu.memory_space<vmem>>, vector<1x512xf32>
    %27 = vector.broadcast %26 : vector<1x512xf32> to vector<16x512xf32>
    %28 = arith.addf %25, %27 : vector<16x512xf32>
    %cst_14 = arith.constant 5.000000e-01 : f32
    %29 = vector.broadcast %cst_14 : f32 to vector<16x512xf32>
    %30 = arith.mulf %29, %28 : vector<16x512xf32>
    %cst_15 = arith.constant 4.471500e-02 : f32
    %31 = vector.broadcast %cst_15 : f32 to vector<16x512xf32>
    %32 = arith.mulf %31, %28 : vector<16x512xf32>
    %33 = arith.mulf %32, %28 : vector<16x512xf32>
    %34 = arith.mulf %33, %28 : vector<16x512xf32>
    %35 = arith.addf %28, %34 : vector<16x512xf32>
    %cst_16 = arith.constant 0.797884583 : f32
    %36 = vector.broadcast %cst_16 : f32 to vector<16x512xf32>
    %37 = arith.mulf %36, %35 : vector<16x512xf32>
    %38 = math.tanh %37 : vector<16x512xf32>
    %cst_17 = arith.constant 1.000000e+00 : f32
    %39 = vector.broadcast %cst_17 : f32 to vector<16x512xf32>
    %40 = arith.addf %39, %38 : vector<16x512xf32>
    %41 = arith.mulf %30, %40 : vector<16x512xf32>
    %42 = arith.truncf %41 : vector<16x512xf32> to vector<16x512xbf16>
    %c0_18 = arith.constant 0 : index
    %c0_19 = arith.constant 0 : index
    %43 = vector.load %arg7[%c0_18, %c0_19] : memref<16x512xbf16, #tpu.memory_space<vmem>>, vector<16x512xbf16>
    tpu.vector_store %arg7[%c0_18, %c0_19], %42 {strides = array<i32>} : memref<16x512xbf16, #tpu.memory_space<vmem>>, vector<16x512xbf16>,
    return
  }
  func.func @transform_0(%arg0: i32, %arg1: i32) -> (i32, i32) {
    %c0_i32 = arith.constant 0 : i32
    %c0_i32_0 = arith.constant 0 : i32
    return %arg0, %c0_i32 : i32, i32
  }
  func.func @transform_1(%arg0: i32, %arg1: i32) -> (i32, i32) {
    %c0_i32 = arith.constant 0 : i32
    %c0_i32_0 = arith.constant 0 : i32
    return %c0_i32, %arg1 : i32, i32
  }
  func.func @transform_2(%arg0: i32, %arg1: i32) -> (i32, i32) {
    %c0_i32 = arith.constant 0 : i32
    %c0_i32_0 = arith.constant 0 : i32
    return %c0_i32, %arg1 : i32, i32
  }
  func.func @transform_3(%arg0: i32, %arg1: i32) -> (i32, i32) {
    %c0_i32 = arith.constant 0 : i32
    %c0_i32_0 = arith.constant 0 : i32
    %c0_i32_1 = arith.constant 0 : i32
    return %c0_i32, %c0_i32_0 : i32, i32
  }
  func.func @transform_4(%arg0: i32, %arg1: i32) -> (i32, i32) {
    %c0_i32 = arith.constant 0 : i32
    %c0_i32_0 = arith.constant 0 : i32
    %c0_i32_1 = arith.constant 0 : i32
    return %c0_i32, %c0_i32_0 : i32, i32
  }
  func.func @transform_5(%arg0: i32, %arg1: i32) -> (i32, i32) {
    %c0_i32 = arith.constant 0 : i32
    return %arg0, %arg1 : i32, i32
  }
}

module attributes {stable_mosaic.version = 11 : i64} {
  func.func @_mm_single_kernel(%arg0: i32, %arg1: i32, %arg2: memref<16x128xf32, #tpu.memory_space<vmem>>, %arg3: memref<128x128xbf16, #tpu.memory_space<vmem>>, %arg4: memref<1x128xf32, #tpu.memory_space<vmem>>, %arg5: memref<1x128xf32, #tpu.memory_space<vmem>>, %arg6: memref<1x128xf32, #tpu.memory_space<vmem>>, %arg7: memref<1x128xf32, #tpu.memory_space<vmem>>, %arg8: memref<16x128xf32, #tpu.memory_space<vmem>>) attributes {dimension_semantics = [#tpu.dimension_semantics<parallel>, #tpu.dimension_semantics<parallel>], iteration_bounds = array<i64: 1, 1>, scalar_prefetch = 0 : i64, scratch_operands = 0 : i64, tpu.core_type = #tpu.core_type<tc>, window_params = [{transform_indices = @transform_0, window_bounds = array<i64: 16, 128>}, {transform_indices = @transform_1, window_bounds = array<i64: 128, 128>}, {transform_indices = @transform_2, window_bounds = array<i64: 1, 128>}, {pipeline_mode = #tpu.pipeline_mode<synchronous>, transform_indices = @transform_3, window_bounds = array<i64: 1, 128>}, {pipeline_mode = #tpu.pipeline_mode<synchronous>, transform_indices = @transform_4, window_bounds = array<i64: 1, 128>}, {transform_indices = @transform_5, window_bounds = array<i64: 1, 128>}, {transform_indices = @transform_6, window_bounds = array<i64: 16, 128>}]} {
    %c0 = arith.constant 0 : index
    %c0_0 = arith.constant 0 : index
    %0 = vector.load %arg2[%c0, %c0_0] : memref<16x128xf32, #tpu.memory_space<vmem>>, vector<16x128xf32>
    %cst = arith.constant dense<0.000000e+00> : vector<16xf32>
    %1 = vector.multi_reduction <add>, %0, %cst [1] : vector<16x128xf32> to vector<16xf32>
    %2 = vector.shape_cast %1 : vector<16xf32> to vector<16x1xf32>
    %cst_1 = arith.constant 1.280000e+02 : f32
    %3 = vector.broadcast %cst_1 : f32 to vector<16x1xf32>
    %4 = arith.divf %2, %3 : vector<16x1xf32>
    %5 = vector.broadcast %4 : vector<16x1xf32> to vector<16x128xf32>
    %6 = arith.subf %0, %5 : vector<16x128xf32>
    %7 = arith.mulf %6, %6 : vector<16x128xf32>
    %cst_2 = arith.constant dense<0.000000e+00> : vector<16xf32>
    %8 = vector.multi_reduction <add>, %7, %cst_2 [1] : vector<16x128xf32> to vector<16xf32>
    %9 = vector.shape_cast %8 : vector<16xf32> to vector<16x1xf32>
    %cst_3 = arith.constant 1.280000e+02 : f32
    %10 = vector.broadcast %cst_3 : f32 to vector<16x1xf32>
    %11 = arith.divf %9, %10 : vector<16x1xf32>
    %cst_4 = arith.constant 9.99999974E-6 : f32
    %12 = vector.broadcast %cst_4 : f32 to vector<16x1xf32>
    %13 = arith.addf %11, %12 : vector<16x1xf32>
    %14 = math.rsqrt %13 : vector<16x1xf32>
    %15 = vector.broadcast %14 : vector<16x1xf32> to vector<16x128xf32>
    %16 = arith.mulf %6, %15 : vector<16x128xf32>
    %c0_5 = arith.constant 0 : index
    %c0_6 = arith.constant 0 : index
    %17 = vector.load %arg5[%c0_5, %c0_6] : memref<1x128xf32, #tpu.memory_space<vmem>>, vector<1x128xf32>
    %18 = vector.broadcast %17 : vector<1x128xf32> to vector<16x128xf32>
    %19 = arith.mulf %16, %18 : vector<16x128xf32>
    %c0_7 = arith.constant 0 : index
    %c0_8 = arith.constant 0 : index
    %20 = vector.load %arg6[%c0_7, %c0_8] : memref<1x128xf32, #tpu.memory_space<vmem>>, vector<1x128xf32>
    %21 = vector.broadcast %20 : vector<1x128xf32> to vector<16x128xf32>
    %22 = arith.addf %19, %21 : vector<16x128xf32>
    %23 = arith.truncf %22 : vector<16x128xf32> to vector<16x128xbf16>
    %c0_9 = arith.constant 0 : index
    %c0_10 = arith.constant 0 : index
    %24 = vector.load %arg3[%c0_9, %c0_10] : memref<128x128xbf16, #tpu.memory_space<vmem>>, vector<128x128xbf16>
    %cst_11 = arith.constant dense<0.000000e+00> : vector<16x128xf32>
    %25 = tpu.matmul %23, %24, %cst_11 {dimension_numbers = #tpu.dot_dimension_numbers<[1], [0], [0], [1], [0, 0, 1, 1], [], []>} : vector<16x128xbf16>, vector<128x128xbf16>, vector<16x128xf32> -> vector<16x128xf32>
    %c0_12 = arith.constant 0 : index
    %c0_13 = arith.constant 0 : index
    %26 = vector.load %arg4[%c0_12, %c0_13] : memref<1x128xf32, #tpu.memory_space<vmem>>, vector<1x128xf32>
    %27 = vector.broadcast %26 : vector<1x128xf32> to vector<16x128xf32>
    %28 = arith.addf %25, %27 : vector<16x128xf32>
    %cst_14 = arith.constant 0.000000e+00 : f32
    %29 = vector.broadcast %cst_14 : f32 to vector<16x128xf32>
    %30 = arith.subf %29, %28 : vector<16x128xf32>
    %31 = math.exp %30 : vector<16x128xf32>
    %cst_15 = arith.constant 1.000000e+00 : f32
    %32 = vector.broadcast %cst_15 : f32 to vector<16x128xf32>
    %33 = arith.addf %32, %31 : vector<16x128xf32>
    %cst_16 = arith.constant 1.000000e+00 : f32
    %34 = vector.broadcast %cst_16 : f32 to vector<16x128xf32>
    %35 = arith.divf %34, %33 : vector<16x128xf32>
    %c0_17 = arith.constant 0 : index
    %c0_18 = arith.constant 0 : index
    %36 = vector.load %arg7[%c0_17, %c0_18] : memref<1x128xf32, #tpu.memory_space<vmem>>, vector<1x128xf32>
    %cst_19 = arith.constant 5.000000e-01 : f32
    %37 = vector.broadcast %cst_19 : f32 to vector<1x128xf32>
    %38 = arith.cmpf ogt, %36, %37 : vector<1x128xf32>
    %39 = vector.shape_cast %38 : vector<1x128xi1> to vector<1x128xi1>
    %40 = vector.broadcast %39 : vector<1x128xi1> to vector<16x128xi1>
    %41 = arith.select %40, %35, %28 : vector<16x128xi1>, vector<16x128xf32>
    %c0_20 = arith.constant 0 : index
    %c0_21 = arith.constant 0 : index
    %42 = vector.load %arg8[%c0_20, %c0_21] : memref<16x128xf32, #tpu.memory_space<vmem>>, vector<16x128xf32>
    tpu.vector_store %arg8[%c0_20, %c0_21], %41 {strides = array<i32>} : memref<16x128xf32, #tpu.memory_space<vmem>>, vector<16x128xf32>,
    return
  }
  func.func @transform_0(%arg0: i32, %arg1: i32) -> (i32, i32) {
    %c0_i32 = arith.constant 0 : i32
    %c0_i32_0 = arith.constant 0 : i32
    return %arg0, %c0_i32 : i32, i32
  }
  func.func @transform_1(%arg0: i32, %arg1: i32) -> (i32, i32) {
    %c0_i32 = arith.constant 0 : i32
    %c0_i32_0 = arith.constant 0 : i32
    return %c0_i32, %arg1 : i32, i32
  }
  func.func @transform_2(%arg0: i32, %arg1: i32) -> (i32, i32) {
    %c0_i32 = arith.constant 0 : i32
    %c0_i32_0 = arith.constant 0 : i32
    return %c0_i32, %arg1 : i32, i32
  }
  func.func @transform_3(%arg0: i32, %arg1: i32) -> (i32, i32) {
    %c0_i32 = arith.constant 0 : i32
    %c0_i32_0 = arith.constant 0 : i32
    %c0_i32_1 = arith.constant 0 : i32
    return %c0_i32, %c0_i32_0 : i32, i32
  }
  func.func @transform_4(%arg0: i32, %arg1: i32) -> (i32, i32) {
    %c0_i32 = arith.constant 0 : i32
    %c0_i32_0 = arith.constant 0 : i32
    %c0_i32_1 = arith.constant 0 : i32
    return %c0_i32, %c0_i32_0 : i32, i32
  }
  func.func @transform_5(%arg0: i32, %arg1: i32) -> (i32, i32) {
    %c0_i32 = arith.constant 0 : i32
    %c0_i32_0 = arith.constant 0 : i32
    return %c0_i32, %arg1 : i32, i32
  }
  func.func @transform_6(%arg0: i32, %arg1: i32) -> (i32, i32) {
    %c0_i32 = arith.constant 0 : i32
    return %arg0, %arg1 : i32, i32
  }
}

</mosaic_0001>

<bundles_post_ra>
// kernel: onsets_and_frames_tf_forward.15
= control target key start
LH: loop header
LB: loop body
LE: loop exit
PB: predicated region body
PF: predicated region fallthrough
CT: control target
= control target key end

     0   :  { %s230_s1 = inlined_call_operand.vmem [shape: bf16[128,128], index: 1, kind: input, shape index: {}]   ;;  %s231_s2 = inlined_call_operand.vmem [shape: f32[1,128], index: 2, kind: input, shape index: {}]   ;;  %s232_s0 = inlined_call_operand.vmem [shape: bf16[16,128], index: 0, kind: input, shape index: {}]   ;;  %s233_s3 = inlined_call_operand.vmem [shape: f32[16,128], index: 3, kind: input, shape index: {}]   ;;  %s234_s4 = inlined_call_operand.vmem [shape: f32[16,128], index: 4, kind: output, shape index: {}]  }
   0x1   :  { %v161_v0 = vld [vmem:[%s230_s1 + $0x38] sm:$0xff]  ;;  %v160_v1 = vld [vmem:[%s230_s1 + $0x30] sm:$0xff]  ;;  %v159_v2 = vld [vmem:[%s230_s1 + $0x28] sm:$0xff] }
   0x2   :  { %93 = vmatpush.bf16.msra.mxu0 %v161_v0  ;;  %v158_v3 = vld [vmem:[%s230_s1 + $0x20] sm:$0xff]  ;;  %v157_v4 = vld [vmem:[%s230_s1 + $0x18] sm:$0xff]  ;;  %v156_v5 = vld [vmem:[%s230_s1 + $0x10] sm:$0xff] }
   0x3   :  { %v155_v6 = vld [vmem:[%s230_s1 + $0x8] sm:$0xff]  ;;  %v154_v7 = vld [vmem:[%s230_s1] sm:$0xff] }
   0x4   :  { %v153_v8 = vld [vmem:[%s232_s0] sm:$0xff]  ;;  %v108_v15 = vld [vmem:[%s233_s3 + $0x8] sm:$0xff] }
   0x5   :  { %v162_v9 = vld [vmem:[%s231_s2] ss:$0 sm:$0xff] }
   0x6   :  { %94 = vmatpush.bf16.msra.mxu0 %v160_v1  ;;  %v107_v11 = vld [vmem:[%s233_s3] sm:$0xff] }
   0xa   :  { %95 = vmatpush.bf16.msra.mxu0 %v159_v2 }
   0xe   :  { %96 = vmatpush.bf16.msra.mxu0 %v158_v3 }
  0x12   :  { %97 = vmatpush.bf16.msra.mxu0 %v157_v4 }
  0x16   :  { %98 = vmatpush.bf16.msra.mxu0 %v156_v5 }
  0x1a   :  { %99 = vmatpush.bf16.msra.mxu0 %v155_v6 }
  0x1e   :  { %100 = vmatpush.bf16.msra.mxu0 %v154_v7 }
  0x21   :  { %101 = vmatmul.bf16.vlgmr.msra.gmra.mxu0 %v153_v8 }
  0x9e   :  { %v102_v10 = vpop.f32.mrf.mxu0 }
  0x9f   :  { %v103_v12 = vadd.f32 %v162_v9, %v102_v10 }
  0xa1   :  { %v109_v13 = vadd.f32 %v107_v11, %v103_v12 }
  0xa3   :  { %111 = vst [vmem:[%s234_s4] sm:$0xff] %v109_v13 }
  0xa6   :  { %v104_v14 = vpop.f32.mrf.mxu0 }
  0xa7   :  { %v105_v16 = vadd.f32 %v162_v9, %v104_v14 }
  0xa9   :  { %v110_v17 = vadd.f32 %v108_v15, %v105_v16 }
  0xab   :  { %112 = vst [vmem:[%s234_s4 + $0x8] sm:$0xff] %v110_v17 }

// kernel: onsets_and_frames_tf_forward.13
= control target key start
LH: loop header
LB: loop body
LE: loop exit
PB: predicated region body
PF: predicated region fallthrough
CT: control target
= control target key end

     0   :  { %s849_s18 = smov 0   ;;  %s851_s19 = smov 0   ;;  %s968_s0 = inlined_call_operand.vmem [shape: f32[16,128], index: 0, kind: input, shape index: {}]   ;;  %s969_s1 = inlined_call_operand.vmem [shape: bf16[128,384], index: 1, kind: input, shape index: {}]   ;;  %s970_s2 = inlined_call_operand.vmem [shape: f32[1,384], index: 2, kind: input, shape index: {}]   ;;  %s971_s3 = inlined_call_operand.vmem [shape: f32[1,128], index: 3, kind: input, shape index: {}]   ;;  %s972_s4 = inlined_call_operand.vmem [shape: f32[1,128], index: 4, kind: input, shape index: {}]   ;;  %s973_s5 = inlined_call_operand.vmem [shape: bf16[16,384], index: 5, kind: output, shape index: {}]  }
   0x1   :  { %s853_s20 = smov 0   ;;  %s855_s21 = smov 0  }
   0x2   :  { %s857_s22 = smov 0  }
   0x3 LB: > { %s24_s23 = sadd.s32 1, %s812_s21  ;;  %s669_s24 = sadd.s32 4294967295, %s816_s22   ;;  %s816_s22 = sphi %s857_s22, %s15_s22   ;;  %s812_s21 = sphi %s855_s21, %s978_s21   ;;  %s808_s20 = sphi %s853_s20, %s977_s20   ;;  %s804_s19 = sphi %s851_s19, %s976_s19   ;;  %s800_s18 = sphi %s849_s18, %s975_s18  }
   0x4   : > { %p25_p0 = scmp.ge.s32.totalorder %s24_s23, 3  ;;  %p67_p1 = scmp.ne.s32.totalorder %s804_s19, %s800_s18 }
   0x5   : > { %p68_p2 = scmp.eq.s32.totalorder %s816_s22, 0  ;;  %p167_p4 = scmp.eq.s32.totalorder %s669_s24, 2 }
   0x6   : > { %s980_s23 = smov (%p25_p0, %s24_s23), 0  ;;  %s60_s26 = sadd.s32 1, %s804_s19 }
   0x7   : > { %p69_p3 = por %p68_p2, %p67_p1  ;;  %s57_s25 = ssub.s32 %s812_s21, %s980_s23 }
   0x8   : > { %p58_p5 = scmp.eq.s32.totalorder %s57_s25, 0  ;;  %p884_p6 = por %p167_p4, %p67_p1 }
   0x9   : > { %p673_p7 = scmp.ge.s32.totalorder %s816_s22, 3 }
   0xa   : > { %s889_s28 = scalar_select %p58_p5, %s804_s19, %s60_s26  }
   0xb   : > { %204 = sbr.rel (%p673_p7) target bundleno = 36 (0x24), region = 28 }
  0x10   : > { %207 = sbr.rel (!%p69_p3) target bundleno = 36 (0x24), region = 32  ;;  %s209_s29 = sand.u32 (%p69_p3), 1, %s804_s19  }
  0x11   : > { %s675_s30 = sshll.u32 (%p69_p3), %s812_s21, 2  ;;  %s674_s6 = sshll.u32 (%p69_p3), %s209_s29, 6 }
  0x12   : > { %s897_s9 = scalar_lea.vmem (%p69_p3), %s969_s1, %s675_s30  ;;  %s211_s10 = scalar_lea.vmem (%p69_p3), [#allocation2], %s674_s6 }
  0x13   : > { %v230_v0 = vld [vmem:[%s897_s9] sm:$0xf] (%p69_p3)  ;;  %v232_v1 = vld [vmem:[%s897_s9 + $0xc] sm:$0xf] (%p69_p3)  ;;  %v234_v2 = vld [vmem:[%s897_s9 + $0x18] sm:$0xf] (%p69_p3) }
  0x14   : > { %231 = vst [vmem:[%s211_s10] sm:$0xf] (%p69_p3), %v230_v0  ;;  %v236_v3 = vld [vmem:[%s897_s9 + $0x24] sm:$0xf] (%p69_p3)  ;;  %v238_v4 = vld [vmem:[%s897_s9 + $0x30] sm:$0xf] (%p69_p3) }
  0x15   : > { %233 = vst [vmem:[%s211_s10 + $0x4] sm:$0xf] %v232_v1  ;;  %v240_v5 = vld [vmem:[%s897_s9 + $0x3c] sm:$0xf]  ;;  %v242_v6 = vld [vmem:[%s897_s9 + $0x48] sm:$0xf] }
  0x16   : > { %235 = vst [vmem:[%s211_s10 + $0x8] sm:$0xf] %v234_v2  ;;  %v244_v7 = vld [vmem:[%s897_s9 + $0x54] sm:$0xf]  ;;  %v246_v8 = vld [vmem:[%s897_s9 + $0x60] sm:$0xf] }
  0x17   : > { %237 = vst [vmem:[%s211_s10 + $0xc] sm:$0xf] %v236_v3  ;;  %v248_v9 = vld [vmem:[%s897_s9 + $0x6c] sm:$0xf]  ;;  %v250_v10 = vld [vmem:[%s897_s9 + $0x78] sm:$0xf] }
  0x18   : > { %239 = vst [vmem:[%s211_s10 + $0x10] sm:$0xf] %v238_v4  ;;  %v252_v11 = vld [vmem:[%s897_s9 + $0x84] sm:$0xf]  ;;  %v254_v12 = vld [vmem:[%s897_s9 + $0x90] sm:$0xf] }
  0x19   : > { %241 = vst [vmem:[%s211_s10 + $0x14] sm:$0xf] %v240_v5  ;;  %v256_v13 = vld [vmem:[%s897_s9 + $0x9c] sm:$0xf]  ;;  %v258_v14 = vld [vmem:[%s897_s9 + $0xa8] sm:$0xf] }
  0x1a   : > { %243 = vst [vmem:[%s211_s10 + $0x18] sm:$0xf] %v242_v6  ;;  %v260_v15 = vld [vmem:[%s897_s9 + $0xb4] sm:$0xf] }
  0x1b   : > { %245 = vst [vmem:[%s211_s10 + $0x1c] sm:$0xf] %v244_v7 }
  0x1c   : > { %247 = vst [vmem:[%s211_s10 + $0x20] sm:$0xf] %v246_v8 }
  0x1d   : > { %249 = vst [vmem:[%s211_s10 + $0x24] sm:$0xf] %v248_v9 }
  0x1e   : > { %251 = vst [vmem:[%s211_s10 + $0x28] sm:$0xf] %v250_v10 }
  0x1f   : > { %253 = vst [vmem:[%s211_s10 + $0x2c] sm:$0xf] %v252_v11 }
  0x20   : > { %255 = vst [vmem:[%s211_s10 + $0x30] sm:$0xf] %v254_v12 }
  0x21   : > { %257 = vst [vmem:[%s211_s10 + $0x34] sm:$0xf] %v256_v13 }
  0x22   : > { %259 = vst [vmem:[%s211_s10 + $0x38] sm:$0xf] %v258_v14 }
  0x23   : > { %261 = vst [vmem:[%s211_s10 + $0x3c] sm:$0xf] %v260_v15 }
  0x24 PF: > { %p676_p8 = scmp.ge.s32.totalorder %s816_s22, 1  ;;  %p322_p9 = scmp.lt.s32.totalorder %s816_s22, 4 }
  0x26   : > { %p323_p10 = pnand %p676_p8, %p322_p9 }
  0x27   : > { %p369_p11 = scmp.lt.s32.totalorder (!%p323_p10), %s808_s20, 2  ;;  %s329_s25 = sand.u32 (!%p323_p10), 1, %s800_s18  }
  0x28   : > { %326 = sbr.rel (%p323_p10) target bundleno = 470 (0x1d6), region = 77  ;;  %s677_s26 = sshll.u32 (!%p323_p10), %s329_s25, 6 }
  0x29   : > { %s331_s29 = scalar_lea.vmem (!%p323_p10), [#allocation2], %s677_s26  ;;  %s678_s11 = sshll.u32 (!%p323_p10), %s329_s25, 3 }
  0x2a   : > { %s362_s12 = scalar_lea.vmem (!%p323_p10), [#allocation3], %s678_s11 }
  0x2d   : > { %v373_v16 = vld [vmem:[%s968_s0] sm:$0xff]  ;;  %v374_v17 = vld [vmem:[%s968_s0 + $0x8] sm:$0xff]  ;;  %v818_v18 = vmov 128.0   ;;  %s925_s15 = scalar_select %p369_p11, %s808_s20, 2  ;;  %v722_v33 = vld [vmem:[%s331_s29 + $0x38] sm:$0xff] }
  0x2e   : > { %375 = vadd.xlane.f32.xlu0 %v373_v16  ;;  %772 = vrcp.f32 %v818_v18  ;;  %503 = vmatpush.bf16.msra.mxu0 %v722_v33  ;;  %v721_v34 = vld [vmem:[%s331_s29 + $0x30] sm:$0xff]  ;;  %v720_v35 = vld [vmem:[%s331_s29 + $0x28] sm:$0xff]  ;;  %v719_v36 = vld [vmem:[%s331_s29 + $0x20] sm:$0xff]  ;;  %s712_s13 = sshll.u32 (%p884_p6), %s808_s20, 2 }
  0x2f   : > { %s371_s24 = scalar_lea.vmem %s970_s2, %s925_s15  ;;  %v718_v37 = vld [vmem:[%s331_s29 + $0x18] sm:$0xff]  ;;  %v717_v38 = vld [vmem:[%s331_s29 + $0x10] sm:$0xff]  ;;  %v716_v39 = vld [vmem:[%s331_s29 + $0x8] sm:$0xff]  ;;  %s532_s15 = scalar_lea.vmem (%p884_p6), %s973_s5, %s712_s13 }
  0x30   : > { %v715_v41 = vld [vmem:[%s331_s29] sm:$0xff] }
  0x31   : > { %v769_v60 = vld [vmem:[%s971_s3] ss:$0 sm:$0xff] }
  0x32   : > { %504 = vmatpush.bf16.msra.mxu0 %v721_v34  ;;  %v770_v1 = vld [vmem:[%s972_s4] ss:$0 sm:$0xff] }
  0x33   : > { %v771_v7 = vld [vmem:[%s371_s24] ss:$0 sm:$0xff] }
  0x34   : > { %v773_v19 = vpop.eup %772 }
  0x35   : > { %v380_v20 = vmul.f32 128.0, %v773_v19  ;;  %vm384_vm0 = vweird.f32 %v773_v19 }
  0x36   : > { %377 = vadd.xlane.f32.xlu0 %v374_v17  ;;  %505 = vmatpush.bf16.msra.mxu0 %v720_v35 }
  0x37   : > { %v381_v21 = vsub.f32 1.0, %v380_v20 }
  0x39   : > { %v382_v22 = vmul.f32 %v773_v19, %v381_v21 }
  0x3a   : > { %506 = vmatpush.bf16.msra.mxu0 %v719_v36 }
  0x3b   : > { %v383_v23 = vadd.f32 %v773_v19, %v382_v22 }
  0x3d   : > { %v385_v24 = vsel %vm384_vm0, %v773_v19, %v383_v23 }
  0x3e   : > { %507 = vmatpush.bf16.msra.mxu0 %v718_v37 }
  0x42   : > { %508 = vmatpush.bf16.msra.mxu0 %v717_v38 }
  0x46   : > { %509 = vmatpush.bf16.msra.mxu0 %v716_v39 }
  0x4a   : > { %510 = vmatpush.bf16.msra.mxu0 %v715_v41 }
  0xa1   : > { %v376_v25 = vpop.xlane.xlu0 %375 }
  0xa2   : > { %v386_v26 = vmul.f32 %v385_v24, %v376_v25 }
  0xa4   : > { %v388_v27 = vsub.f32 %v373_v16, %v386_v26 }
  0xa6   : > { %v390_v28 = vmul.f32 %v388_v27, %v388_v27 }
  0xa8   : > { %392 = vadd.xlane.f32.xlu1 %v390_v28 }
  0xa9   : > { %v378_v29 = vpop.xlane.xlu0 %377 }
  0xaa   : > { %v387_v30 = vmul.f32 %v385_v24, %v378_v29 }
  0xac   : > { %v389_v31 = vsub.f32 %v374_v17, %v387_v30 }
  0xae   : > { %v391_v32 = vmul.f32 %v389_v31, %v389_v31 }
  0xb0   : > { %394 = vadd.xlane.f32.xlu1 %v391_v32 }
 0x11b   : > { %v393_v40 = vpop.xlane.xlu1 %392 }
 0x11c   : > { %v396_v42 = vmul.f32 %v393_v40, %v385_v24 }
 0x11e   : > { %v398_v43 = vadd.f32 1e-05, %v396_v42 }
 0x120   : > { %774 = vrsqrt.f32 %v398_v43  ;;  %vm406_vm2 = vweird.f32 %v398_v43 }
 0x123   : > { %v395_v44 = vpop.xlane.xlu1 %394 }
 0x124   : > { %v397_v45 = vmul.f32 %v395_v44, %v385_v24 }
 0x126   : > { %v775_v46 = vpop.eup %774  ;;  %v399_v47 = vadd.f32 1e-05, %v397_v45 }
 0x127   : > { %v401_v48 = vmul.f32 %v775_v46, %v398_v43  ;;  %vm407_vm1 = vweird.f32 %v775_v46 }
 0x128   : > { %776 = vrsqrt.f32 %v399_v47  ;;  %vm408_vm3 = vmor %vm406_vm2, %vm407_vm1  ;;  %vm416_vm5 = vweird.f32 %v399_v47 }
 0x129   : > { %v402_v49 = vmul.f32 %v775_v46, %v401_v48 }
 0x12b   : > { %v403_v50 = vmul.f32 0.5, %v402_v49 }
 0x12d   : > { %v404_v51 = vsub.f32 1.5, %v403_v50 }
 0x12e   : > { %v777_v52 = vpop.eup %776 }
 0x12f   : > { %v405_v53 = vmul.f32 %v775_v46, %v404_v51  ;;  %v411_v54 = vmul.f32 %v777_v52, %v399_v47  ;;  %vm417_vm4 = vweird.f32 %v777_v52 }
 0x130   : > { %vm418_vm6 = vmor %vm416_vm5, %vm417_vm4 }
 0x131   : > { %v412_v55 = vmul.f32 %v777_v52, %v411_v54  ;;  %v409_v57 = vsel %vm408_vm3, %v775_v46, %v405_v53 }
 0x132   : > { %v420_v59 = vmul.f32 %v409_v57, %v388_v27 }
 0x133   : > { %v413_v56 = vmul.f32 0.5, %v412_v55 }
 0x134   : > { %v426_v0 = vmul.f32 %v769_v60, %v420_v59 }
 0x135   : > { %v414_v58 = vsub.f32 1.5, %v413_v56 }
 0x136   : > { %v432_v3 = vadd.f32 %v770_v1, %v426_v0 }
 0x137   : > { %v415_v61 = vmul.f32 %v777_v52, %v414_v58 }
 0x139   : > { %v419_v62 = vsel %vm418_vm6, %v777_v52, %v415_v61 }
 0x13a   : > { %v421_v63 = vmul.f32 %v419_v62, %v389_v31 }
 0x13c   : > { %v427_v2 = vmul.f32 %v769_v60, %v421_v63 }
 0x13e   : > { %v433_v4 = vadd.f32 %v770_v1, %v427_v2 }
 0x140   : > { %v434_v5 = vpack.c.bf16 %v433_v4, %v432_v3 }
 0x142   : > { %511 = vmatmul.bf16.vlgmr.msra.gmra.mxu0 %v434_v5 }
 0x1bf   : > { %v512_v6 = vpop.f32.mrf.mxu0 }
 0x1c0   : > { %v513_v9 = vadd.f32 %v771_v7, %v512_v6 }
 0x1c7   : > { %v514_v8 = vpop.f32.mrf.mxu0 }
 0x1c8   : > { %v515_v10 = vadd.f32 %v771_v7, %v514_v8  ;;  %527 = sbr.rel (!%p884_p6) target bundleno = 470 (0x1d6), region = 85 }
 0x1ca   : > { %v726_v11 = vpack.c.bf16 %v515_v10, %v513_v9 }
 0x1cc   : > { %727 = vst [vmem:[%s362_s12] sm:$0xff] %v726_v11  }
 0x1d3   : > { %v549_v12 = vld [vmem:[%s362_s12] sm:$0xf]  ;;  %v551_v13 = vld [vmem:[%s362_s12 + $0x4] sm:$0xf] }
 0x1d4   : > { %550 = vst [vmem:[%s532_s15] sm:$0xf] %v549_v12 }
 0x1d5   : > { %552 = vst [vmem:[%s532_s15 + $0xc] sm:$0xf] %v551_v13 }
 0x1d6 PF: > { %s15_s22 = sadd.s32 1, %s816_s22   ;;  %s975_s18 = smov %s804_s19 }
 0x1d7   : > { %p12_p12 = scmp.ge.s32.totalorder %s15_s22, 5   ;;  %s976_s19 = smov %s889_s28 }
 0x1d8   : > { %s977_s20 = smov %s812_s21  ;;  %s978_s21 = smov %s980_s23 }
 0x1d9   :  { %14 = sbr.rel (!%p12_p12) target bundleno = 3 (0x3), region = 163 }

// kernel: onsets_and_frames_tf_forward.12
= control target key start
LH: loop header
LB: loop body
LE: loop exit
PB: predicated region body
PF: predicated region fallthrough
CT: control target
= control target key end

     0   :  { %s223_s1 = inlined_call_operand.vmem [shape: bf16[128,128], index: 1, kind: input, shape index: {}]   ;;  %s224_s2 = inlined_call_operand.vmem [shape: f32[1,128], index: 2, kind: input, shape index: {}]   ;;  %s225_s0 = inlined_call_operand.vmem [shape: f32[16,128], index: 0, kind: input, shape index: {}]   ;;  %s226_s3 = inlined_call_operand.vmem [shape: f32[16,128], index: 3, kind: input, shape index: {}]   ;;  %s227_s4 = inlined_call_operand.vmem [shape: f32[16,128], index: 4, kind: output, shape index: {}]  }
   0x1   :  { %v151_v0 = vld [vmem:[%s223_s1 + $0x38] sm:$0xff]  ;;  %v150_v1 = vld [vmem:[%s223_s1 + $0x30] sm:$0xff]  ;;  %v149_v2 = vld [vmem:[%s223_s1 + $0x28] sm:$0xff] }
   0x2   :  { %88 = vmatpush.bf16.msra.mxu0 %v151_v0  ;;  %v148_v3 = vld [vmem:[%s223_s1 + $0x20] sm:$0xff]  ;;  %v147_v4 = vld [vmem:[%s223_s1 + $0x18] sm:$0xff]  ;;  %v146_v5 = vld [vmem:[%s223_s1 + $0x10] sm:$0xff] }
   0x3   :  { %v145_v6 = vld [vmem:[%s223_s1 + $0x8] sm:$0xff]  ;;  %v144_v7 = vld [vmem:[%s223_s1] sm:$0xff] }
   0x4   :  { %v17_v8 = vld [vmem:[%s225_s0] sm:$0xff]  ;;  %v18_v9 = vld [vmem:[%s225_s0 + $0x8] sm:$0xff] }
   0x5   :  { %v19_v10 = vpack.c.bf16 %v18_v9, %v17_v8  ;;  %v152_v11 = vld [vmem:[%s224_s2] ss:$0 sm:$0xff]  ;;  %v103_v17 = vld [vmem:[%s226_s3 + $0x8] sm:$0xff] }
   0x6   :  { %89 = vmatpush.bf16.msra.mxu0 %v150_v1  ;;  %v102_v13 = vld [vmem:[%s226_s3] sm:$0xff] }
   0xa   :  { %90 = vmatpush.bf16.msra.mxu0 %v149_v2 }
   0xe   :  { %91 = vmatpush.bf16.msra.mxu0 %v148_v3 }
  0x12   :  { %92 = vmatpush.bf16.msra.mxu0 %v147_v4 }
  0x16   :  { %93 = vmatpush.bf16.msra.mxu0 %v146_v5 }
  0x1a   :  { %94 = vmatpush.bf16.msra.mxu0 %v145_v6 }
  0x1e   :  { %95 = vmatpush.bf16.msra.mxu0 %v144_v7 }
  0x21   :  { %96 = vmatmul.bf16.vlgmr.msra.gmra.mxu0 %v19_v10 }
  0x9e   :  { %v97_v12 = vpop.f32.mrf.mxu0 }
  0x9f   :  { %v98_v14 = vadd.f32 %v152_v11, %v97_v12 }
  0xa1   :  { %v104_v15 = vadd.f32 %v102_v13, %v98_v14 }
  0xa3   :  { %106 = vst [vmem:[%s227_s4] sm:$0xff] %v104_v15 }
  0xa6   :  { %v99_v16 = vpop.f32.mrf.mxu0 }
  0xa7   :  { %v100_v18 = vadd.f32 %v152_v11, %v99_v16 }
  0xa9   :  { %v105_v19 = vadd.f32 %v103_v17, %v100_v18 }
  0xab   :  { %107 = vst [vmem:[%s227_s4 + $0x8] sm:$0xff] %v105_v19 }

// kernel: tile.14
= control target key start
LH: loop header
LB: loop body
LE: loop exit
PB: predicated region body
PF: predicated region fallthrough
CT: control target
= control target key end

     0   :  { %s22_s0 = inlined_call_operand.vmem [shape: f32[4], index: 0, kind: input, shape index: {}]   ;;  %s23_s1 = inlined_call_operand.vmem [shape: f32[8,4], index: 1, kind: output, shape index: {}]  }
   0x1   :  { %v4_v0 = vld [vmem:[%s22_s0] ss:$0 sm:$0xff] }
   0x2   :  { %5 = vst [vmem:[%s23_s1] sm:$0xff] %v4_v0 }

// kernel: onsets_and_frames_tf_forward.14
= control target key start
LH: loop header
LB: loop body
LE: loop exit
PB: predicated region body
PF: predicated region fallthrough
CT: control target
= control target key end

     0   :  { %s854_s9 = smov 0   ;;  %s856_s10 = smov 0   ;;  %s982_s0 = inlined_call_operand.vmem [shape: bf16[2,8,384], index: 0, kind: input, shape index: {}, may-alias: {0,1}]   ;;  %s983_s1 = inlined_call_operand.vmem [shape: bf16[2,8,384], index: 1, kind: input, shape index: {}, may-alias: {0,1}]   ;;  %s984_s2 = inlined_call_operand.vmem [shape: bf16[2,8,128], index: 2, kind: output, shape index: {}]  }
   0x1   :  { %s858_s11 = smov 0  }
   0x2 LB: > { %s31_s12 = sadd.s32 1, %s827_s10  ;;  %p737_p0 = scmp.ge.s32.totalorder %s831_s11, 1  ;;  %s831_s11 = sphi %s858_s11, %s12_s11   ;;  %s827_s10 = sphi %s856_s10, %s986_s10   ;;  %s823_s9 = sphi %s854_s9, %s985_s9  }
   0x3   : > { %p33_p1 = scmp.ge.s32.totalorder %s31_s12, 2  ;;  %p155_p2 = scmp.lt.s32.totalorder %s831_s11, 3 }
   0x5   : > { %s988_s12 = smov (%p33_p1, %s31_s12), 0  ;;  %p156_p3 = pnand %p737_p0, %p155_p2 }
   0x6   : > { %p192_p4 = scmp.lt.s32.totalorder (!%p156_p3), %s823_s9, 1  ;;  %s834_s20 = smov (!%p156_p3), 64  }
   0x7   : > { %159 = sbr.rel (%p156_p3) target bundleno = 1140 (0x474), region = 28  ;;  %s835_s21 = smov (!%p156_p3), 32  }
   0x8   : > { %s836_s22 = smov (!%p156_p3), 96  }
   0xc   : > { %s990_s9 = smov (!%p192_p4, %s823_s9), 1  ;;  %vm231_vm0 = vcmask 261120   ;;  %vm222_vm1 = vcmask 7168   ;;  %v833_v5 = vmov -inf   ;;  %vm264_vm2 = vcmask 64512  }
   0xd   : > { %s751_s13 = smul.u32 12, %s990_s9  ;;  %223 = vst.msk [vmem:[#allocation2] sm:$0xff] %vm222_vm1, %v833_v5  ;;  %v837_v12 = vmov 0   ;;  %v838_v13 = vmov 0.0   ;;  %vm299_vm3 = vcmask 1043456   ;;  %vm623_vm4 = vcmask 523264  }
   0xe   : > { %224 = vst.msk [vmem:[#allocation2 + $0x8] sm:$0xff] %vm222_vm1, %v833_v5  ;;  %782 = vset.pattern.permute.xlu1 %v837_v12  ;;  %783 = vset.pattern.permute.xlu2 %v837_v12  ;;  %s740_s23 = sshll.u32 %s990_s9, 2  ;;  %vm625_vm5 = vcmask 785408  }
   0xf   : > { %s878_s16 = scalar_lea.vmem %s983_s1, %s751_s13  ;;  %s200_s19 = scalar_lea.vmem %s982_s0, %s751_s13  ;;  %225 = vst.msk [vmem:[#allocation2 + $0x10] sm:$0xff] %vm222_vm1, %v833_v5  ;;  %784 = vset.pattern.permute.xlu0 %v837_v12 }
  0x10   : > { %v237_v0 = vld [vmem:[%s878_s16] sm:$0xff]  ;;  %226 = vst.msk [vmem:[#allocation2 + $0x18] sm:$0xff] %vm222_vm1, %v833_v5  ;;  %v238_v21 = vld [vmem:[%s878_s16 + $0x8] sm:$0xf]  ;;  %s216_s26 = scalar_lea.vmem %s984_s2, %s740_s23 }
  0x11   : > { %v240_v1 = vunpack.c.h.b16 %v237_v0  ;;  %v236_v4 = vld [vmem:[%s200_s19] sm:$0xff]  ;;  %227 = vst.msk [vmem:[#allocation3] sm:$0xff] %vm222_vm1, %v838_v13  ;;  %v301_v22 = vsel %vm299_vm3, %v238_v21, 0  ;;  %v381_v47 = vunpack.c.l.b16 %v238_v21 }
  0x12   : > { %v320_v10 = vunpack.c.l.b16 %v236_v4  ;;  %228 = vst.msk [vmem:[#allocation3 + $0x8] sm:$0xff] %vm222_vm1, %v838_v13  ;;  %310 = vmatpush.bf16.msra.mxu1 %v301_v22 }
  0x13   : > { %v241_v2 = vpack.c.b16 %v240_v1, %v240_v1  ;;  %229 = vst.msk [vmem:[#allocation3 + $0x10] sm:$0xff] %vm222_vm1, %v838_v13  ;;  %v382_v49 = vpack.c.b16 %v381_v47, %v381_v47 }
  0x14   : > { %v321_v11 = vpack.c.b16 %v320_v10, %v320_v10  ;;  %230 = vst.msk [vmem:[#allocation3 + $0x18] sm:$0xff] %vm222_vm1, %v838_v13  ;;  %v903_v14 = vld [vmem:[#allocation2] sm:$0xff] }
  0x15   : > { %v247_v3 = vsel %vm231_vm0, %v241_v2, 0  ;;  %409 = vrot.lane.b32.xlu2 %v241_v2, %s834_s20  ;;  %232 = vst.msk [vmem:[#allocation4] sm:$0xff] %vm231_vm0, %v838_v13  ;;  %v347_v55 = vld [vmem:[#allocation2 + $0x8] sm:$0xff] }
  0x16   : > { %256 = vmatpush.bf16.xpose.msra.mxu0 %v247_v3  ;;  %233 = vst.msk [vmem:[#allocation4 + $0x8] sm:$0xff] %vm231_vm0, %v838_v13  ;;  %v432_v58 = vld [vmem:[#allocation2 + $0x10] sm:$0xff] }
  0x17   : > { %234 = vst.msk [vmem:[#allocation4 + $0x10] sm:$0xff] %vm231_vm0, %v838_v13  ;;  %v514_v51 = vld [vmem:[#allocation2 + $0x18] sm:$0xff] }
  0x18   : > { %235 = vst.msk [vmem:[#allocation4 + $0x18] sm:$0xff] %vm231_vm0, %v838_v13  ;;  %v280_v5 = vld [vmem:[#allocation3] sm:$0xff] }
  0x1d   : > { %741 = vmatmul.msk.bf16.vlgmr.msra.gmra.mxu0 %vm231_vm0, %v236_v4  ;;  %491 = vrot.lane.b32.xlu2 %v241_v2, %s835_s21 }
  0x25   : > { %489 = vrot.lane.b32.xlu2 %v321_v11, %s835_s21 }
  0x6f   : > { %v410_v20 = vpop.permute.xlu2 %409 }
  0x70   : > { %v415_v23 = vsel %vm231_vm0, %v410_v20, 0 }
  0x71   : > { %424 = vmatpush.bf16.xpose.msrb.mxu1 %v415_v23 }
  0x77   : > { %v492_v24 = vpop.permute.xlu2 %491 }
  0x78   : > { %v497_v25 = vsel %vm231_vm0, %v492_v24, 0 }
  0x79   : > { %506 = vmatpush.bf16.xpose.msrb.mxu0 %v497_v25 }
  0x7f   : > { %v490_v26 = vpop.permute.xlu2 %489 }
  0x80   : > { %747 = vmatmul.msk.bf16.vlgmr.msrb.gmra.mxu0 %vm231_vm0, %v490_v26  ;;  %v288_v26 = vld [vmem:[#allocation4] sm:$0xff] }
  0x9a   : > { %v258_v6 = vpop.f32.mrf.mxu0 }
  0x9b   : > { %v262_v7 = vmul.f32 0.17677669, %v258_v6 }
  0x9d   : > { %v265_v8 = vsel %vm264_vm2, %v262_v7, -inf }
  0x9e   : > { %266 = vmax.xlane.f32.xlu0 %v265_v8 }
  0xa2   : > { %v260_v9 = vpop.f32.mrf.mxu0 }
  0xb2   : > { %324 = vrot.lane.b32.xlu0 %v241_v2, %s836_s22 }
  0xfd   : > { %v508_v34 = vpop.f32.mrf.mxu0 }
  0xfe   : > { %v924_v35 = vmul.f32 0.17677669, %v508_v34 }
 0x100   : > { %v515_v36 = vsel %vm264_vm2, %v924_v35, -inf }
 0x101   : > { %516 = vmax.xlane.f32.xlu0 %v515_v36 }
 0x105   : > { %v510_v37 = vpop.f32.mrf.mxu0 }
 0x111   : > { %v267_v15 = vpop.xlane.xlu0 %266 }
 0x112   : > { %v906_v16 = vmax.f32 %v903_v14, %v267_v15 }
 0x114   : > { %v269_v17 = vsub.f32 %v903_v14, %v906_v16  ;;  %318 = vst.msk [vmem:[#allocation2] sm:$0xff] %vm222_vm1, %v906_v16  ;;  %274 = vperm.xlu1 %782, %v906_v16  }
 0x116   : > { %v270_v60 = vmul.f32 1.442695, %v269_v17 }
 0x11c   : > { %322 = vrot.lane.b32.xlu1 %v321_v11, %s836_s22 }
 0x124   : > { %407 = vrot.lane.b32.xlu1 %v321_v11, %s834_s20  ;;  %v325_v18 = vpop.permute.xlu0 %324 }
 0x125   : > { %v330_v19 = vsel %vm231_vm0, %v325_v18, 0 }
 0x126   : > { %339 = vmatpush.bf16.xpose.msra.mxu2 %v330_v19 }
 0x174   : > { %v517_v52 = vpop.xlane.xlu0 %516 }
 0x175   : > { %v518_v53 = vmax.f32 %v514_v51, %v517_v52 }
 0x177   : > { %v519_v54 = vsub.f32 %v514_v51, %v518_v53  ;;  %570 = vst.msk [vmem:[#allocation2 + $0x18] sm:$0xff] %vm222_vm1, %v518_v53 }
 0x179   : > { %v520_v25 = vmul.f32 1.442695, %v519_v54 }
 0x186   : > { %v275_v27 = vpop.permute.xlu1 %274 }
 0x187   : > { %v277_v28 = vsub.f32 %v262_v7, %v275_v27 }
 0x189   : > { %v278_v29 = vmul.f32 1.442695, %v277_v28 }
 0x18b   : > { %785 = vpow2.f32 %v278_v29 }
 0x18c   : > { %787 = vpow2.f32 %v270_v60 }
 0x18e   : > { %v323_v30 = vpop.permute.xlu1 %322 }
 0x18f   : > { %743 = vmatmul.msk.bf16.vlgmr.msra.gmra.mxu2 %vm231_vm0, %v323_v30 }
 0x191   : > { %v786_v31 = vpop.eup %785 }
 0x192   : > { %v295_v32 = vpack.c.bf16 %v786_v31, %v786_v31  ;;  %v282_v50 = vsel %vm264_vm2, %v786_v31, 0.0  ;;  %v788_v1 = vpop.eup %787 }
 0x193   : > { %v281_v7 = vmul.f32 %v788_v1, %v280_v5 }
 0x194   : > { %742 = vmatmul.msk.bf16.vlgmr.msra.gmra.mxu1 %vm264_vm2, %v295_v32 }
 0x196   : > { %v408_v33 = vpop.permute.xlu1 %407 }
 0x1a4   : > { %745 = vmatmul.msk.bf16.vlgmr.msrb.gmra.mxu1 %vm231_vm0, %v408_v33 }
 0x211   : > { %v928_v38 = vpop.f32.mrf.mxu1 }
 0x212   : > { %v341_v39 = vpop.f32.mrf.mxu2 }
 0x213   : > { %v345_v40 = vmul.f32 0.17677669, %v341_v39 }
 0x215   : > { %v348_v41 = vsel %vm264_vm2, %v345_v40, -inf }
 0x216   : > { %349 = vmax.xlane.f32.xlu1 %v348_v41  ;;  %v364_v41 = vld [vmem:[#allocation3 + $0x8] sm:$0xff] }
 0x219   : > { %v314_v42 = vpop.f32.mrf.mxu1 }
 0x21a   : > { %v343_v43 = vpop.f32.mrf.mxu2 }
 0x221   : > { %v426_v44 = vpop.f32.mrf.mxu1 }
 0x222   : > { %v931_v45 = vmul.f32 0.17677669, %v426_v44 }
 0x224   : > { %v433_v46 = vsel %vm264_vm2, %v931_v45, -inf }
 0x225   : > { %434 = vmax.xlane.f32.xlu2 %v433_v46 }
 0x229   : > { %v428_v48 = vpop.f32.mrf.mxu1 }
 0x22f   : > { %383 = vrot.lane.b32.xlu1 %v382_v49, %s836_s22 }
 0x237   : > { %465 = vrot.lane.b32.xlu1 %v382_v49, %s834_s20 }
 0x261   : > { %283 = vadd.xlane.f32.xlu1 %v282_v50  ;;  %v372_v50 = vld [vmem:[#allocation4 + $0x8] sm:$0xff] }
 0x289   : > { %v350_v56 = vpop.xlane.xlu1 %349 }
 0x28a   : > { %v351_v57 = vmax.f32 %v347_v55, %v350_v56 }
 0x28c   : > { %406 = vst.msk [vmem:[#allocation2 + $0x8] sm:$0xff] %vm222_vm1, %v351_v57  ;;  %357 = vperm.xlu2 %783, %v351_v57   ;;  %v352_v63 = vsub.f32 %v347_v55, %v351_v57  ;;  %v539_v57 = vld [vmem:[#allocation4 + $0x18] sm:$0xff] }
 0x28e   : > { %v353_v0 = vmul.f32 1.442695, %v352_v63 }
 0x290   : > { %789 = vpow2.f32 %v353_v0 }
 0x294   : > { %524 = vperm.xlu2 %783, %v518_v53  }
 0x296   : > { %v790_v2 = vpop.eup %789 }
 0x297   : > { %v365_v42 = vmul.f32 %v790_v2, %v364_v41 }
 0x298   : > { %v435_v59 = vpop.xlane.xlu2 %434 }
 0x299   : > { %v436_v61 = vmax.f32 %v432_v58, %v435_v59 }
 0x29b   : > { %v437_v62 = vsub.f32 %v432_v58, %v436_v61  ;;  %488 = vst.msk [vmem:[#allocation2 + $0x10] sm:$0xff] %vm222_vm1, %v436_v61  ;;  %442 = vperm.xlu0 %784, %v436_v61  }
 0x29c   : > { %547 = vrot.lane.b32.xlu2 %v382_v49, %s835_s21 }
 0x29d   : > { %v438_v31 = vmul.f32 1.442695, %v437_v62 }
 0x2a1   : > { %v384_v3 = vpop.permute.xlu1 %383 }
 0x2a2   : > { %v389_v6 = vsel %vm299_vm3, %v384_v3, 0 }
 0x2a3   : > { %398 = vmatpush.bf16.msra.mxu3 %v389_v6  ;;  %v457_v6 = vld [vmem:[#allocation4 + $0x10] sm:$0xff] }
 0x2a4   : > { %291 = vperm.xlu2 %783, %v788_v1   ;;  %v449_v1 = vld [vmem:[#allocation3 + $0x10] sm:$0xff] }
 0x2a9   : > { %v466_v4 = vpop.permute.xlu1 %465 }
 0x2aa   : > { %v471_v19 = vsel %vm299_vm3, %v466_v4, 0 }
 0x2ab   : > { %480 = vmatpush.bf16.msrb.mxu3 %v471_v19 }
 0x2ac   : > { %375 = vperm.xlu2 %783, %v790_v2  }
 0x2d4   : > { %v284_v8 = vpop.xlane.xlu1 %283 }
 0x2d5   : > { %v285_v9 = vadd.f32 %v284_v8, %v281_v7 }
 0x2d7   : > { %287 = vst.msk [vmem:[#allocation3] sm:$0xff] %vm222_vm1, %v285_v9 }
 0x2e6   : > { %v358_v10 = vpop.permute.xlu2 %357 }
 0x2e7   : > { %v360_v11 = vsub.f32 %v345_v40, %v358_v10 }
 0x2e9   : > { %v361_v12 = vmul.f32 1.442695, %v360_v11 }
 0x2eb   : > { %791 = vpow2.f32 %v361_v12 }
 0x2ee   : > { %v525_v13 = vpop.permute.xlu2 %524 }
 0x2ef   : > { %v527_v14 = vsub.f32 %v924_v35, %v525_v13 }
 0x2f1   : > { %v792_v15 = vpop.eup %791  ;;  %v528_v16 = vmul.f32 1.442695, %v527_v14 }
 0x2f2   : > { %v366_v17 = vsel %vm264_vm2, %v792_v15, 0.0  ;;  %v379_v18 = vpack.c.bf16 %v792_v15, %v792_v15 }
 0x2f3   : > { %793 = vpow2.f32 %v528_v16  ;;  %367 = vadd.xlane.f32.xlu0 %v366_v17 }
 0x2f4   : > { %744 = vmatmul.msk.bf16.vlgmr.msra.gmra.mxu3 %vm264_vm2, %v379_v18  ;;  %795 = vpow2.f32 %v520_v25 }
 0x2f5   : > { %797 = vpow2.f32 %v438_v31 }
 0x2f6   : > { %v548_v20 = vpop.permute.xlu2 %547 }
 0x2f7   : > { %v553_v21 = vsel %vm299_vm3, %v548_v20, 0 }
 0x2f8   : > { %562 = vmatpush.bf16.msrb.mxu2 %v553_v21 }
 0x2f9   : > { %v794_v22 = vpop.eup %793 }
 0x2fa   : > { %v533_v23 = vsel %vm264_vm2, %v794_v22, 0.0  ;;  %v546_v24 = vpack.c.bf16 %v794_v22, %v794_v22  ;;  %v796_v30 = vpop.eup %795 }
 0x2fb   : > { %534 = vadd.xlane.f32.xlu1 %v533_v23  ;;  %v798_v35 = vpop.eup %797 }
 0x2fc   : > { %748 = vmatmul.msk.bf16.vlgmr.msrb.gmra.mxu2 %vm264_vm2, %v546_v24  ;;  %v450_v2 = vmul.f32 %v798_v35, %v449_v1 }
 0x2fe   : > { %v292_v27 = vpop.permute.xlu2 %291 }
 0x2ff   : > { %v294_v28 = vmul.f32 %v292_v27, %v288_v26 }
 0x301   : > { %v316_v29 = vadd.f32 %v928_v38, %v294_v28  ;;  %v574_v38 = vld [vmem:[#allocation3] sm:$0xff] }
 0x303   : > { %317 = vst.msk [vmem:[#allocation4] sm:$0xff] %vm231_vm0, %v316_v29 }
 0x306   : > { %v376_v51 = vpop.permute.xlu2 %375 }
 0x307   : > { %542 = vperm.xlu0 %784, %v796_v30   ;;  %v378_v52 = vmul.f32 %v376_v51, %v372_v50 }
 0x30a   : > { %v576_v23 = vld [vmem:[#allocation4] sm:$0xff] }
 0x30d   : > { %v443_v32 = vpop.permute.xlu0 %442 }
 0x30e   : > { %v445_v33 = vsub.f32 %v931_v45, %v443_v32  ;;  %v531_v45 = vld [vmem:[#allocation3 + $0x18] sm:$0xff] }
 0x30f   : > { %v532_v46 = vmul.f32 %v796_v30, %v531_v45 }
 0x310   : > { %v446_v34 = vmul.f32 1.442695, %v445_v33 }
 0x312   : > { %799 = vpow2.f32 %v446_v34 }
 0x313   : > { %801 = vrcp.f32 %v574_v38 }
 0x314   : > { %460 = vperm.xlu1 %782, %v798_v35  }
 0x318   : > { %v800_v36 = vpop.eup %799 }
 0x319   : > { %v451_v37 = vsel %vm264_vm2, %v800_v36, 0.0  ;;  %v464_v39 = vpack.c.bf16 %v800_v36, %v800_v36  ;;  %v802_v40 = vpop.eup %801 }
 0x31a   : > { %452 = vadd.xlane.f32.xlu2 %v451_v37 }
 0x31b   : > { %746 = vmatmul.msk.bf16.vlgmr.msrb.gmra.mxu3 %vm264_vm2, %v464_v39 }
 0x332   : > { %579 = vperm.xlu2 %783, %v802_v40  }
 0x366   : > { %v368_v43 = vpop.xlane.xlu0 %367 }
 0x367   : > { %v369_v44 = vadd.f32 %v368_v43, %v365_v42 }
 0x369   : > { %370 = vst.msk [vmem:[#allocation3 + $0x8] sm:$0xff] %vm222_vm1, %v369_v44 }
 0x36e   : > { %v535_v47 = vpop.xlane.xlu1 %534 }
 0x36f   : > { %v536_v48 = vadd.f32 %v535_v47, %v532_v46 }
 0x370   : > { %v583_v49 = vld [vmem:[#allocation3 + $0x8] sm:$0xff] }
 0x371   : > { %537 = vst.msk [vmem:[#allocation3 + $0x18] sm:$0xff] %vm222_vm1, %v536_v48  ;;  %803 = vrcp.f32 %v583_v49 }
 0x377   : > { %v804_v53 = vpop.eup %803  ;;  %v400_v54 = vpop.f32.mrf.mxu3 }
 0x378   : > { %v404_v55 = vadd.f32 %v400_v54, %v378_v52  ;;  %588 = vperm.xlu0 %784, %v804_v53   ;;  %v601_v56 = vld [vmem:[#allocation3 + $0x18] sm:$0xff] }
 0x379   : > { %805 = vrcp.f32 %v601_v56  ;;  %v543_v58 = vpop.permute.xlu0 %542 }
 0x37a   : > { %405 = vst.msk [vmem:[#allocation4 + $0x8] sm:$0xff] %vm231_vm0, %v404_v55  ;;  %v545_v59 = vmul.f32 %v543_v58, %v539_v57 }
 0x37f   : > { %v806_v60 = vpop.eup %805  ;;  %v402_v61 = vpop.f32.mrf.mxu3 }
 0x380   : > { %v564_v62 = vpop.f32.mrf.mxu2  ;;  %606 = vperm.xlu0 %784, %v806_v60  }
 0x381   : > { %v568_v63 = vadd.f32 %v564_v62, %v545_v59  ;;  %v585_v13 = vld [vmem:[#allocation4 + $0x8] sm:$0xff] }
 0x383   : > { %569 = vst.msk [vmem:[#allocation4 + $0x18] sm:$0xff] %vm231_vm0, %v568_v63 }
 0x386   : > { %v461_v7 = vpop.permute.xlu1 %460 }
 0x387   : > { %v463_v8 = vmul.f32 %v461_v7, %v457_v6 }
 0x388   : > { %v566_v0 = vpop.f32.mrf.mxu2 }
 0x38a   : > { %v603_v16 = vld [vmem:[#allocation4 + $0x18] sm:$0xff] }
 0x38d   : > { %v453_v3 = vpop.xlane.xlu2 %452 }
 0x38e   : > { %v454_v4 = vadd.f32 %v453_v3, %v450_v2 }
 0x390   : > { %455 = vst.msk [vmem:[#allocation3 + $0x10] sm:$0xff] %vm222_vm1, %v454_v4 }
 0x395   : > { %v580_v22 = vpop.permute.xlu2 %579 }
 0x396   : > { %v582_v25 = vmul.f32 %v580_v22, %v576_v23 }
 0x397   : > { %v592_v5 = vld [vmem:[#allocation3 + $0x10] sm:$0xff] }
 0x398   : > { %807 = vrcp.f32 %v592_v5 }
 0x39e   : > { %v808_v9 = vpop.eup %807  ;;  %v482_v10 = vpop.f32.mrf.mxu3 }
 0x39f   : > { %v486_v11 = vadd.f32 %v482_v10, %v463_v8  ;;  %597 = vperm.xlu1 %782, %v808_v9  }
 0x3a1   : > { %487 = vst.msk [vmem:[#allocation4 + $0x10] sm:$0xff] %vm231_vm0, %v486_v11 }
 0x3a6   : > { %v484_v12 = vpop.f32.mrf.mxu3 }
 0x3a8   : > { %v594_v19 = vld [vmem:[#allocation4 + $0x10] sm:$0xff] }
 0x3ea   : > { %v589_v14 = vpop.permute.xlu0 %588 }
 0x3eb   : > { %v591_v15 = vmul.f32 %v589_v14, %v585_v13 }
 0x3ed   : > { %611 = vrot.lane.b32.xlu1 %v591_v15, %s835_s21 }
 0x3f2   : > { %v607_v17 = vpop.permute.xlu0 %606 }
 0x3f3   : > { %v609_v18 = vmul.f32 %v607_v17, %v603_v16 }
 0x3f5   : > { %619 = vrot.lane.b32.xlu0 %v609_v18, %s836_s22 }
 0x411   : > { %v598_v20 = vpop.permute.xlu1 %597 }
 0x412   : > { %v600_v21 = vmul.f32 %v598_v20, %v594_v19 }
 0x414   : > { %615 = vrot.lane.b32.xlu2 %v600_v21, %s834_s20 }
 0x45f   : > { %v612_v24 = vpop.permute.xlu1 %611 }
 0x460   : > { %v622_v26 = vsel %vm231_vm0, %v582_v25, %v612_v24 }
 0x467   : > { %v620_v28 = vpop.permute.xlu0 %619 }
 0x46e   : > { %v616_v27 = vpop.permute.xlu2 %615 }
 0x46f   : > { %v624_v29 = vsel %vm623_vm4, %v622_v26, %v616_v27 }
 0x470   : > { %v626_v30 = vsel %vm625_vm5, %v624_v29, %v620_v28 }
 0x471   : > { %v627_v31 = vpack.c.bf16 %v626_v30, %v626_v30 }
 0x473   : > { %628 = vst [vmem:[%s216_s26] sm:$0xf] %v627_v31 }
 0x474 PF: > { %s12_s11 = sadd.s32 1, %s831_s11   ;;  %s985_s9 = smov %s827_s10 }
 0x475   : > { %p9_p5 = scmp.ge.s32.totalorder %s12_s11, 4   ;;  %s986_s10 = smov %s988_s12 }
 0x477   :  { %11 = sbr.rel (!%p9_p5) target bundleno = 2 (0x2), region = 78 }

// kernel: tile.15
= control target key start
LH: loop header
LB: loop body
LE: loop exit
PB: predicated region body
PF: predicated region fallthrough
CT: control target
= control target key end

     0   :  { %s67_s10 = smov 28   ;;  %s68_s11 = smov 20   ;;  %vm3_vm0 = vcmask 31744   ;;  %vm9_vm1 = vcmask 261344   ;;  %vm15_vm2 = vcmask 228544   ;;  %vm21_vm3 = vcmask 195744   ;;  %s111_s0 = inlined_call_operand.vmem [shape: f32[8,4], index: 0, kind: input, shape index: {}]   ;;  %s112_s1 = inlined_call_operand.vmem [shape: f32[1,32], index: 1, kind: output, shape index: {}]  }
   0x1   :  { %v53_v0 = vld [vmem:[%s111_s0 + $0x7] sm:$0x1]   ;;  %v55_v1 = vld [vmem:[%s111_s0 + $0x5] sm:$0x1]   ;;  %v57_v2 = vld [vmem:[%s111_s0 + $0x3] sm:$0x1]  }
   0x2   :  { %7 = vrot.lane.b32.xlu0 %v53_v0, %s67_s10  ;;  %19 = vrot.lane.b32.xlu1 %v55_v1, %s68_s11  ;;  %s69_s14 = smov 12   ;;  %v54_v3 = vld [vmem:[%s111_s0 + $0x6] sm:$0x1]   ;;  %v56_v4 = vld [vmem:[%s111_s0 + $0x4] sm:$0x1]   ;;  %s70_s21 = smov 24  }
   0x3   :  { %31 = vrot.lane.b32.xlu2 %v57_v2, %s69_s14  ;;  %v58_v5 = vld [vmem:[%s111_s0 + $0x2] sm:$0x1]   ;;  %s71_s22 = smov 16   ;;  %s72_s23 = smov 8   ;;  %v59_v6 = vld [vmem:[%s111_s0 + $0x1] sm:$0x1]  }
   0x4   :  { %s73_s26 = smov 4   ;;  %v2_v7 = vld [vmem:[%s111_s0] sm:$0x1]   ;;  %vm27_vm4 = vcmask 162944   ;;  %vm33_vm5 = vcmask 130144   ;;  %vm39_vm6 = vcmask 97344  }
   0x5   :  { %4 = vst.msk [vmem:[#allocation0] sm:$0x1] %vm3_vm0, %v2_v7   ;;  %vm45_vm7 = vcmask 64544  }
   0xa   :  { %13 = vrot.lane.b32.xlu0 %v54_v3, %s70_s21  ;;  %25 = vrot.lane.b32.xlu1 %v56_v4, %s71_s22 }
   0xb   :  { %37 = vrot.lane.b32.xlu2 %v58_v5, %s72_s23 }
  0x12   :  { %43 = vrot.lane.b32.xlu0 %v59_v6, %s73_s26 }
  0x5d   :  { %v32_v8 = vpop.permute.xlu2 %31  }
  0x65   :  { %v38_v9 = vpop.permute.xlu2 %37  }
  0x74   :  { %v8_v10 = vpop.permute.xlu0 %7   ;;  %v20_v11 = vpop.permute.xlu1 %19  }
  0x75   :  { %10 = vst.msk [vmem:[#allocation0] sm:$0x1] %vm9_vm1, %v8_v10  }
  0x7c   :  { %v14_v12 = vpop.permute.xlu0 %13   ;;  %v26_v13 = vpop.permute.xlu1 %25  }
  0x7d   :  { %16 = vst.msk [vmem:[#allocation0] sm:$0x1] %vm15_vm2, %v14_v12  }
  0x7e   :  { %22 = vst.msk [vmem:[#allocation0] sm:$0x1] %vm21_vm3, %v20_v11  }
  0x7f   :  { %28 = vst.msk [vmem:[#allocation0] sm:$0x1] %vm27_vm4, %v26_v13  }
  0x80   :  { %34 = vst.msk [vmem:[#allocation0] sm:$0x1] %vm33_vm5, %v32_v8  }
  0x81   :  { %40 = vst.msk [vmem:[#allocation0] sm:$0x1] %vm39_vm6, %v38_v9  }
  0x84   :  { %v44_v14 = vpop.permute.xlu0 %43  }
  0x85   :  { %46 = vst.msk [vmem:[#allocation0] sm:$0x1] %vm45_vm7, %v44_v14  }
  0x8c   :  { %v49_v15 = vld [vmem:[#allocation0] sm:$0x1] }
  0x8d   :  { %52 = vst [vmem:[%s112_s1] sm:$0x1] %v49_v15 }

// kernel: onsets_and_frames_tf_forward.16
= control target key start
LH: loop header
LB: loop body
LE: loop exit
PB: predicated region body
PF: predicated region fallthrough
CT: control target
= control target key end

     0   :  { %v609_v2 = vmov 128.0   ;;  %s896_s0 = inlined_call_operand.vmem [shape: f32[16,128], index: 0, kind: input, shape index: {}]   ;;  %s897_s3 = inlined_call_operand.vmem [shape: f32[1,128], index: 3, kind: input, shape index: {}]   ;;  %s898_s4 = inlined_call_operand.vmem [shape: f32[1,128], index: 4, kind: input, shape index: {}]   ;;  %s899_s1 = inlined_call_operand.vmem [shape: bf16[128,512], index: 1, kind: input, shape index: {}]   ;;  %s900_s2 = inlined_call_operand.vmem [shape: f32[1,512], index: 2, kind: input, shape index: {}]   ;;  %s901_s5 = inlined_call_operand.vmem [shape: bf16[16,512], index: 5, kind: output, shape index: {}]  }
   0x1   :  { %v20_v0 = vld [vmem:[%s896_s0] sm:$0xff]  ;;  %v21_v1 = vld [vmem:[%s896_s0 + $0x8] sm:$0xff]  ;;  %587 = vrcp.f32 %v609_v2  ;;  %v582_v18 = vld [vmem:[%s899_s1 + $0xec] sm:$0xf0] }
   0x2   :  { %22 = vadd.xlane.f32.xlu0 %v20_v0  ;;  %v538_v17 = vld [vmem:[%s899_s1 + $0xe0] sm:$0xf]  ;;  %v580_v19 = vld [vmem:[%s899_s1 + $0xe4] sm:$0xf]  ;;  %v540_v21 = vld [vmem:[%s899_s1 + $0xf0] sm:$0xf0] }
   0x3   :  { %v539_v20 = vor.u32 %v582_v18, %v538_v17  ;;  %v546_v22 = vld [vmem:[%s899_s1 + $0xe8] sm:$0xf]  ;;  %v583_v23 = vld [vmem:[%s899_s1 + $0xf4] sm:$0xf0]  ;;  %v543_v24 = vor.u32 %v580_v19, %v540_v21  ;;  %v581_v26 = vld [vmem:[%s899_s1 + $0xec] sm:$0xf] }
   0x4   :  { %v547_v25 = vor.u32 %v583_v23, %v546_v22  ;;  %v548_v27 = vld [vmem:[%s899_s1 + $0xf8] sm:$0xf0]  ;;  %v522_v29 = vld [vmem:[%s899_s1 + $0xc0] sm:$0xf]  ;;  %v578_v30 = vld [vmem:[%s899_s1 + $0xcc] sm:$0xf0] }
   0x5   :  { %284 = vmatpush.bf16.msra.mxu0 %v539_v20  ;;  %v551_v28 = vor.u32 %v581_v26, %v548_v27  ;;  %298 = vmatpush.bf16.msra.mxu1 %v543_v24  ;;  %v576_v31 = vld [vmem:[%s899_s1 + $0xc4] sm:$0xf]  ;;  %v523_v32 = vor.u32 %v578_v30, %v522_v29  ;;  %v524_v33 = vld [vmem:[%s899_s1 + $0xd0] sm:$0xf0]  ;;  %v530_v34 = vld [vmem:[%s899_s1 + $0xc8] sm:$0xf] }
   0x6   :  { %312 = vmatpush.bf16.msra.mxu2 %v547_v25  ;;  %v579_v35 = vld [vmem:[%s899_s1 + $0xd4] sm:$0xf0]  ;;  %v527_v36 = vor.u32 %v576_v31, %v524_v33  ;;  %v577_v38 = vld [vmem:[%s899_s1 + $0xcc] sm:$0xf]  ;;  %v532_v39 = vld [vmem:[%s899_s1 + $0xd8] sm:$0xf0] }
   0x7   :  { %v588_v3 = vpop.eup %587  ;;  %326 = vmatpush.bf16.msra.mxu3 %v551_v28  ;;  %v531_v37 = vor.u32 %v579_v35, %v530_v34  ;;  %v535_v40 = vor.u32 %v577_v38, %v532_v39  ;;  %v506_v41 = vld [vmem:[%s899_s1 + $0xa0] sm:$0xf]  ;;  %v574_v42 = vld [vmem:[%s899_s1 + $0xac] sm:$0xf0]  ;;  %v572_v43 = vld [vmem:[%s899_s1 + $0xa4] sm:$0xf] }
   0x8   :  { %v27_v4 = vmul.f32 128.0, %v588_v3  ;;  %vm31_vm0 = vweird.f32 %v588_v3  ;;  %v507_v44 = vor.u32 %v574_v42, %v506_v41  ;;  %v508_v45 = vld [vmem:[%s899_s1 + $0xb0] sm:$0xf0]  ;;  %v514_v46 = vld [vmem:[%s899_s1 + $0xa8] sm:$0xf] }
   0x9   :  { %285 = vmatpush.bf16.msra.mxu0 %v523_v32  ;;  %299 = vmatpush.bf16.msra.mxu1 %v527_v36  ;;  %v575_v47 = vld [vmem:[%s899_s1 + $0xb4] sm:$0xf0]  ;;  %v511_v48 = vor.u32 %v572_v43, %v508_v45  ;;  %v573_v50 = vld [vmem:[%s899_s1 + $0xac] sm:$0xf]  ;;  %v516_v51 = vld [vmem:[%s899_s1 + $0xb8] sm:$0xf0] }
   0xa   :  { %24 = vadd.xlane.f32.xlu0 %v21_v1  ;;  %v28_v5 = vsub.f32 1.0, %v27_v4  ;;  %313 = vmatpush.bf16.msra.mxu2 %v531_v37  ;;  %v515_v49 = vor.u32 %v575_v47, %v514_v46  ;;  %v519_v52 = vor.u32 %v573_v50, %v516_v51  ;;  %v490_v53 = vld [vmem:[%s899_s1 + $0x80] sm:$0xf]  ;;  %v570_v54 = vld [vmem:[%s899_s1 + $0x8c] sm:$0xf0] }
   0xb   :  { %327 = vmatpush.bf16.msra.mxu3 %v535_v40  ;;  %v568_v55 = vld [vmem:[%s899_s1 + $0x84] sm:$0xf]  ;;  %v491_v56 = vor.u32 %v570_v54, %v490_v53  ;;  %v492_v57 = vld [vmem:[%s899_s1 + $0x90] sm:$0xf0]  ;;  %v498_v58 = vld [vmem:[%s899_s1 + $0x88] sm:$0xf] }
   0xc   :  { %v29_v6 = vmul.f32 %v588_v3, %v28_v5  ;;  %v571_v59 = vld [vmem:[%s899_s1 + $0x94] sm:$0xf0]  ;;  %v495_v60 = vor.u32 %v568_v55, %v492_v57  ;;  %v569_v62 = vld [vmem:[%s899_s1 + $0x8c] sm:$0xf]  ;;  %v500_v63 = vld [vmem:[%s899_s1 + $0x98] sm:$0xf0] }
   0xd   :  { %286 = vmatpush.bf16.msra.mxu0 %v507_v44  ;;  %300 = vmatpush.bf16.msra.mxu1 %v511_v48  ;;  %v499_v61 = vor.u32 %v571_v59, %v498_v58  ;;  %v566_v2 = vld [vmem:[%s899_s1 + $0x6c] sm:$0xf0]  ;;  %v476_v5 = vld [vmem:[%s899_s1 + $0x70] sm:$0xf0]  ;;  %v560_v18 = vld [vmem:[%s899_s1 + $0x44] sm:$0xf] }
   0xe   :  { %v30_v7 = vadd.f32 %v588_v3, %v29_v6  ;;  %314 = vmatpush.bf16.msra.mxu2 %v515_v49  ;;  %v482_v6 = vld [vmem:[%s899_s1 + $0x68] sm:$0xf]  ;;  %v562_v17 = vld [vmem:[%s899_s1 + $0x4c] sm:$0xf0]  ;;  %v460_v20 = vld [vmem:[%s899_s1 + $0x50] sm:$0xf0] }
   0xf   :  { %328 = vmatpush.bf16.msra.mxu3 %v519_v52  ;;  %v466_v21 = vld [vmem:[%s899_s1 + $0x48] sm:$0xf]  ;;  %v563_v22 = vld [vmem:[%s899_s1 + $0x54] sm:$0xf0]  ;;  %v463_v23 = vor.u32 %v560_v18, %v460_v20  ;;  %v561_v25 = vld [vmem:[%s899_s1 + $0x4c] sm:$0xf] }
  0x10   :  { %v646_v8 = vsel %vm31_vm0, %v588_v3, %v30_v7  ;;  %v564_v3 = vld [vmem:[%s899_s1 + $0x64] sm:$0xf]  ;;  %v567_v7 = vld [vmem:[%s899_s1 + $0x74] sm:$0xf0]  ;;  %v467_v24 = vor.u32 %v563_v22, %v466_v21  ;;  %v468_v26 = vld [vmem:[%s899_s1 + $0x58] sm:$0xf0] }
  0x11   :  { %287 = vmatpush.bf16.msra.mxu0 %v491_v56  ;;  %301 = vmatpush.bf16.msra.mxu1 %v495_v60  ;;  %v471_v27 = vor.u32 %v561_v25, %v468_v26  ;;  %v442_v28 = vld [vmem:[%s899_s1 + $0x20] sm:$0xf]  ;;  %v558_v29 = vld [vmem:[%s899_s1 + $0x2c] sm:$0xf0]  ;;  %v556_v30 = vld [vmem:[%s899_s1 + $0x24] sm:$0xf] }
  0x12   :  { %315 = vmatpush.bf16.msra.mxu2 %v499_v61  ;;  %v443_v31 = vor.u32 %v558_v29, %v442_v28  ;;  %v444_v32 = vld [vmem:[%s899_s1 + $0x30] sm:$0xf0]  ;;  %v450_v33 = vld [vmem:[%s899_s1 + $0x28] sm:$0xf]  ;;  %v559_v34 = vld [vmem:[%s899_s1 + $0x34] sm:$0xf0] }
  0x13   :  { %v447_v35 = vor.u32 %v556_v30, %v444_v32  ;;  %v451_v36 = vor.u32 %v559_v34, %v450_v33  ;;  %v557_v37 = vld [vmem:[%s899_s1 + $0x2c] sm:$0xf]  ;;  %v452_v38 = vld [vmem:[%s899_s1 + $0x38] sm:$0xf0]  ;;  %v426_v39 = vld [vmem:[%s899_s1] sm:$0xf] }
  0x14   :  { %v455_v41 = vor.u32 %v557_v37, %v452_v38  ;;  %v554_v42 = vld [vmem:[%s899_s1 + $0xc] sm:$0xf0]  ;;  %v552_v43 = vld [vmem:[%s899_s1 + $0x4] sm:$0xf]  ;;  %v428_v44 = vld [vmem:[%s899_s1 + $0x10] sm:$0xf0] }
  0x15   :  { %v427_v46 = vor.u32 %v554_v42, %v426_v39  ;;  %v431_v47 = vor.u32 %v552_v43, %v428_v44  ;;  %v434_v48 = vld [vmem:[%s899_s1 + $0x8] sm:$0xf]  ;;  %v555_v49 = vld [vmem:[%s899_s1 + $0x14] sm:$0xf0]  ;;  %v553_v50 = vld [vmem:[%s899_s1 + $0xc] sm:$0xf] }
  0x16   :  { %v435_v51 = vor.u32 %v555_v49, %v434_v48  ;;  %v436_v52 = vld [vmem:[%s899_s1 + $0x18] sm:$0xf0] }
  0x17   :  { %v439_v54 = vor.u32 %v553_v50, %v436_v52 }
  0x75   :  { %v23_v9 = vpop.xlane.xlu0 %22 }
  0x76   :  { %v33_v10 = vmul.f32 %v646_v8, %v23_v9  ;;  %v479_v9 = vor.u32 %v564_v3, %v476_v5 }
  0x78   :  { %v649_v11 = vsub.f32 %v20_v0, %v33_v10  ;;  %v503_v0 = vor.u32 %v569_v62, %v500_v63  ;;  %v483_v10 = vor.u32 %v567_v7, %v482_v6  ;;  %302 = vmatpush.bf16.msra.mxu1 %v479_v9  ;;  %v585_v6 = vld [vmem:[%s897_s3] ss:$0 sm:$0xff] }
  0x7a   :  { %v37_v12 = vmul.f32 %v649_v11, %v649_v11  ;;  %329 = vmatpush.bf16.msra.mxu3 %v503_v0  ;;  %316 = vmatpush.bf16.msra.mxu2 %v483_v10 }
  0x7c   :  { %39 = vadd.xlane.f32.xlu1 %v37_v12  ;;  %v565_v12 = vld [vmem:[%s899_s1 + $0x6c] sm:$0xf]  ;;  %303 = vmatpush.bf16.msra.mxu1 %v463_v23 }
  0x7d   :  { %v25_v13 = vpop.xlane.xlu0 %24 }
  0x7e   :  { %v34_v14 = vmul.f32 %v646_v8, %v25_v13  ;;  %v484_v13 = vld [vmem:[%s899_s1 + $0x78] sm:$0xf0]  ;;  %317 = vmatpush.bf16.msra.mxu2 %v467_v24 }
  0x80   :  { %v654_v15 = vsub.f32 %v21_v1, %v34_v14  ;;  %v474_v1 = vld [vmem:[%s899_s1 + $0x60] sm:$0xf]  ;;  %v487_v14 = vor.u32 %v565_v12, %v484_v13  ;;  %304 = vmatpush.bf16.msra.mxu1 %v447_v35 }
  0x81   :  { %v475_v4 = vor.u32 %v566_v2, %v474_v1  ;;  %v586_v13 = vld [vmem:[%s898_s4] ss:$0 sm:$0xff] }
  0x82   :  { %v38_v16 = vmul.f32 %v654_v15, %v654_v15  ;;  %330 = vmatpush.bf16.msra.mxu3 %v487_v14  ;;  %318 = vmatpush.bf16.msra.mxu2 %v451_v36 }
  0x83   :  { %288 = vmatpush.bf16.msra.mxu0 %v475_v4 }
  0x84   :  { %41 = vadd.xlane.f32.xlu1 %v38_v16  ;;  %v458_v16 = vld [vmem:[%s899_s1 + $0x40] sm:$0xf]  ;;  %305 = vmatpush.bf16.msra.mxu1 %v431_v47 }
  0x85   :  { %v459_v19 = vor.u32 %v562_v17, %v458_v16 }
  0x86   :  { %331 = vmatpush.bf16.msra.mxu3 %v471_v27  ;;  %319 = vmatpush.bf16.msra.mxu2 %v435_v51 }
  0x87   :  { %289 = vmatpush.bf16.msra.mxu0 %v459_v19 }
  0x8a   :  { %332 = vmatpush.bf16.msra.mxu3 %v455_v41 }
  0x8b   :  { %290 = vmatpush.bf16.msra.mxu0 %v443_v31 }
  0x8e   :  { %333 = vmatpush.bf16.msra.mxu3 %v439_v54 }
  0x8f   :  { %291 = vmatpush.bf16.msra.mxu0 %v427_v46 }
  0xef   :  { %v40_v40 = vpop.xlane.xlu1 %39 }
  0xf0   :  { %v43_v45 = vmul.f32 %v40_v40, %v646_v8 }
  0xf2   :  { %v45_v53 = vadd.f32 1e-05, %v43_v45 }
  0xf4   :  { %589 = vrsqrt.f32 %v45_v53  ;;  %vm53_vm2 = vweird.f32 %v45_v53 }
  0xf7   :  { %v42_v55 = vpop.xlane.xlu1 %41 }
  0xf8   :  { %v44_v56 = vmul.f32 %v42_v55, %v646_v8 }
  0xfa   :  { %v590_v57 = vpop.eup %589  ;;  %v46_v58 = vadd.f32 1e-05, %v44_v56 }
  0xfb   :  { %v48_v59 = vmul.f32 %v590_v57, %v45_v53  ;;  %vm54_vm1 = vweird.f32 %v590_v57 }
  0xfc   :  { %591 = vrsqrt.f32 %v46_v58  ;;  %vm55_vm3 = vmor %vm53_vm2, %vm54_vm1  ;;  %vm63_vm5 = vweird.f32 %v46_v58 }
  0xfd   :  { %v49_v60 = vmul.f32 %v590_v57, %v48_v59 }
  0xff   :  { %v50_v61 = vmul.f32 0.5, %v49_v60 }
 0x101   :  { %v51_v62 = vsub.f32 1.5, %v50_v61 }
 0x102   :  { %v592_v63 = vpop.eup %591 }
 0x103   :  { %v52_v0 = vmul.f32 %v590_v57, %v51_v62  ;;  %v58_v1 = vmul.f32 %v592_v63, %v46_v58  ;;  %vm64_vm4 = vweird.f32 %v592_v63 }
 0x104   :  { %vm65_vm6 = vmor %vm63_vm5, %vm64_vm4 }
 0x105   :  { %v59_v2 = vmul.f32 %v592_v63, %v58_v1  ;;  %v56_v3 = vsel %vm55_vm3, %v590_v57, %v52_v0 }
 0x106   :  { %v67_v8 = vmul.f32 %v56_v3, %v649_v11  ;;  %v114_v11 = vld [vmem:[%s900_s2] sm:$0xf] }
 0x107   :  { %v60_v4 = vmul.f32 0.5, %v59_v2  ;;  %v116_v19 = vperm.slane %v114_v11, 0  ;;  %v117_v20 = vperm.slane %v114_v11, 1  ;;  %v118_v26 = vperm.slane %v114_v11, 2 }
 0x108   :  { %v73_v12 = vmul.f32 %v585_v6, %v67_v8  ;;  %v119_v27 = vperm.slane %v114_v11, 3 }
 0x109   :  { %v61_v5 = vsub.f32 1.5, %v60_v4 }
 0x10a   :  { %v79_v16 = vadd.f32 %v586_v13, %v73_v12 }
 0x10b   :  { %v62_v7 = vmul.f32 %v592_v63, %v61_v5 }
 0x10d   :  { %v66_v9 = vsel %vm65_vm6, %v592_v63, %v62_v7 }
 0x10e   :  { %v68_v10 = vmul.f32 %v66_v9, %v654_v15 }
 0x110   :  { %v74_v14 = vmul.f32 %v585_v6, %v68_v10 }
 0x112   :  { %v80_v17 = vadd.f32 %v586_v13, %v74_v14 }
 0x114   :  { %v81_v18 = vpack.c.bf16 %v80_v17, %v79_v16 }
 0x116   :  { %292 = vmatmul.bf16.vlgmr.msra.gmra.mxu0 %v81_v18  ;;  %306 = vmatmul.bf16.vlgmr.msra.gmra.mxu1 %v81_v18 }
 0x117   :  { %320 = vmatmul.bf16.vlgmr.msra.gmra.mxu2 %v81_v18  ;;  %334 = vmatmul.bf16.vlgmr.msra.gmra.mxu3 %v81_v18 }
 0x193   :  { %v293_v15 = vpop.f32.mrf.mxu0  ;;  %v307_v21 = vpop.f32.mrf.mxu1 }
 0x194   :  { %v294_v22 = vadd.f32 %v293_v15, %v116_v19  ;;  %v308_v23 = vadd.f32 %v307_v21, %v117_v20 }
 0x196   :  { %v348_v24 = vmul.f32 0.044715, %v294_v22  ;;  %v349_v25 = vmul.f32 0.044715, %v308_v23  ;;  %v340_v2 = vmul.f32 0.5, %v294_v22  ;;  %v341_v7 = vmul.f32 0.5, %v308_v23 }
 0x198   :  { %v356_v28 = vmul.f32 %v348_v24, %v294_v22  ;;  %v357_v29 = vmul.f32 %v349_v25, %v308_v23 }
 0x19a   :  { %v364_v30 = vmul.f32 %v356_v28, %v294_v22  ;;  %v365_v31 = vmul.f32 %v357_v29, %v308_v23  ;;  %v321_v32 = vpop.f32.mrf.mxu2  ;;  %v335_v33 = vpop.f32.mrf.mxu3 }
 0x19b   :  { %v322_v34 = vadd.f32 %v321_v32, %v118_v26  ;;  %v863_v35 = vadd.f32 %v335_v33, %v119_v27  ;;  %v295_v36 = vpop.f32.mrf.mxu0  ;;  %v309_v37 = vpop.f32.mrf.mxu1 }
 0x19c   :  { %v372_v38 = vadd.f32 %v364_v30, %v294_v22  ;;  %v373_v39 = vadd.f32 %v365_v31, %v308_v23  ;;  %v865_v40 = vadd.f32 %v295_v36, %v116_v19  ;;  %v867_v41 = vadd.f32 %v309_v37, %v117_v20 }
 0x19d   :  { %v350_v42 = vmul.f32 0.044715, %v322_v34  ;;  %v351_v43 = vmul.f32 0.044715, %v863_v35  ;;  %v342_v23 = vmul.f32 0.5, %v322_v34 }
 0x19e   :  { %v380_v44 = vmul.f32 0.7978846, %v372_v38  ;;  %v381_v45 = vmul.f32 0.7978846, %v373_v39  ;;  %v352_v48 = vmul.f32 0.044715, %v865_v40 }
 0x19f   :  { %v358_v46 = vmul.f32 %v350_v42, %v322_v34  ;;  %v359_v47 = vmul.f32 %v351_v43, %v863_v35  ;;  %v353_v49 = vmul.f32 0.044715, %v867_v41  ;;  %v344_v32 = vmul.f32 0.5, %v865_v40 }
 0x1a0   :  { %593 = vtanh.f32 %v380_v44  ;;  %v360_v52 = vmul.f32 %v352_v48, %v865_v40  ;;  %v345_v37 = vmul.f32 0.5, %v867_v41 }
 0x1a1   :  { %595 = vtanh.f32 %v381_v45  ;;  %v366_v50 = vmul.f32 %v358_v46, %v322_v34  ;;  %v367_v51 = vmul.f32 %v359_v47, %v863_v35  ;;  %v361_v53 = vmul.f32 %v353_v49, %v867_v41 }
 0x1a2   :  { %v323_v54 = vpop.f32.mrf.mxu2  ;;  %v337_v55 = vpop.f32.mrf.mxu3  ;;  %v368_v58 = vmul.f32 %v360_v52, %v865_v40 }
 0x1a3   :  { %v374_v56 = vadd.f32 %v366_v50, %v322_v34  ;;  %v375_v57 = vadd.f32 %v367_v51, %v863_v35  ;;  %v324_v59 = vadd.f32 %v323_v54, %v118_v26  ;;  %v369_v60 = vmul.f32 %v361_v53, %v867_v41 }
 0x1a4   :  { %v338_v61 = vadd.f32 %v337_v55, %v119_v27  ;;  %v376_v0 = vadd.f32 %v368_v58, %v865_v40  ;;  %v343_v27 = vmul.f32 0.5, %v863_v35 }
 0x1a5   :  { %v382_v62 = vmul.f32 0.7978846, %v374_v56  ;;  %v383_v63 = vmul.f32 0.7978846, %v375_v57  ;;  %v377_v3 = vadd.f32 %v369_v60, %v867_v41  ;;  %v354_v4 = vmul.f32 0.044715, %v324_v59 }
 0x1a6   :  { %v594_v1 = vpop.eup %593  ;;  %v355_v5 = vmul.f32 0.044715, %v338_v61  ;;  %v384_v9 = vmul.f32 0.7978846, %v376_v0  ;;  %v346_v40 = vmul.f32 0.5, %v324_v59  ;;  %v347_v46 = vmul.f32 0.5, %v338_v61 }
 0x1a7   :  { %v596_v8 = vpop.eup %595  ;;  %v396_v6 = vadd.f32 1.0, %v594_v1  ;;  %597 = vtanh.f32 %v382_v62  ;;  %v385_v12 = vmul.f32 0.7978846, %v377_v3  ;;  %v362_v13 = vmul.f32 %v354_v4, %v324_v59 }
 0x1a8   :  { %v397_v10 = vadd.f32 1.0, %v596_v8  ;;  %599 = vtanh.f32 %v383_v63  ;;  %v363_v16 = vmul.f32 %v355_v5, %v338_v61 }
 0x1a9   :  { %v404_v14 = vmul.f32 %v396_v6, %v340_v2  ;;  %601 = vtanh.f32 %v384_v9  ;;  %v370_v18 = vmul.f32 %v362_v13, %v324_v59 }
 0x1aa   :  { %v405_v17 = vmul.f32 %v397_v10, %v341_v7  ;;  %603 = vtanh.f32 %v385_v12  ;;  %v371_v11 = vmul.f32 %v363_v16, %v338_v61 }
 0x1ab   :  { %v378_v20 = vadd.f32 %v370_v18, %v324_v59 }
 0x1ac   :  { %v412_v19 = vpack.c.bf16 %v405_v17, %v404_v14  ;;  %v379_v21 = vadd.f32 %v371_v11, %v338_v61 }
 0x1ad   :  { %v598_v15 = vpop.eup %597  ;;  %v386_v25 = vmul.f32 0.7978846, %v378_v20 }
 0x1ae   :  { %v600_v22 = vpop.eup %599  ;;  %416 = vst [vmem:[%s901_s5] sm:$0xff] %v412_v19  ;;  %v398_v24 = vadd.f32 1.0, %v598_v15  ;;  %v387_v29 = vmul.f32 0.7978846, %v379_v21 }
 0x1af   :  { %v602_v26 = vpop.eup %601  ;;  %v399_v28 = vadd.f32 1.0, %v600_v22  ;;  %605 = vtanh.f32 %v386_v25 }
 0x1b0   :  { %v604_v30 = vpop.eup %603  ;;  %v406_v31 = vmul.f32 %v398_v24, %v342_v23  ;;  %v400_v33 = vadd.f32 1.0, %v602_v26  ;;  %607 = vtanh.f32 %v387_v29 }
 0x1b1   :  { %v407_v36 = vmul.f32 %v399_v28, %v343_v27  ;;  %v401_v38 = vadd.f32 1.0, %v604_v30 }
 0x1b2   :  { %v408_v39 = vmul.f32 %v400_v33, %v344_v32 }
 0x1b3   :  { %v413_v34 = vpack.c.bf16 %v407_v36, %v406_v31  ;;  %v409_v42 = vmul.f32 %v401_v38, %v345_v37 }
 0x1b5   :  { %417 = vst [vmem:[%s901_s5 + $0x8] sm:$0xff] %v413_v34  ;;  %v414_v35 = vpack.c.bf16 %v409_v42, %v408_v39  ;;  %v606_v43 = vpop.eup %605 }
 0x1b6   :  { %v608_v44 = vpop.eup %607  ;;  %v402_v45 = vadd.f32 1.0, %v606_v43 }
 0x1b7   :  { %418 = vst [vmem:[%s901_s5 + $0x10] sm:$0xff] %v414_v35  ;;  %v403_v41 = vadd.f32 1.0, %v608_v44 }
 0x1b8   :  { %v410_v47 = vmul.f32 %v402_v45, %v346_v40 }
 0x1b9   :  { %v411_v48 = vmul.f32 %v403_v41, %v347_v46 }
 0x1bb   :  { %v415_v49 = vpack.c.bf16 %v411_v48, %v410_v47 }
 0x1bd   :  { %419 = vst [vmem:[%s901_s5 + $0x18] sm:$0xff] %v415_v49 }

// kernel: onsets_and_frames_tf_forward.17
= control target key start
LH: loop header
LB: loop body
LE: loop exit
PB: predicated region body
PF: predicated region fallthrough
CT: control target
= control target key end

     0   :  { %s708_s1 = inlined_call_operand.vmem [shape: bf16[512,128], index: 1, kind: input, shape index: {}]   ;;  %s709_s2 = inlined_call_operand.vmem [shape: f32[1,128], index: 2, kind: input, shape index: {}]   ;;  %s710_s0 = inlined_call_operand.vmem [shape: bf16[16,512], index: 0, kind: input, shape index: {}]   ;;  %s711_s3 = inlined_call_operand.vmem [shape: f32[16,128], index: 3, kind: input, shape index: {}]   ;;  %s712_s4 = inlined_call_operand.vmem [shape: f32[16,128], index: 4, kind: output, shape index: {}]  }
   0x1   :  { %v522_v0 = vld [vmem:[%s708_s1 + $0x38] sm:$0xff]  ;;  %v521_v4 = vld [vmem:[%s708_s1 + $0x30] sm:$0xff]  ;;  %v520_v8 = vld [vmem:[%s708_s1 + $0x28] sm:$0xff] }
   0x2   :  { %v530_v1 = vld [vmem:[%s708_s1 + $0x78] sm:$0xff]  ;;  %301 = vmatpush.bf16.msra.mxu0 %v522_v0  ;;  %v529_v5 = vld [vmem:[%s708_s1 + $0x70] sm:$0xff]  ;;  %v528_v9 = vld [vmem:[%s708_s1 + $0x68] sm:$0xff] }
   0x3   :  { %v538_v2 = vld [vmem:[%s708_s1 + $0xb8] sm:$0xff]  ;;  %315 = vmatpush.bf16.msra.mxu1 %v530_v1  ;;  %v537_v6 = vld [vmem:[%s708_s1 + $0xb0] sm:$0xff]  ;;  %v536_v10 = vld [vmem:[%s708_s1 + $0xa8] sm:$0xff] }
   0x4   :  { %v546_v3 = vld [vmem:[%s708_s1 + $0xf8] sm:$0xff]  ;;  %329 = vmatpush.bf16.msra.mxu2 %v538_v2  ;;  %v545_v7 = vld [vmem:[%s708_s1 + $0xf0] sm:$0xff]  ;;  %v544_v11 = vld [vmem:[%s708_s1 + $0xe8] sm:$0xff] }
   0x5   :  { %343 = vmatpush.bf16.msra.mxu3 %v546_v3  ;;  %v519_v12 = vld [vmem:[%s708_s1 + $0x20] sm:$0xff]  ;;  %v518_v16 = vld [vmem:[%s708_s1 + $0x18] sm:$0xff]  ;;  %v517_v20 = vld [vmem:[%s708_s1 + $0x10] sm:$0xff] }
   0x6   :  { %302 = vmatpush.bf16.msra.mxu0 %v521_v4  ;;  %v527_v13 = vld [vmem:[%s708_s1 + $0x60] sm:$0xff]  ;;  %v526_v17 = vld [vmem:[%s708_s1 + $0x58] sm:$0xff]  ;;  %v525_v21 = vld [vmem:[%s708_s1 + $0x50] sm:$0xff] }
   0x7   :  { %316 = vmatpush.bf16.msra.mxu1 %v529_v5  ;;  %v535_v14 = vld [vmem:[%s708_s1 + $0xa0] sm:$0xff]  ;;  %v534_v18 = vld [vmem:[%s708_s1 + $0x98] sm:$0xff]  ;;  %v533_v22 = vld [vmem:[%s708_s1 + $0x90] sm:$0xff] }
   0x8   :  { %330 = vmatpush.bf16.msra.mxu2 %v537_v6  ;;  %v543_v15 = vld [vmem:[%s708_s1 + $0xe0] sm:$0xff]  ;;  %v542_v19 = vld [vmem:[%s708_s1 + $0xd8] sm:$0xff]  ;;  %v541_v23 = vld [vmem:[%s708_s1 + $0xd0] sm:$0xff] }
   0x9   :  { %344 = vmatpush.bf16.msra.mxu3 %v545_v7  ;;  %v516_v24 = vld [vmem:[%s708_s1 + $0x8] sm:$0xff]  ;;  %v515_v28 = vld [vmem:[%s708_s1] sm:$0xff]  ;;  %v513_v33 = vld [vmem:[%s710_s0 + $0xc] sm:$0xf0] }
   0xa   :  { %303 = vmatpush.bf16.msra.mxu0 %v520_v8  ;;  %v524_v25 = vld [vmem:[%s708_s1 + $0x48] sm:$0xff]  ;;  %v523_v29 = vld [vmem:[%s708_s1 + $0x40] sm:$0xff]  ;;  %v371_v35 = vld [vmem:[%s710_s0 + $0x10] sm:$0xf0] }
   0xb   :  { %317 = vmatpush.bf16.msra.mxu1 %v528_v9  ;;  %v532_v26 = vld [vmem:[%s708_s1 + $0x88] sm:$0xff]  ;;  %v531_v30 = vld [vmem:[%s708_s1 + $0x80] sm:$0xff]  ;;  %v514_v37 = vld [vmem:[%s710_s0 + $0x14] sm:$0xf0] }
   0xc   :  { %331 = vmatpush.bf16.msra.mxu2 %v536_v10  ;;  %v540_v27 = vld [vmem:[%s708_s1 + $0xc8] sm:$0xff]  ;;  %v539_v31 = vld [vmem:[%s708_s1 + $0xc0] sm:$0xff]  ;;  %v379_v39 = vld [vmem:[%s710_s0 + $0x18] sm:$0xf0] }
   0xd   :  { %345 = vmatpush.bf16.msra.mxu3 %v544_v11  ;;  %v369_v32 = vld [vmem:[%s710_s0] sm:$0xf]  ;;  %v511_v34 = vld [vmem:[%s710_s0 + $0x4] sm:$0xf]  ;;  %v377_v36 = vld [vmem:[%s710_s0 + $0x8] sm:$0xf] }
   0xe   :  { %304 = vmatpush.bf16.msra.mxu0 %v519_v12  ;;  %v512_v38 = vld [vmem:[%s710_s0 + $0xc] sm:$0xf]  ;;  %v370_v40 = vor.u32 %v513_v33, %v369_v32  ;;  %v374_v41 = vor.u32 %v511_v34, %v371_v35  ;;  %v378_v42 = vor.u32 %v514_v37, %v377_v36  ;;  %v547_v44 = vld [vmem:[%s709_s2] ss:$0 sm:$0xff] }
   0xf   :  { %318 = vmatpush.bf16.msra.mxu1 %v527_v13  ;;  %v382_v43 = vor.u32 %v512_v38, %v379_v39  ;;  %v357_v53 = vld [vmem:[%s711_s3] sm:$0xff]  ;;  %v358_v62 = vld [vmem:[%s711_s3 + $0x8] sm:$0xff] }
  0x10   :  { %332 = vmatpush.bf16.msra.mxu2 %v535_v14 }
  0x11   :  { %346 = vmatpush.bf16.msra.mxu3 %v543_v15 }
  0x12   :  { %305 = vmatpush.bf16.msra.mxu0 %v518_v16 }
  0x13   :  { %319 = vmatpush.bf16.msra.mxu1 %v526_v17 }
  0x14   :  { %333 = vmatpush.bf16.msra.mxu2 %v534_v18 }
  0x15   :  { %347 = vmatpush.bf16.msra.mxu3 %v542_v19 }
  0x16   :  { %306 = vmatpush.bf16.msra.mxu0 %v517_v20 }
  0x17   :  { %320 = vmatpush.bf16.msra.mxu1 %v525_v21 }
  0x18   :  { %334 = vmatpush.bf16.msra.mxu2 %v533_v22 }
  0x19   :  { %348 = vmatpush.bf16.msra.mxu3 %v541_v23 }
  0x1a   :  { %307 = vmatpush.bf16.msra.mxu0 %v516_v24 }
  0x1b   :  { %321 = vmatpush.bf16.msra.mxu1 %v524_v25 }
  0x1c   :  { %335 = vmatpush.bf16.msra.mxu2 %v532_v26 }
  0x1d   :  { %349 = vmatpush.bf16.msra.mxu3 %v540_v27 }
  0x1e   :  { %308 = vmatpush.bf16.msra.mxu0 %v515_v28 }
  0x1f   :  { %322 = vmatpush.bf16.msra.mxu1 %v523_v29 }
  0x20   :  { %336 = vmatpush.bf16.msra.mxu2 %v531_v30 }
  0x21   :  { %350 = vmatpush.bf16.msra.mxu3 %v539_v31  ;;  %309 = vmatmul.bf16.vlgmr.msra.gmra.mxu0 %v370_v40 }
  0x22   :  { %323 = vmatmul.bf16.vlgmr.msra.gmra.mxu1 %v374_v41 }
  0x23   :  { %337 = vmatmul.bf16.vlgmr.msra.gmra.mxu2 %v378_v42 }
  0x24   :  { %351 = vmatmul.bf16.vlgmr.msra.gmra.mxu3 %v382_v43 }
  0x9e   :  { %v310_v45 = vpop.f32.mrf.mxu0 }
  0x9f   :  { %v311_v46 = vadd.f32 %v547_v44, %v310_v45  ;;  %v324_v47 = vpop.f32.mrf.mxu1 }
  0xa1   :  { %v325_v48 = vadd.f32 %v324_v47, %v311_v46 }
  0xa6   :  { %v338_v49 = vpop.f32.mrf.mxu2  ;;  %v312_v52 = vpop.f32.mrf.mxu0 }
  0xa7   :  { %v352_v50 = vpop.f32.mrf.mxu3  ;;  %v339_v51 = vadd.f32 %v338_v49, %v325_v48  ;;  %v313_v55 = vadd.f32 %v547_v44, %v312_v52  ;;  %v326_v57 = vpop.f32.mrf.mxu1 }
  0xa9   :  { %v353_v54 = vadd.f32 %v352_v50, %v339_v51  ;;  %v327_v58 = vadd.f32 %v326_v57, %v313_v55 }
  0xab   :  { %v359_v56 = vadd.f32 %v357_v53, %v353_v54 }
  0xad   :  { %361 = vst [vmem:[%s712_s4] sm:$0xff] %v359_v56 }
  0xae   :  { %v340_v59 = vpop.f32.mrf.mxu2 }
  0xaf   :  { %v341_v60 = vadd.f32 %v340_v59, %v327_v58  ;;  %v354_v61 = vpop.f32.mrf.mxu3 }
  0xb1   :  { %v355_v63 = vadd.f32 %v354_v61, %v341_v60 }
  0xb3   :  { %v360_v0 = vadd.f32 %v358_v62, %v355_v63 }
  0xb5   :  { %362 = vst [vmem:[%s712_s4 + $0x8] sm:$0xff] %v360_v0 }

// kernel: onsets_and_frames_tf_forward.23
= control target key start
LH: loop header
LB: loop body
LE: loop exit
PB: predicated region body
PF: predicated region fallthrough
CT: control target
= control target key end

     0   :  { %v277_v2 = vmov 128.0   ;;  %s370_s0 = inlined_call_operand.vmem [shape: f32[16,128], index: 0, kind: input, shape index: {}]   ;;  %s371_s3 = inlined_call_operand.vmem [shape: f32[1,128], index: 3, kind: input, shape index: {}]   ;;  %s372_s4 = inlined_call_operand.vmem [shape: f32[1,128], index: 4, kind: input, shape index: {}]   ;;  %s373_s2 = inlined_call_operand.vmem [shape: f32[1,128], index: 2, kind: input, shape index: {}]   ;;  %s374_s1 = inlined_call_operand.vmem [shape: bf16[128,128], index: 1, kind: input, shape index: {}]   ;;  %s375_s5 = inlined_call_operand.vmem [shape: f32[1,128], index: 5, kind: input, shape index: {}]   ;;  %s376_s6 = inlined_call_operand.vmem [shape: f32[16,128], index: 6, kind: output, shape index: {}]  }
   0x1   :  { %v23_v0 = vld [vmem:[%s370_s0] sm:$0xff]  ;;  %v24_v1 = vld [vmem:[%s370_s0 + $0x8] sm:$0xff]  ;;  %263 = vrcp.f32 %v277_v2  ;;  %v257_v17 = vld [vmem:[%s374_s1 + $0x38] sm:$0xff] }
   0x2   :  { %25 = vadd.xlane.f32.xlu0 %v23_v0  ;;  %153 = vmatpush.bf16.msra.mxu0 %v257_v17  ;;  %v256_v18 = vld [vmem:[%s374_s1 + $0x30] sm:$0xff]  ;;  %v255_v19 = vld [vmem:[%s374_s1 + $0x28] sm:$0xff]  ;;  %v254_v20 = vld [vmem:[%s374_s1 + $0x20] sm:$0xff] }
   0x3   :  { %v253_v21 = vld [vmem:[%s374_s1 + $0x18] sm:$0xff]  ;;  %v252_v22 = vld [vmem:[%s374_s1 + $0x10] sm:$0xff]  ;;  %v251_v23 = vld [vmem:[%s374_s1 + $0x8] sm:$0xff] }
   0x4   :  { %v250_v25 = vld [vmem:[%s374_s1] sm:$0xff] }
   0x5   :  { %v260_v44 = vld [vmem:[%s371_s3] ss:$0 sm:$0xff] }
   0x6   :  { %154 = vmatpush.bf16.msra.mxu0 %v256_v18  ;;  %v261_v49 = vld [vmem:[%s372_s4] ss:$0 sm:$0xff] }
   0x7   :  { %v264_v3 = vpop.eup %263  ;;  %v262_v54 = vld [vmem:[%s373_s2] ss:$0 sm:$0xff] }
   0x8   :  { %v30_v4 = vmul.f32 128.0, %v264_v3  ;;  %vm34_vm0 = vweird.f32 %v264_v3 }
   0xa   :  { %27 = vadd.xlane.f32.xlu0 %v24_v1  ;;  %v31_v5 = vsub.f32 1.0, %v30_v4  ;;  %155 = vmatpush.bf16.msra.mxu0 %v255_v19 }
   0xc   :  { %v32_v6 = vmul.f32 %v264_v3, %v31_v5 }
   0xe   :  { %v33_v7 = vadd.f32 %v264_v3, %v32_v6  ;;  %156 = vmatpush.bf16.msra.mxu0 %v254_v20  ;;  %v278_v6 = vmov 0  }
  0x10   :  { %v35_v8 = vsel %vm34_vm0, %v264_v3, %v33_v7 }
  0x12   :  { %157 = vmatpush.bf16.msra.mxu0 %v253_v21 }
  0x16   :  { %158 = vmatpush.bf16.msra.mxu0 %v252_v22 }
  0x1a   :  { %159 = vmatpush.bf16.msra.mxu0 %v251_v23 }
  0x1e   :  { %160 = vmatpush.bf16.msra.mxu0 %v250_v25 }
  0x75   :  { %v26_v9 = vpop.xlane.xlu0 %25 }
  0x76   :  { %v36_v10 = vmul.f32 %v35_v8, %v26_v9 }
  0x78   :  { %v38_v11 = vsub.f32 %v23_v0, %v36_v10 }
  0x7a   :  { %v40_v12 = vmul.f32 %v38_v11, %v38_v11 }
  0x7c   :  { %42 = vadd.xlane.f32.xlu1 %v40_v12 }
  0x7d   :  { %v28_v13 = vpop.xlane.xlu0 %27 }
  0x7e   :  { %v37_v14 = vmul.f32 %v35_v8, %v28_v13 }
  0x80   :  { %v39_v15 = vsub.f32 %v24_v1, %v37_v14  ;;  %v205_v1 = vld [vmem:[%s375_s5] sm:$0x1] }
  0x81   :  { %vm206_vm7 = vcmp.gt.f32.partialorder %v205_v1, 0.5 }
  0x82   :  { %v41_v16 = vmul.f32 %v39_v15, %v39_v15  ;;  %v207_v7 = vsel %vm206_vm7, 1, %v278_v6 }
  0x83   :  { %v208_v10 = vperm.slane %v207_v7, 0 }
  0x84   :  { %44 = vadd.xlane.f32.xlu1 %v41_v16 }
  0x85   :  { %vm356_vm11 = vcmp.eq.s32.totalorder %v208_v10, 1 }
  0xef   :  { %v43_v24 = vpop.xlane.xlu1 %42 }
  0xf0   :  { %v46_v26 = vmul.f32 %v43_v24, %v35_v8 }
  0xf2   :  { %v48_v27 = vadd.f32 1e-05, %v46_v26 }
  0xf4   :  { %265 = vrsqrt.f32 %v48_v27  ;;  %vm56_vm2 = vweird.f32 %v48_v27 }
  0xf7   :  { %v45_v28 = vpop.xlane.xlu1 %44 }
  0xf8   :  { %v47_v29 = vmul.f32 %v45_v28, %v35_v8 }
  0xfa   :  { %v266_v30 = vpop.eup %265  ;;  %v49_v31 = vadd.f32 1e-05, %v47_v29 }
  0xfb   :  { %v51_v32 = vmul.f32 %v266_v30, %v48_v27  ;;  %vm57_vm1 = vweird.f32 %v266_v30 }
  0xfc   :  { %267 = vrsqrt.f32 %v49_v31  ;;  %vm58_vm3 = vmor %vm56_vm2, %vm57_vm1  ;;  %vm66_vm5 = vweird.f32 %v49_v31 }
  0xfd   :  { %v52_v33 = vmul.f32 %v266_v30, %v51_v32 }
  0xff   :  { %v53_v34 = vmul.f32 0.5, %v52_v33 }
 0x101   :  { %v54_v35 = vsub.f32 1.5, %v53_v34 }
 0x102   :  { %v268_v36 = vpop.eup %267 }
 0x103   :  { %v55_v37 = vmul.f32 %v266_v30, %v54_v35  ;;  %v61_v38 = vmul.f32 %v268_v36, %v49_v31  ;;  %vm67_vm4 = vweird.f32 %v268_v36 }
 0x104   :  { %vm68_vm6 = vmor %vm66_vm5, %vm67_vm4 }
 0x105   :  { %v62_v39 = vmul.f32 %v268_v36, %v61_v38  ;;  %v59_v41 = vsel %vm58_vm3, %v266_v30, %v55_v37 }
 0x106   :  { %v70_v43 = vmul.f32 %v59_v41, %v38_v11 }
 0x107   :  { %v63_v40 = vmul.f32 0.5, %v62_v39 }
 0x108   :  { %v76_v48 = vmul.f32 %v260_v44, %v70_v43 }
 0x109   :  { %v64_v42 = vsub.f32 1.5, %v63_v40 }
 0x10a   :  { %v82_v51 = vadd.f32 %v261_v49, %v76_v48 }
 0x10b   :  { %v65_v45 = vmul.f32 %v268_v36, %v64_v42 }
 0x10d   :  { %v69_v46 = vsel %vm68_vm6, %v268_v36, %v65_v45 }
 0x10e   :  { %v71_v47 = vmul.f32 %v69_v46, %v39_v15 }
 0x110   :  { %v77_v50 = vmul.f32 %v260_v44, %v71_v47 }
 0x112   :  { %v83_v52 = vadd.f32 %v261_v49, %v77_v50 }
 0x114   :  { %v84_v53 = vpack.c.bf16 %v83_v52, %v82_v51 }
 0x116   :  { %161 = vmatmul.bf16.vlgmr.msra.gmra.mxu0 %v84_v53 }
 0x193   :  { %v162_v55 = vpop.f32.mrf.mxu0 }
 0x194   :  { %v163_v56 = vadd.f32 %v262_v54, %v162_v55 }
 0x196   :  { %v167_v57 = vsub.f32 0.0, %v163_v56 }
 0x198   :  { %v169_v58 = vmul.f32 1.442695, %v167_v57 }
 0x19a   :  { %269 = vpow2.f32 %v169_v58 }
 0x19b   :  { %v164_v59 = vpop.f32.mrf.mxu0 }
 0x19c   :  { %v165_v60 = vadd.f32 %v262_v54, %v164_v59 }
 0x19e   :  { %v168_v61 = vsub.f32 0.0, %v165_v60 }
 0x1a0   :  { %v270_v62 = vpop.eup %269  ;;  %v171_v63 = vmul.f32 1.442695, %v168_v61 }
 0x1a1   :  { %v173_v0 = vadd.f32 1.0, %v270_v62 }
 0x1a2   :  { %271 = vpow2.f32 %v171_v63 }
 0x1a3   :  { %273 = vrcp.f32 %v173_v0  ;;  %v186_v9 = vand.u32 2147483648, %v173_v0  ;;  %v184_v12 = vand.u32 2147483647, %v173_v0  ;;  %vm180_vm9 = vweird.f32 %v173_v0 }
 0x1a5   :  { %v187_v15 = vor.u32 1.1754944e-38, %v186_v9  ;;  %vm185_vm12 = vcmp.eq.f32.partialorder %v184_v12, 8.507059e+37 }
 0x1a8   :  { %v272_v2 = vpop.eup %271 }
 0x1a9   :  { %v274_v3 = vpop.eup %273  ;;  %v174_v4 = vadd.f32 1.0, %v272_v2 }
 0x1aa   :  { %v176_v5 = vmul.f32 %v274_v3, %v173_v0  ;;  %vm181_vm8 = vweird.f32 %v274_v3 }
 0x1ab   :  { %275 = vrcp.f32 %v174_v4  ;;  %vm182_vm10 = vmor %vm180_vm9, %vm181_vm8  ;;  %v201_v22 = vand.u32 2147483648, %v174_v4  ;;  %v199_v24 = vand.u32 2147483647, %v174_v4  ;;  %vm195_vm14 = vweird.f32 %v174_v4 }
 0x1ac   :  { %v177_v8 = vsub.f32 1.0, %v176_v5 }
 0x1ad   :  { %v202_v26 = vor.u32 1.1754944e-38, %v201_v22  ;;  %vm200_vm0 = vcmp.eq.f32.partialorder %v199_v24, 8.507059e+37 }
 0x1ae   :  { %v178_v11 = vmul.f32 %v274_v3, %v177_v8 }
 0x1b0   :  { %v179_v13 = vadd.f32 %v274_v3, %v178_v11 }
 0x1b1   :  { %v276_v14 = vpop.eup %275 }
 0x1b2   :  { %v183_v17 = vsel %vm182_vm10, %v274_v3, %v179_v13  ;;  %v191_v18 = vmul.f32 %v276_v14, %v174_v4  ;;  %vm196_vm13 = vweird.f32 %v276_v14 }
 0x1b3   :  { %v188_v19 = vsel %vm185_vm12, %v187_v15, %v183_v17  ;;  %vm197_vm15 = vmor %vm195_vm14, %vm196_vm13 }
 0x1b4   :  { %v210_v20 = vsel %vm356_vm11, %v188_v19, %v163_v56  ;;  %v192_v21 = vsub.f32 1.0, %v191_v18 }
 0x1b5   :  { %212 = vst [vmem:[%s376_s6] sm:$0xff] %v210_v20 }
 0x1b6   :  { %v193_v23 = vmul.f32 %v276_v14, %v192_v21 }
 0x1b8   :  { %v194_v25 = vadd.f32 %v276_v14, %v193_v23 }
 0x1ba   :  { %v198_v27 = vsel %vm197_vm15, %v276_v14, %v194_v25 }
 0x1bb   :  { %v203_v28 = vsel %vm200_vm0, %v202_v26, %v198_v27 }
 0x1bc   :  { %v211_v29 = vsel %vm356_vm11, %v203_v28, %v165_v60 }
 0x1bd   :  { %213 = vst [vmem:[%s376_s6 + $0x8] sm:$0xff] %v211_v29 }

</bundles_post_ra>
